<compile_context>
chip_gen: v7x
topology: tpu7x:2x2x1
jax: 0.10.0
libtpu: 0.0.40
codegen_flags: <defaults>
</compile_context>

<pallas_src>
import jax
import jax.numpy as jnp
from jax.experimental import pallas as pl
from jax.experimental.pallas import tpu as pltpu


# ---------------------------------------------------------------------------
# Flat parameter layout (f32 vector, read from SMEM inside the kernel)
#  [ 0: 3] branch3_1 conv1 (1x1, 3->1) w     [ 3]    bias
#  [ 4:13] branch3_1 conv2 (3x3, 1->1) w     [13]    bias
#  [14:23] branch3_1 conv3 (3x3, 1->1) w     [23]    bias
#  [24:30] branch3_2 conv1 (1x1, 3->2) w     [30:32] biases
#  [32:68] branch3_2 conv2 (3x3, 2->2) w     [68:70] biases
#  [70:73] SE fc1 (Linear 3->1) w            [73]    bias
#  [74:77] SE fc2 (Linear 1->3) w            [77:80] biases
#  [80:84] softmax-normalized fusion weights w1..w4
# ---------------------------------------------------------------------------
NUM_PARAMS = 84

# The 8 non-center shifts (dy, dx); masks_ref[k] is the validity mask of
# SHIFTS[k] (1.0 where the rolled source pixel lies inside the same image).
SHIFTS = ((-1, -1), (-1, 0), (-1, 1), (0, -1), (0, 1), (1, -1), (1, 0), (1, 1))


def afp_kernel(params_ref, masks_ref, pool_ref, bcast_ref, x_ref, o_ref):
    _, C, H, L = x_ref.shape

    def p(i):
        return params_ref[i]

    # shift2d(a, dy, dx)[i, j] = a[i - dy, j - dx]; boundary handled by masks.
    def roll2(a, dy, dx):
        out = a
        if dy != 0:
            out = pltpu.roll(out, dy % H, axis=0)   # sublane rotate (XLU)
        if dx != 0:
            out = pltpu.roll(out, dx % L, axis=1)   # lane rotate (XLU)
        return out

    w1, w2, w3, w4 = p(80), p(81), p(82), p(83)
    neg_inf = jnp.float32(-jnp.inf)
    inv9 = jnp.float32(1.0 / 9.0)

    # ---- branch1 (max pool 3x3) + branch2 (avg pool 3x3) + identity ---------
    # Folded straight into a per-channel fusion accumulator so the pooled
    # planes do not stay live through the conv phase.
    acc = []
    for c in range(3):
        xc = x_ref[0, c, :, :]
        mx = xc
        sm = xc
        for k, (dy, dx) in enumerate(SHIFTS):
            m = masks_ref[k]                                  # (H, L) 0/1 f32
            s = roll2(xc, dy, dx)                             # one roll, shared
            mx = jnp.maximum(mx, jnp.where(m > 0.0, s, neg_inf))
            sm = sm + s * m
        acc.append(w1 * mx + w2 * (sm * inv9) + w4 * xc)

    # Fused 3x3 conv (padding=1): roll each tap once, accumulate, drop.
    def conv3x3_1(a, base, bias_idx):
        out = p(base + 4) * a                                 # center tap
        for k, (dy, dx) in enumerate(SHIFTS):
            widx = base + (1 - dy) * 3 + (1 - dx)
            out = out + p(widx) * (roll2(a, dy, dx) * masks_ref[k])
        return out + p(bias_idx)

    # ---- branch3_1: Conv1x1(3->1) -> Conv3x3 -> Conv3x3 ---------------------
    x0 = x_ref[0, 0, :, :]
    x1 = x_ref[0, 1, :, :]
    x2 = x_ref[0, 2, :, :]
    c1 = p(0) * x0 + p(1) * x1 + p(2) * x2 + p(3)
    c2 = conv3x3_1(c1, 4, 13)
    c3 = conv3x3_1(c2, 14, 23)

    # ---- branch3_2: Conv1x1(3->2) -> Conv3x3(2->2), taps fused & shared -----
    d0 = p(24) * x0 + p(25) * x1 + p(26) * x2 + p(30)
    d1 = p(27) * x0 + p(28) * x1 + p(29) * x2 + p(31)
    e0 = p(32 + 4) * d0 + p(41 + 4) * d1 + p(68)
    e1 = p(50 + 4) * d0 + p(59 + 4) * d1 + p(69)
    for k, (dy, dx) in enumerate(SHIFTS):
        widx = (1 - dy) * 3 + (1 - dx)
        m = masks_ref[k]
        s0 = roll2(d0, dy, dx) * m                            # shared by e0/e1
        s1 = roll2(d1, dy, dx) * m
        e0 = e0 + p(32 + widx) * s0 + p(41 + widx) * s1
        e1 = e1 + p(50 + widx) * s0 + p(59 + widx) * s1

    comb = (c3, e0, e1)                                       # cat(b3_1, b3_2)

    # ---- SE block: factorized per-image global mean (O(L*TB), not O(L^2)) ---
    # Column sums across H on the XLU, then a tiny pooling matmul per image.
    cs = jnp.concatenate(
        [jnp.sum(t, axis=0, keepdims=True) for t in comb], axis=0)       # (3, L)
    means = jnp.dot(cs, pool_ref[...],
                    preferred_element_type=jnp.float32)                  # (3, TBp)
    z = jnp.maximum(
        p(70) * means[0:1] + p(71) * means[1:2] + p(72) * means[2:3] + p(73),
        0.0)                                                             # (1, TBp)
    gates = jnp.concatenate(
        [1.0 / (1.0 + jnp.exp(-(p(74 + c) * z + p(77 + c)))) for c in range(3)],
        axis=0)                                                          # (3, TBp)
    g_full = jnp.dot(gates, bcast_ref[...],
                     preferred_element_type=jnp.float32)                 # (3, L)

    # ---- weighted fusion; full-lane-width stores ----------------------------
    for c in range(3):
        o_ref[0, c, :, :] = acc[c] + w3 * (g_full[c:c + 1, :] * comb[c])


# ---------------------------------------------------------------------------
# Wrapper: lane packing, constant (mask / pooling-matrix) construction.
# ---------------------------------------------------------------------------
def _choose_tb(batch, w):
    """Images packed per block so L = TB*W is a multiple of 128 when possible."""
    if w > 128 or (128 % w) != 0:
        # TODO(synk): widths not dividing 128 fall back to 1 image per block
        # (masked partial stores) rather than a pad-to-128 path.
        return 1
    per128 = 128 // w
    # Widen up to 4*128 lanes per grid step (amortize per-step overhead), but
    # keep >= 2 grid steps for small batches so v7x megacore stays busy.
    k = max(1, min(4, batch // (2 * per128)))
    return k * per128


def _build_consts(H, W, TB, L):
    TBp = ((TB + 127) // 128) * 128          # lane-pad the tiny image axis
    ri = jnp.arange(H, dtype=jnp.int32)[:, None]
    cw = (jnp.arange(L, dtype=jnp.int32) % W)[None, :]
    row_ok = {0: None, 1: ri >= 1, -1: ri < H - 1}
    col_ok = {0: None, 1: cw >= 1, -1: cw < W - 1}
    masks = []
    for dy, dx in SHIFTS:
        r, c = row_ok[dy], col_ok[dx]
        if r is None:
            m = jnp.broadcast_to(c, (H, L))
        elif c is None:
            m = jnp.broadcast_to(r, (H, L))
        else:
            m = jnp.logical_and(r, c)
        masks.append(m.astype(jnp.float32))
    masks = jnp.stack(masks, axis=0)                                    # (8,H,L)
    sel = (jnp.arange(L)[:, None] // W ==
           jnp.arange(TBp)[None, :]).astype(jnp.float32)                # (L,TBp)
    pool = sel * jnp.float32(1.0 / (H * W))                             # mean
    bcast = sel.T                                                       # (TBp,L)
    return masks, pool, bcast


def afp_forward(x, flat_params):
    B, C, H, W = x.shape
    assert C == 3
    TB = _choose_tb(B, W)
    Bp = ((B + TB - 1) // TB) * TB
    xp = x if Bp == B else jnp.pad(x, ((0, Bp - B), (0, 0), (0, 0), (0, 0)))
    G = Bp // TB
    L = TB * W
    # TODO(synk): if AFP is stacked, keep this packed (G,C,H,L) layout between
    # layers (or fuse the transpose via allow_input_fusion) to avoid the extra
    # HBM pack/unpack pass.
    xp = xp.reshape(G, TB, C, H, W).transpose(0, 2, 3, 1, 4).reshape(G, C, H, L)

    masks, pool, bcast = _build_consts(H, W, TB, L)
    TBp = pool.shape[1]

    grid_spec = pltpu.PrefetchScalarGridSpec(
        num_scalar_prefetch=0,
        grid=(G,),
        in_specs=[
            pl.BlockSpec(memory_space=pltpu.MemorySpace.SMEM),       # params
            pl.BlockSpec((8, H, L), lambda g: (0, 0, 0)),            # masks
            pl.BlockSpec((L, TBp), lambda g: (0, 0)),                # pool mat
            pl.BlockSpec((TBp, L), lambda g: (0, 0)),                # bcast mat
            pl.BlockSpec((1, C, H, L), lambda g: (g, 0, 0, 0)),      # packed x
        ],
        out_specs=pl.BlockSpec((1, C, H, L), lambda g: (g, 0, 0, 0)),
    )
    cost = pl.CostEstimate(
        flops=int(Bp * H * W * 400),
        transcendentals=int(G * 3 * TBp),
        bytes_accessed=int((2 * Bp * C * H * W + 8 * H * L + 2 * L * TBp
                            + NUM_PARAMS) * 4),
    )
    out_p = pl.pallas_call(
        afp_kernel,
        out_shape=jax.ShapeDtypeStruct((G, C, H, L), jnp.float32),
        grid_spec=grid_spec,
        compiler_params=pltpu.CompilerParams(dimension_semantics=("parallel",)),
        cost_estimate=cost,
    )(flat_params, masks, pool, bcast, xp)

    out = out_p.reshape(G, C, H, TB, W).transpose(0, 3, 1, 2, 4).reshape(Bp, C, H, W)
    return out[:B]


# ---------------------------------------------------------------------------
# Deterministic parameter init (matches nn.Module shapes) + packing
# ---------------------------------------------------------------------------
def init_afp_params(key):
    ks = jax.random.split(key, 14)

    def u(k, shape, scale=0.3):
        return jax.random.uniform(k, shape, jnp.float32, -scale, scale)

    return {
        "b31_c1_w": u(ks[0], (1, 3, 1, 1)), "b31_c1_b": u(ks[1], (1,)),
        "b31_c2_w": u(ks[2], (1, 1, 3, 3)), "b31_c2_b": u(ks[3], (1,)),
        "b31_c3_w": u(ks[4], (1, 1, 3, 3)), "b31_c3_b": u(ks[5], (1,)),
        "b32_c1_w": u(ks[6], (2, 3, 1, 1)), "b32_c1_b": u(ks[7], (2,)),
        "b32_c2_w": u(ks[8], (2, 2, 3, 3)), "b32_c2_b": u(ks[9], (2,)),
        "se_fc1_w": u(ks[10], (1, 3)),      "se_fc1_b": u(ks[11], (1,)),
        "se_fc2_w": u(ks[12], (3, 1)),      "se_fc2_b": u(ks[13], (3,)),
        "w": jnp.ones((4,), jnp.float32),   # nn.Parameter(torch.ones(4))
    }


def pack_params(p):
    fuse = jnp.exp(p["w"]) / jnp.sum(jnp.exp(p["w"]))
    flat = jnp.concatenate([
        p["b31_c1_w"].reshape(-1), p["b31_c1_b"].reshape(-1),
        p["b31_c2_w"].reshape(-1), p["b31_c2_b"].reshape(-1),
        p["b31_c3_w"].reshape(-1), p["b31_c3_b"].reshape(-1),
        p["b32_c1_w"].reshape(-1), p["b32_c1_b"].reshape(-1),
        p["b32_c2_w"].reshape(-1), p["b32_c2_b"].reshape(-1),
        p["se_fc1_w"].reshape(-1), p["se_fc1_b"].reshape(-1),
        p["se_fc2_w"].reshape(-1), p["se_fc2_b"].reshape(-1),
        fuse,
    ]).astype(jnp.float32)
    assert flat.shape[0] == NUM_PARAMS
    return flat


# ---------------------------------------------------------------------------
# Pure-JAX reference (mirrors the PyTorch forward) for correctness checking
# ---------------------------------------------------------------------------
def afp_reference(x, p):
    dn = ("NCHW", "OIHW", "NCHW")

    def conv(inp, w, b, pad):
        out = jax.lax.conv_general_dilated(inp, w, (1, 1), pad, dimension_numbers=dn)
        return out + b.reshape(1, -1, 1, 1)

    b1 = jax.lax.reduce_window(x, -jnp.inf, jax.lax.max, (1, 1, 3, 3),
                               (1, 1, 1, 1), ((0, 0), (0, 0), (1, 1), (1, 1)))
    b2 = jax.lax.reduce_window(x, 0.0, jax.lax.add, (1, 1, 3, 3),
                               (1, 1, 1, 1), ((0, 0), (0, 0), (1, 1), (1, 1))) / 9.0
    c = conv(x, p["b31_c1_w"], p["b31_c1_b"], "VALID")
    c = conv(c, p["b31_c2_w"], p["b31_c2_b"], [(1, 1), (1, 1)])
    b3_1 = conv(c, p["b31_c3_w"], p["b31_c3_b"], [(1, 1), (1, 1)])
    d = conv(x, p["b32_c1_w"], p["b32_c1_b"], "VALID")
    b3_2 = conv(d, p["b32_c2_w"], p["b32_c2_b"], [(1, 1), (1, 1)])
    comb = jnp.concatenate([b3_1, b3_2], axis=1)
    s = jnp.mean(comb, axis=(2, 3))
    z = jnp.maximum(s @ p["se_fc1_w"].T + p["se_fc1_b"], 0.0)
    t = z @ p["se_fc2_w"].T + p["se_fc2_b"]
    se = jax.nn.sigmoid(t)
    b3 = se[:, :, None, None] * comb
    fuse = jnp.exp(p["w"]) / jnp.sum(jnp.exp(p["w"]))
    return b1 * fuse[0] + b2 * fuse[1] + b3 * fuse[2] + x * fuse[3]


if __name__ == "__main__":
    key = jax.random.PRNGKey(0)
    kx, kp, kx2, kx3 = jax.random.split(key, 4)
    params = init_afp_params(kp)
    flat = pack_params(params)

    def check(xin, tag):
        out = jax.block_until_ready(afp_forward(xin, flat))
        assert out.shape == xin.shape
        ref = afp_reference(xin, params)
        err = float(jnp.max(jnp.abs(out - ref)))
        if err > 1e-3:
            raise SystemExit(f"mismatch vs reference ({tag}): max abs err = {err}")

    # Case 1: B=16 -> TB=8 (L=128), G=2 (keeps both v7x TensorCores busy).
    check(jax.random.normal(kx, (16, 3, 16, 16), jnp.float32), "packed, G=2")
    # Case 2: B=48 -> TB=24 (L=384 widened lane block), G=2.
    check(jax.random.normal(kx3, (48, 3, 16, 16), jnp.float32), "wide lane block")
    # Case 3: B=2 -> pad-to-TB path, single grid step.
    check(jax.random.normal(kx2, (2, 3, 16, 16), jnp.float32), "small batch pad")

    print("KERNEL_OK")
</pallas_src>

<mosaic_0001>
module attributes {stable_mosaic.version = 11 : i64} {
  func.func @afp_kernel(%arg0: i32, %arg1: memref<84xf32, #tpu.memory_space<smem>>, %arg2: memref<8x16x128xf32, #tpu.memory_space<vmem>>, %arg3: memref<128x128xf32, #tpu.memory_space<vmem>>, %arg4: memref<128x128xf32, #tpu.memory_space<vmem>>, %arg5: memref<1x3x16x128xf32, #tpu.memory_space<vmem>>, %arg6: memref<1x3x16x128xf32, #tpu.memory_space<vmem>>) attributes {dimension_semantics = [#tpu.dimension_semantics<parallel>], iteration_bounds = array<i64: 2>, scalar_prefetch = 0 : i64, scratch_operands = 0 : i64, tpu.core_type = #tpu.core_type<tc>, window_params = [{transform_indices = @transform_0, window_bounds = array<i64: 84>}, {pipeline_mode = #tpu.pipeline_mode<synchronous>, transform_indices = @transform_1, window_bounds = array<i64: 8, 16, 128>}, {pipeline_mode = #tpu.pipeline_mode<synchronous>, transform_indices = @transform_2, window_bounds = array<i64: 128, 128>}, {pipeline_mode = #tpu.pipeline_mode<synchronous>, transform_indices = @transform_3, window_bounds = array<i64: 128, 128>}, {transform_indices = @transform_4, window_bounds = array<i64: 1, 3, 16, 128>}, {transform_indices = @transform_5, window_bounds = array<i64: 1, 3, 16, 128>}]} {
    %c80 = arith.constant 80 : index
    %0 = memref.load %arg1[%c80] : memref<84xf32, #tpu.memory_space<smem>>
    %c81 = arith.constant 81 : index
    %1 = memref.load %arg1[%c81] : memref<84xf32, #tpu.memory_space<smem>>
    %c82 = arith.constant 82 : index
    %2 = memref.load %arg1[%c82] : memref<84xf32, #tpu.memory_space<smem>>
    %c83 = arith.constant 83 : index
    %3 = memref.load %arg1[%c83] : memref<84xf32, #tpu.memory_space<smem>>
    %c0 = arith.constant 0 : index
    %c0_0 = arith.constant 0 : index
    %c0_1 = arith.constant 0 : index
    %c0_2 = arith.constant 0 : index
    %4 = vector.load %arg5[%c0, %c0_0, %c0_1, %c0_2] : memref<1x3x16x128xf32, #tpu.memory_space<vmem>>, vector<1x1x16x128xf32>
    %5 = vector.shape_cast %4 : vector<1x1x16x128xf32> to vector<16x128xf32>
    %c0_3 = arith.constant 0 : index
    %c0_4 = arith.constant 0 : index
    %c0_5 = arith.constant 0 : index
    %6 = vector.load %arg2[%c0_3, %c0_4, %c0_5] : memref<8x16x128xf32, #tpu.memory_space<vmem>>, vector<1x16x128xf32>
    %7 = vector.shape_cast %6 : vector<1x16x128xf32> to vector<16x128xf32>
    %c15_i32 = arith.constant 15 : i32
    %8 = tpu.dynamic_rotate %5 by %c15_i32 dim 0 : vector<16x128xf32>, i32 -> vector<16x128xf32>
    %c127_i32 = arith.constant 127 : i32
    %9 = tpu.dynamic_rotate %8 by %c127_i32 dim 1 : vector<16x128xf32>, i32 -> vector<16x128xf32>
    %cst = arith.constant 0.000000e+00 : f32
    %10 = vector.broadcast %cst : f32 to vector<16x128xf32>
    %11 = arith.cmpf ogt, %7, %10 : vector<16x128xf32>
    %cst_6 = arith.constant 0xFF800000 : f32
    %12 = vector.broadcast %cst_6 : f32 to vector<16x128xf32>
    %13 = arith.select %11, %9, %12 : vector<16x128xi1>, vector<16x128xf32>
    %14 = arith.maximumf %5, %13 : vector<16x128xf32>
    %15 = arith.mulf %9, %7 : vector<16x128xf32>
    %16 = arith.addf %5, %15 : vector<16x128xf32>
    %c1 = arith.constant 1 : index
    %c0_7 = arith.constant 0 : index
    %c0_8 = arith.constant 0 : index
    %17 = vector.load %arg2[%c1, %c0_7, %c0_8] : memref<8x16x128xf32, #tpu.memory_space<vmem>>, vector<1x16x128xf32>
    %18 = vector.shape_cast %17 : vector<1x16x128xf32> to vector<16x128xf32>
    %c15_i32_9 = arith.constant 15 : i32
    %19 = tpu.dynamic_rotate %5 by %c15_i32_9 dim 0 : vector<16x128xf32>, i32 -> vector<16x128xf32>
    %cst_10 = arith.constant 0.000000e+00 : f32
    %20 = vector.broadcast %cst_10 : f32 to vector<16x128xf32>
    %21 = arith.cmpf ogt, %18, %20 : vector<16x128xf32>
    %cst_11 = arith.constant 0xFF800000 : f32
    %22 = vector.broadcast %cst_11 : f32 to vector<16x128xf32>
    %23 = arith.select %21, %19, %22 : vector<16x128xi1>, vector<16x128xf32>
    %24 = arith.maximumf %14, %23 : vector<16x128xf32>
    %25 = arith.mulf %19, %18 : vector<16x128xf32>
    %26 = arith.addf %16, %25 : vector<16x128xf32>
    %c2 = arith.constant 2 : index
    %c0_12 = arith.constant 0 : index
    %c0_13 = arith.constant 0 : index
    %27 = vector.load %arg2[%c2, %c0_12, %c0_13] : memref<8x16x128xf32, #tpu.memory_space<vmem>>, vector<1x16x128xf32>
    %28 = vector.shape_cast %27 : vector<1x16x128xf32> to vector<16x128xf32>
    %c15_i32_14 = arith.constant 15 : i32
    %29 = tpu.dynamic_rotate %5 by %c15_i32_14 dim 0 : vector<16x128xf32>, i32 -> vector<16x128xf32>
    %c1_i32 = arith.constant 1 : i32
    %30 = tpu.dynamic_rotate %29 by %c1_i32 dim 1 : vector<16x128xf32>, i32 -> vector<16x128xf32>
    %cst_15 = arith.constant 0.000000e+00 : f32
    %31 = vector.broadcast %cst_15 : f32 to vector<16x128xf32>
    %32 = arith.cmpf ogt, %28, %31 : vector<16x128xf32>
    %cst_16 = arith.constant 0xFF800000 : f32
    %33 = vector.broadcast %cst_16 : f32 to vector<16x128xf32>
    %34 = arith.select %32, %30, %33 : vector<16x128xi1>, vector<16x128xf32>
    %35 = arith.maximumf %24, %34 : vector<16x128xf32>
    %36 = arith.mulf %30, %28 : vector<16x128xf32>
    %37 = arith.addf %26, %36 : vector<16x128xf32>
    %c3 = arith.constant 3 : index
    %c0_17 = arith.constant 0 : index
    %c0_18 = arith.constant 0 : index
    %38 = vector.load %arg2[%c3, %c0_17, %c0_18] : memref<8x16x128xf32, #tpu.memory_space<vmem>>, vector<1x16x128xf32>
    %39 = vector.shape_cast %38 : vector<1x16x128xf32> to vector<16x128xf32>
    %c127_i32_19 = arith.constant 127 : i32
    %40 = tpu.dynamic_rotate %5 by %c127_i32_19 dim 1 : vector<16x128xf32>, i32 -> vector<16x128xf32>
    %cst_20 = arith.constant 0.000000e+00 : f32
    %41 = vector.broadcast %cst_20 : f32 to vector<16x128xf32>
    %42 = arith.cmpf ogt, %39, %41 : vector<16x128xf32>
    %cst_21 = arith.constant 0xFF800000 : f32
    %43 = vector.broadcast %cst_21 : f32 to vector<16x128xf32>
    %44 = arith.select %42, %40, %43 : vector<16x128xi1>, vector<16x128xf32>
    %45 = arith.maximumf %35, %44 : vector<16x128xf32>
    %46 = arith.mulf %40, %39 : vector<16x128xf32>
    %47 = arith.addf %37, %46 : vector<16x128xf32>
    %c4 = arith.constant 4 : index
    %c0_22 = arith.constant 0 : index
    %c0_23 = arith.constant 0 : index
    %48 = vector.load %arg2[%c4, %c0_22, %c0_23] : memref<8x16x128xf32, #tpu.memory_space<vmem>>, vector<1x16x128xf32>
    %49 = vector.shape_cast %48 : vector<1x16x128xf32> to vector<16x128xf32>
    %c1_i32_24 = arith.constant 1 : i32
    %50 = tpu.dynamic_rotate %5 by %c1_i32_24 dim 1 : vector<16x128xf32>, i32 -> vector<16x128xf32>
    %cst_25 = arith.constant 0.000000e+00 : f32
    %51 = vector.broadcast %cst_25 : f32 to vector<16x128xf32>
    %52 = arith.cmpf ogt, %49, %51 : vector<16x128xf32>
    %cst_26 = arith.constant 0xFF800000 : f32
    %53 = vector.broadcast %cst_26 : f32 to vector<16x128xf32>
    %54 = arith.select %52, %50, %53 : vector<16x128xi1>, vector<16x128xf32>
    %55 = arith.maximumf %45, %54 : vector<16x128xf32>
    %56 = arith.mulf %50, %49 : vector<16x128xf32>
    %57 = arith.addf %47, %56 : vector<16x128xf32>
    %c5 = arith.constant 5 : index
    %c0_27 = arith.constant 0 : index
    %c0_28 = arith.constant 0 : index
    %58 = vector.load %arg2[%c5, %c0_27, %c0_28] : memref<8x16x128xf32, #tpu.memory_space<vmem>>, vector<1x16x128xf32>
    %59 = vector.shape_cast %58 : vector<1x16x128xf32> to vector<16x128xf32>
    %c1_i32_29 = arith.constant 1 : i32
    %60 = tpu.dynamic_rotate %5 by %c1_i32_29 dim 0 : vector<16x128xf32>, i32 -> vector<16x128xf32>
    %c127_i32_30 = arith.constant 127 : i32
    %61 = tpu.dynamic_rotate %60 by %c127_i32_30 dim 1 : vector<16x128xf32>, i32 -> vector<16x128xf32>
    %cst_31 = arith.constant 0.000000e+00 : f32
    %62 = vector.broadcast %cst_31 : f32 to vector<16x128xf32>
    %63 = arith.cmpf ogt, %59, %62 : vector<16x128xf32>
    %cst_32 = arith.constant 0xFF800000 : f32
    %64 = vector.broadcast %cst_32 : f32 to vector<16x128xf32>
    %65 = arith.select %63, %61, %64 : vector<16x128xi1>, vector<16x128xf32>
    %66 = arith.maximumf %55, %65 : vector<16x128xf32>
    %67 = arith.mulf %61, %59 : vector<16x128xf32>
    %68 = arith.addf %57, %67 : vector<16x128xf32>
    %c6 = arith.constant 6 : index
    %c0_33 = arith.constant 0 : index
    %c0_34 = arith.constant 0 : index
    %69 = vector.load %arg2[%c6, %c0_33, %c0_34] : memref<8x16x128xf32, #tpu.memory_space<vmem>>, vector<1x16x128xf32>
    %70 = vector.shape_cast %69 : vector<1x16x128xf32> to vector<16x128xf32>
    %c1_i32_35 = arith.constant 1 : i32
    %71 = tpu.dynamic_rotate %5 by %c1_i32_35 dim 0 : vector<16x128xf32>, i32 -> vector<16x128xf32>
    %cst_36 = arith.constant 0.000000e+00 : f32
    %72 = vector.broadcast %cst_36 : f32 to vector<16x128xf32>
    %73 = arith.cmpf ogt, %70, %72 : vector<16x128xf32>
    %cst_37 = arith.constant 0xFF800000 : f32
    %74 = vector.broadcast %cst_37 : f32 to vector<16x128xf32>
    %75 = arith.select %73, %71, %74 : vector<16x128xi1>, vector<16x128xf32>
    %76 = arith.maximumf %66, %75 : vector<16x128xf32>
    %77 = arith.mulf %71, %70 : vector<16x128xf32>
    %78 = arith.addf %68, %77 : vector<16x128xf32>
    %c7 = arith.constant 7 : index
    %c0_38 = arith.constant 0 : index
    %c0_39 = arith.constant 0 : index
    %79 = vector.load %arg2[%c7, %c0_38, %c0_39] : memref<8x16x128xf32, #tpu.memory_space<vmem>>, vector<1x16x128xf32>
    %80 = vector.shape_cast %79 : vector<1x16x128xf32> to vector<16x128xf32>
    %c1_i32_40 = arith.constant 1 : i32
    %81 = tpu.dynamic_rotate %5 by %c1_i32_40 dim 0 : vector<16x128xf32>, i32 -> vector<16x128xf32>
    %c1_i32_41 = arith.constant 1 : i32
    %82 = tpu.dynamic_rotate %81 by %c1_i32_41 dim 1 : vector<16x128xf32>, i32 -> vector<16x128xf32>
    %cst_42 = arith.constant 0.000000e+00 : f32
    %83 = vector.broadcast %cst_42 : f32 to vector<16x128xf32>
    %84 = arith.cmpf ogt, %80, %83 : vector<16x128xf32>
    %cst_43 = arith.constant 0xFF800000 : f32
    %85 = vector.broadcast %cst_43 : f32 to vector<16x128xf32>
    %86 = arith.select %84, %82, %85 : vector<16x128xi1>, vector<16x128xf32>
    %87 = arith.maximumf %76, %86 : vector<16x128xf32>
    %88 = arith.mulf %82, %80 : vector<16x128xf32>
    %89 = arith.addf %78, %88 : vector<16x128xf32>
    %90 = vector.broadcast %0 : f32 to vector<16x128xf32>
    %91 = arith.mulf %90, %87 : vector<16x128xf32>
    %cst_44 = arith.constant 0.111111112 : f32
    %92 = vector.broadcast %cst_44 : f32 to vector<16x128xf32>
    %93 = arith.mulf %89, %92 : vector<16x128xf32>
    %94 = vector.broadcast %1 : f32 to vector<16x128xf32>
    %95 = arith.mulf %94, %93 : vector<16x128xf32>
    %96 = arith.addf %91, %95 : vector<16x128xf32>
    %97 = vector.broadcast %3 : f32 to vector<16x128xf32>
    %98 = arith.mulf %97, %5 : vector<16x128xf32>
    %99 = arith.addf %96, %98 : vector<16x128xf32>
    %c0_45 = arith.constant 0 : index
    %c1_46 = arith.constant 1 : index
    %c0_47 = arith.constant 0 : index
    %c0_48 = arith.constant 0 : index
    %100 = vector.load %arg5[%c0_45, %c1_46, %c0_47, %c0_48] : memref<1x3x16x128xf32, #tpu.memory_space<vmem>>, vector<1x1x16x128xf32>
    %101 = vector.shape_cast %100 : vector<1x1x16x128xf32> to vector<16x128xf32>
    %c0_49 = arith.constant 0 : index
    %c0_50 = arith.constant 0 : index
    %c0_51 = arith.constant 0 : index
    %102 = vector.load %arg2[%c0_49, %c0_50, %c0_51] : memref<8x16x128xf32, #tpu.memory_space<vmem>>, vector<1x16x128xf32>
    %103 = vector.shape_cast %102 : vector<1x16x128xf32> to vector<16x128xf32>
    %c15_i32_52 = arith.constant 15 : i32
    %104 = tpu.dynamic_rotate %101 by %c15_i32_52 dim 0 : vector<16x128xf32>, i32 -> vector<16x128xf32>
    %c127_i32_53 = arith.constant 127 : i32
    %105 = tpu.dynamic_rotate %104 by %c127_i32_53 dim 1 : vector<16x128xf32>, i32 -> vector<16x128xf32>
    %cst_54 = arith.constant 0.000000e+00 : f32
    %106 = vector.broadcast %cst_54 : f32 to vector<16x128xf32>
    %107 = arith.cmpf ogt, %103, %106 : vector<16x128xf32>
    %cst_55 = arith.constant 0xFF800000 : f32
    %108 = vector.broadcast %cst_55 : f32 to vector<16x128xf32>
    %109 = arith.select %107, %105, %108 : vector<16x128xi1>, vector<16x128xf32>
    %110 = arith.maximumf %101, %109 : vector<16x128xf32>
    %111 = arith.mulf %105, %103 : vector<16x128xf32>
    %112 = arith.addf %101, %111 : vector<16x128xf32>
    %c1_56 = arith.constant 1 : index
    %c0_57 = arith.constant 0 : index
    %c0_58 = arith.constant 0 : index
    %113 = vector.load %arg2[%c1_56, %c0_57, %c0_58] : memref<8x16x128xf32, #tpu.memory_space<vmem>>, vector<1x16x128xf32>
    %114 = vector.shape_cast %113 : vector<1x16x128xf32> to vector<16x128xf32>
    %c15_i32_59 = arith.constant 15 : i32
    %115 = tpu.dynamic_rotate %101 by %c15_i32_59 dim 0 : vector<16x128xf32>, i32 -> vector<16x128xf32>
    %cst_60 = arith.constant 0.000000e+00 : f32
    %116 = vector.broadcast %cst_60 : f32 to vector<16x128xf32>
    %117 = arith.cmpf ogt, %114, %116 : vector<16x128xf32>
    %cst_61 = arith.constant 0xFF800000 : f32
    %118 = vector.broadcast %cst_61 : f32 to vector<16x128xf32>
    %119 = arith.select %117, %115, %118 : vector<16x128xi1>, vector<16x128xf32>
    %120 = arith.maximumf %110, %119 : vector<16x128xf32>
    %121 = arith.mulf %115, %114 : vector<16x128xf32>
    %122 = arith.addf %112, %121 : vector<16x128xf32>
    %c2_62 = arith.constant 2 : index
    %c0_63 = arith.constant 0 : index
    %c0_64 = arith.constant 0 : index
    %123 = vector.load %arg2[%c2_62, %c0_63, %c0_64] : memref<8x16x128xf32, #tpu.memory_space<vmem>>, vector<1x16x128xf32>
    %124 = vector.shape_cast %123 : vector<1x16x128xf32> to vector<16x128xf32>
    %c15_i32_65 = arith.constant 15 : i32
    %125 = tpu.dynamic_rotate %101 by %c15_i32_65 dim 0 : vector<16x128xf32>, i32 -> vector<16x128xf32>
    %c1_i32_66 = arith.constant 1 : i32
    %126 = tpu.dynamic_rotate %125 by %c1_i32_66 dim 1 : vector<16x128xf32>, i32 -> vector<16x128xf32>
    %cst_67 = arith.constant 0.000000e+00 : f32
    %127 = vector.broadcast %cst_67 : f32 to vector<16x128xf32>
    %128 = arith.cmpf ogt, %124, %127 : vector<16x128xf32>
    %cst_68 = arith.constant 0xFF800000 : f32
    %129 = vector.broadcast %cst_68 : f32 to vector<16x128xf32>
    %130 = arith.select %128, %126, %129 : vector<16x128xi1>, vector<16x128xf32>
    %131 = arith.maximumf %120, %130 : vector<16x128xf32>
    %132 = arith.mulf %126, %124 : vector<16x128xf32>
    %133 = arith.addf %122, %132 : vector<16x128xf32>
    %c3_69 = arith.constant 3 : index
    %c0_70 = arith.constant 0 : index
    %c0_71 = arith.constant 0 : index
    %134 = vector.load %arg2[%c3_69, %c0_70, %c0_71] : memref<8x16x128xf32, #tpu.memory_space<vmem>>, vector<1x16x128xf32>
    %135 = vector.shape_cast %134 : vector<1x16x128xf32> to vector<16x128xf32>
    %c127_i32_72 = arith.constant 127 : i32
    %136 = tpu.dynamic_rotate %101 by %c127_i32_72 dim 1 : vector<16x128xf32>, i32 -> vector<16x128xf32>
    %cst_73 = arith.constant 0.000000e+00 : f32
    %137 = vector.broadcast %cst_73 : f32 to vector<16x128xf32>
    %138 = arith.cmpf ogt, %135, %137 : vector<16x128xf32>
    %cst_74 = arith.constant 0xFF800000 : f32
    %139 = vector.broadcast %cst_74 : f32 to vector<16x128xf32>
    %140 = arith.select %138, %136, %139 : vector<16x128xi1>, vector<16x128xf32>
    %141 = arith.maximumf %131, %140 : vector<16x128xf32>
    %142 = arith.mulf %136, %135 : vector<16x128xf32>
    %143 = arith.addf %133, %142 : vector<16x128xf32>
    %c4_75 = arith.constant 4 : index
    %c0_76 = arith.constant 0 : index
    %c0_77 = arith.constant 0 : index
    %144 = vector.load %arg2[%c4_75, %c0_76, %c0_77] : memref<8x16x128xf32, #tpu.memory_space<vmem>>, vector<1x16x128xf32>
    %145 = vector.shape_cast %144 : vector<1x16x128xf32> to vector<16x128xf32>
    %c1_i32_78 = arith.constant 1 : i32
    %146 = tpu.dynamic_rotate %101 by %c1_i32_78 dim 1 : vector<16x128xf32>, i32 -> vector<16x128xf32>
    %cst_79 = arith.constant 0.000000e+00 : f32
    %147 = vector.broadcast %cst_79 : f32 to vector<16x128xf32>
    %148 = arith.cmpf ogt, %145, %147 : vector<16x128xf32>
    %cst_80 = arith.constant 0xFF800000 : f32
    %149 = vector.broadcast %cst_80 : f32 to vector<16x128xf32>
    %150 = arith.select %148, %146, %149 : vector<16x128xi1>, vector<16x128xf32>
    %151 = arith.maximumf %141, %150 : vector<16x128xf32>
    %152 = arith.mulf %146, %145 : vector<16x128xf32>
    %153 = arith.addf %143, %152 : vector<16x128xf32>
    %c5_81 = arith.constant 5 : index
    %c0_82 = arith.constant 0 : index
    %c0_83 = arith.constant 0 : index
    %154 = vector.load %arg2[%c5_81, %c0_82, %c0_83] : memref<8x16x128xf32, #tpu.memory_space<vmem>>, vector<1x16x128xf32>
    %155 = vector.shape_cast %154 : vector<1x16x128xf32> to vector<16x128xf32>
    %c1_i32_84 = arith.constant 1 : i32
    %156 = tpu.dynamic_rotate %101 by %c1_i32_84 dim 0 : vector<16x128xf32>, i32 -> vector<16x128xf32>
    %c127_i32_85 = arith.constant 127 : i32
    %157 = tpu.dynamic_rotate %156 by %c127_i32_85 dim 1 : vector<16x128xf32>, i32 -> vector<16x128xf32>
    %cst_86 = arith.constant 0.000000e+00 : f32
    %158 = vector.broadcast %cst_86 : f32 to vector<16x128xf32>
    %159 = arith.cmpf ogt, %155, %158 : vector<16x128xf32>
    %cst_87 = arith.constant 0xFF800000 : f32
    %160 = vector.broadcast %cst_87 : f32 to vector<16x128xf32>
    %161 = arith.select %159, %157, %160 : vector<16x128xi1>, vector<16x128xf32>
    %162 = arith.maximumf %151, %161 : vector<16x128xf32>
    %163 = arith.mulf %157, %155 : vector<16x128xf32>
    %164 = arith.addf %153, %163 : vector<16x128xf32>
    %c6_88 = arith.constant 6 : index
    %c0_89 = arith.constant 0 : index
    %c0_90 = arith.constant 0 : index
    %165 = vector.load %arg2[%c6_88, %c0_89, %c0_90] : memref<8x16x128xf32, #tpu.memory_space<vmem>>, vector<1x16x128xf32>
    %166 = vector.shape_cast %165 : vector<1x16x128xf32> to vector<16x128xf32>
    %c1_i32_91 = arith.constant 1 : i32
    %167 = tpu.dynamic_rotate %101 by %c1_i32_91 dim 0 : vector<16x128xf32>, i32 -> vector<16x128xf32>
    %cst_92 = arith.constant 0.000000e+00 : f32
    %168 = vector.broadcast %cst_92 : f32 to vector<16x128xf32>
    %169 = arith.cmpf ogt, %166, %168 : vector<16x128xf32>
    %cst_93 = arith.constant 0xFF800000 : f32
    %170 = vector.broadcast %cst_93 : f32 to vector<16x128xf32>
    %171 = arith.select %169, %167, %170 : vector<16x128xi1>, vector<16x128xf32>
    %172 = arith.maximumf %162, %171 : vector<16x128xf32>
    %173 = arith.mulf %167, %166 : vector<16x128xf32>
    %174 = arith.addf %164, %173 : vector<16x128xf32>
    %c7_94 = arith.constant 7 : index
    %c0_95 = arith.constant 0 : index
    %c0_96 = arith.constant 0 : index
    %175 = vector.load %arg2[%c7_94, %c0_95, %c0_96] : memref<8x16x128xf32, #tpu.memory_space<vmem>>, vector<1x16x128xf32>
    %176 = vector.shape_cast %175 : vector<1x16x128xf32> to vector<16x128xf32>
    %c1_i32_97 = arith.constant 1 : i32
    %177 = tpu.dynamic_rotate %101 by %c1_i32_97 dim 0 : vector<16x128xf32>, i32 -> vector<16x128xf32>
    %c1_i32_98 = arith.constant 1 : i32
    %178 = tpu.dynamic_rotate %177 by %c1_i32_98 dim 1 : vector<16x128xf32>, i32 -> vector<16x128xf32>
    %cst_99 = arith.constant 0.000000e+00 : f32
    %179 = vector.broadcast %cst_99 : f32 to vector<16x128xf32>
    %180 = arith.cmpf ogt, %176, %179 : vector<16x128xf32>
    %cst_100 = arith.constant 0xFF800000 : f32
    %181 = vector.broadcast %cst_100 : f32 to vector<16x128xf32>
    %182 = arith.select %180, %178, %181 : vector<16x128xi1>, vector<16x128xf32>
    %183 = arith.maximumf %172, %182 : vector<16x128xf32>
    %184 = arith.mulf %178, %176 : vector<16x128xf32>
    %185 = arith.addf %174, %184 : vector<16x128xf32>
    %186 = vector.broadcast %0 : f32 to vector<16x128xf32>
    %187 = arith.mulf %186, %183 : vector<16x128xf32>
    %cst_101 = arith.constant 0.111111112 : f32
    %188 = vector.broadcast %cst_101 : f32 to vector<16x128xf32>
    %189 = arith.mulf %185, %188 : vector<16x128xf32>
    %190 = vector.broadcast %1 : f32 to vector<16x128xf32>
    %191 = arith.mulf %190, %189 : vector<16x128xf32>
    %192 = arith.addf %187, %191 : vector<16x128xf32>
    %193 = vector.broadcast %3 : f32 to vector<16x128xf32>
    %194 = arith.mulf %193, %101 : vector<16x128xf32>
    %195 = arith.addf %192, %194 : vector<16x128xf32>
    %c0_102 = arith.constant 0 : index
    %c2_103 = arith.constant 2 : index
    %c0_104 = arith.constant 0 : index
    %c0_105 = arith.constant 0 : index
    %196 = vector.load %arg5[%c0_102, %c2_103, %c0_104, %c0_105] : memref<1x3x16x128xf32, #tpu.memory_space<vmem>>, vector<1x1x16x128xf32>
    %197 = vector.shape_cast %196 : vector<1x1x16x128xf32> to vector<16x128xf32>
    %c0_106 = arith.constant 0 : index
    %c0_107 = arith.constant 0 : index
    %c0_108 = arith.constant 0 : index
    %198 = vector.load %arg2[%c0_106, %c0_107, %c0_108] : memref<8x16x128xf32, #tpu.memory_space<vmem>>, vector<1x16x128xf32>
    %199 = vector.shape_cast %198 : vector<1x16x128xf32> to vector<16x128xf32>
    %c15_i32_109 = arith.constant 15 : i32
    %200 = tpu.dynamic_rotate %197 by %c15_i32_109 dim 0 : vector<16x128xf32>, i32 -> vector<16x128xf32>
    %c127_i32_110 = arith.constant 127 : i32
    %201 = tpu.dynamic_rotate %200 by %c127_i32_110 dim 1 : vector<16x128xf32>, i32 -> vector<16x128xf32>
    %cst_111 = arith.constant 0.000000e+00 : f32
    %202 = vector.broadcast %cst_111 : f32 to vector<16x128xf32>
    %203 = arith.cmpf ogt, %199, %202 : vector<16x128xf32>
    %cst_112 = arith.constant 0xFF800000 : f32
    %204 = vector.broadcast %cst_112 : f32 to vector<16x128xf32>
    %205 = arith.select %203, %201, %204 : vector<16x128xi1>, vector<16x128xf32>
    %206 = arith.maximumf %197, %205 : vector<16x128xf32>
    %207 = arith.mulf %201, %199 : vector<16x128xf32>
    %208 = arith.addf %197, %207 : vector<16x128xf32>
    %c1_113 = arith.constant 1 : index
    %c0_114 = arith.constant 0 : index
    %c0_115 = arith.constant 0 : index
    %209 = vector.load %arg2[%c1_113, %c0_114, %c0_115] : memref<8x16x128xf32, #tpu.memory_space<vmem>>, vector<1x16x128xf32>
    %210 = vector.shape_cast %209 : vector<1x16x128xf32> to vector<16x128xf32>
    %c15_i32_116 = arith.constant 15 : i32
    %211 = tpu.dynamic_rotate %197 by %c15_i32_116 dim 0 : vector<16x128xf32>, i32 -> vector<16x128xf32>
    %cst_117 = arith.constant 0.000000e+00 : f32
    %212 = vector.broadcast %cst_117 : f32 to vector<16x128xf32>
    %213 = arith.cmpf ogt, %210, %212 : vector<16x128xf32>
    %cst_118 = arith.constant 0xFF800000 : f32
    %214 = vector.broadcast %cst_118 : f32 to vector<16x128xf32>
    %215 = arith.select %213, %211, %214 : vector<16x128xi1>, vector<16x128xf32>
    %216 = arith.maximumf %206, %215 : vector<16x128xf32>
    %217 = arith.mulf %211, %210 : vector<16x128xf32>
    %218 = arith.addf %208, %217 : vector<16x128xf32>
    %c2_119 = arith.constant 2 : index
    %c0_120 = arith.constant 0 : index
    %c0_121 = arith.constant 0 : index
    %219 = vector.load %arg2[%c2_119, %c0_120, %c0_121] : memref<8x16x128xf32, #tpu.memory_space<vmem>>, vector<1x16x128xf32>
    %220 = vector.shape_cast %219 : vector<1x16x128xf32> to vector<16x128xf32>
    %c15_i32_122 = arith.constant 15 : i32
    %221 = tpu.dynamic_rotate %197 by %c15_i32_122 dim 0 : vector<16x128xf32>, i32 -> vector<16x128xf32>
    %c1_i32_123 = arith.constant 1 : i32
    %222 = tpu.dynamic_rotate %221 by %c1_i32_123 dim 1 : vector<16x128xf32>, i32 -> vector<16x128xf32>
    %cst_124 = arith.constant 0.000000e+00 : f32
    %223 = vector.broadcast %cst_124 : f32 to vector<16x128xf32>
    %224 = arith.cmpf ogt, %220, %223 : vector<16x128xf32>
    %cst_125 = arith.constant 0xFF800000 : f32
    %225 = vector.broadcast %cst_125 : f32 to vector<16x128xf32>
    %226 = arith.select %224, %222, %225 : vector<16x128xi1>, vector<16x128xf32>
    %227 = arith.maximumf %216, %226 : vector<16x128xf32>
    %228 = arith.mulf %222, %220 : vector<16x128xf32>
    %229 = arith.addf %218, %228 : vector<16x128xf32>
    %c3_126 = arith.constant 3 : index
    %c0_127 = arith.constant 0 : index
    %c0_128 = arith.constant 0 : index
    %230 = vector.load %arg2[%c3_126, %c0_127, %c0_128] : memref<8x16x128xf32, #tpu.memory_space<vmem>>, vector<1x16x128xf32>
    %231 = vector.shape_cast %230 : vector<1x16x128xf32> to vector<16x128xf32>
    %c127_i32_129 = arith.constant 127 : i32
    %232 = tpu.dynamic_rotate %197 by %c127_i32_129 dim 1 : vector<16x128xf32>, i32 -> vector<16x128xf32>
    %cst_130 = arith.constant 0.000000e+00 : f32
    %233 = vector.broadcast %cst_130 : f32 to vector<16x128xf32>
    %234 = arith.cmpf ogt, %231, %233 : vector<16x128xf32>
    %cst_131 = arith.constant 0xFF800000 : f32
    %235 = vector.broadcast %cst_131 : f32 to vector<16x128xf32>
    %236 = arith.select %234, %232, %235 : vector<16x128xi1>, vector<16x128xf32>
    %237 = arith.maximumf %227, %236 : vector<16x128xf32>
    %238 = arith.mulf %232, %231 : vector<16x128xf32>
    %239 = arith.addf %229, %238 : vector<16x128xf32>
    %c4_132 = arith.constant 4 : index
    %c0_133 = arith.constant 0 : index
    %c0_134 = arith.constant 0 : index
    %240 = vector.load %arg2[%c4_132, %c0_133, %c0_134] : memref<8x16x128xf32, #tpu.memory_space<vmem>>, vector<1x16x128xf32>
    %241 = vector.shape_cast %240 : vector<1x16x128xf32> to vector<16x128xf32>
    %c1_i32_135 = arith.constant 1 : i32
    %242 = tpu.dynamic_rotate %197 by %c1_i32_135 dim 1 : vector<16x128xf32>, i32 -> vector<16x128xf32>
    %cst_136 = arith.constant 0.000000e+00 : f32
    %243 = vector.broadcast %cst_136 : f32 to vector<16x128xf32>
    %244 = arith.cmpf ogt, %241, %243 : vector<16x128xf32>
    %cst_137 = arith.constant 0xFF800000 : f32
    %245 = vector.broadcast %cst_137 : f32 to vector<16x128xf32>
    %246 = arith.select %244, %242, %245 : vector<16x128xi1>, vector<16x128xf32>
    %247 = arith.maximumf %237, %246 : vector<16x128xf32>
    %248 = arith.mulf %242, %241 : vector<16x128xf32>
    %249 = arith.addf %239, %248 : vector<16x128xf32>
    %c5_138 = arith.constant 5 : index
    %c0_139 = arith.constant 0 : index
    %c0_140 = arith.constant 0 : index
    %250 = vector.load %arg2[%c5_138, %c0_139, %c0_140] : memref<8x16x128xf32, #tpu.memory_space<vmem>>, vector<1x16x128xf32>
    %251 = vector.shape_cast %250 : vector<1x16x128xf32> to vector<16x128xf32>
    %c1_i32_141 = arith.constant 1 : i32
    %252 = tpu.dynamic_rotate %197 by %c1_i32_141 dim 0 : vector<16x128xf32>, i32 -> vector<16x128xf32>
    %c127_i32_142 = arith.constant 127 : i32
    %253 = tpu.dynamic_rotate %252 by %c127_i32_142 dim 1 : vector<16x128xf32>, i32 -> vector<16x128xf32>
    %cst_143 = arith.constant 0.000000e+00 : f32
    %254 = vector.broadcast %cst_143 : f32 to vector<16x128xf32>
    %255 = arith.cmpf ogt, %251, %254 : vector<16x128xf32>
    %cst_144 = arith.constant 0xFF800000 : f32
    %256 = vector.broadcast %cst_144 : f32 to vector<16x128xf32>
    %257 = arith.select %255, %253, %256 : vector<16x128xi1>, vector<16x128xf32>
    %258 = arith.maximumf %247, %257 : vector<16x128xf32>
    %259 = arith.mulf %253, %251 : vector<16x128xf32>
    %260 = arith.addf %249, %259 : vector<16x128xf32>
    %c6_145 = arith.constant 6 : index
    %c0_146 = arith.constant 0 : index
    %c0_147 = arith.constant 0 : index
    %261 = vector.load %arg2[%c6_145, %c0_146, %c0_147] : memref<8x16x128xf32, #tpu.memory_space<vmem>>, vector<1x16x128xf32>
    %262 = vector.shape_cast %261 : vector<1x16x128xf32> to vector<16x128xf32>
    %c1_i32_148 = arith.constant 1 : i32
    %263 = tpu.dynamic_rotate %197 by %c1_i32_148 dim 0 : vector<16x128xf32>, i32 -> vector<16x128xf32>
    %cst_149 = arith.constant 0.000000e+00 : f32
    %264 = vector.broadcast %cst_149 : f32 to vector<16x128xf32>
    %265 = arith.cmpf ogt, %262, %264 : vector<16x128xf32>
    %cst_150 = arith.constant 0xFF800000 : f32
    %266 = vector.broadcast %cst_150 : f32 to vector<16x128xf32>
    %267 = arith.select %265, %263, %266 : vector<16x128xi1>, vector<16x128xf32>
    %268 = arith.maximumf %258, %267 : vector<16x128xf32>
    %269 = arith.mulf %263, %262 : vector<16x128xf32>
    %270 = arith.addf %260, %269 : vector<16x128xf32>
    %c7_151 = arith.constant 7 : index
    %c0_152 = arith.constant 0 : index
    %c0_153 = arith.constant 0 : index
    %271 = vector.load %arg2[%c7_151, %c0_152, %c0_153] : memref<8x16x128xf32, #tpu.memory_space<vmem>>, vector<1x16x128xf32>
    %272 = vector.shape_cast %271 : vector<1x16x128xf32> to vector<16x128xf32>
    %c1_i32_154 = arith.constant 1 : i32
    %273 = tpu.dynamic_rotate %197 by %c1_i32_154 dim 0 : vector<16x128xf32>, i32 -> vector<16x128xf32>
    %c1_i32_155 = arith.constant 1 : i32
    %274 = tpu.dynamic_rotate %273 by %c1_i32_155 dim 1 : vector<16x128xf32>, i32 -> vector<16x128xf32>
    %cst_156 = arith.constant 0.000000e+00 : f32
    %275 = vector.broadcast %cst_156 : f32 to vector<16x128xf32>
    %276 = arith.cmpf ogt, %272, %275 : vector<16x128xf32>
    %cst_157 = arith.constant 0xFF800000 : f32
    %277 = vector.broadcast %cst_157 : f32 to vector<16x128xf32>
    %278 = arith.select %276, %274, %277 : vector<16x128xi1>, vector<16x128xf32>
    %279 = arith.maximumf %268, %278 : vector<16x128xf32>
    %280 = arith.mulf %274, %272 : vector<16x128xf32>
    %281 = arith.addf %270, %280 : vector<16x128xf32>
    %282 = vector.broadcast %0 : f32 to vector<16x128xf32>
    %283 = arith.mulf %282, %279 : vector<16x128xf32>
    %cst_158 = arith.constant 0.111111112 : f32
    %284 = vector.broadcast %cst_158 : f32 to vector<16x128xf32>
    %285 = arith.mulf %281, %284 : vector<16x128xf32>
    %286 = vector.broadcast %1 : f32 to vector<16x128xf32>
    %287 = arith.mulf %286, %285 : vector<16x128xf32>
    %288 = arith.addf %283, %287 : vector<16x128xf32>
    %289 = vector.broadcast %3 : f32 to vector<16x128xf32>
    %290 = arith.mulf %289, %197 : vector<16x128xf32>
    %291 = arith.addf %288, %290 : vector<16x128xf32>
    %c0_159 = arith.constant 0 : index
    %c0_160 = arith.constant 0 : index
    %c0_161 = arith.constant 0 : index
    %c0_162 = arith.constant 0 : index
    %292 = vector.load %arg5[%c0_159, %c0_160, %c0_161, %c0_162] : memref<1x3x16x128xf32, #tpu.memory_space<vmem>>, vector<1x1x16x128xf32>
    %293 = vector.shape_cast %292 : vector<1x1x16x128xf32> to vector<16x128xf32>
    %c0_163 = arith.constant 0 : index
    %c1_164 = arith.constant 1 : index
    %c0_165 = arith.constant 0 : index
    %c0_166 = arith.constant 0 : index
    %294 = vector.load %arg5[%c0_163, %c1_164, %c0_165, %c0_166] : memref<1x3x16x128xf32, #tpu.memory_space<vmem>>, vector<1x1x16x128xf32>
    %295 = vector.shape_cast %294 : vector<1x1x16x128xf32> to vector<16x128xf32>
    %c0_167 = arith.constant 0 : index
    %c2_168 = arith.constant 2 : index
    %c0_169 = arith.constant 0 : index
    %c0_170 = arith.constant 0 : index
    %296 = vector.load %arg5[%c0_167, %c2_168, %c0_169, %c0_170] : memref<1x3x16x128xf32, #tpu.memory_space<vmem>>, vector<1x1x16x128xf32>
    %297 = vector.shape_cast %296 : vector<1x1x16x128xf32> to vector<16x128xf32>
    %c0_171 = arith.constant 0 : index
    %298 = memref.load %arg1[%c0_171] : memref<84xf32, #tpu.memory_space<smem>>
    %299 = vector.broadcast %298 : f32 to vector<16x128xf32>
    %300 = arith.mulf %299, %293 : vector<16x128xf32>
    %c1_172 = arith.constant 1 : index
    %301 = memref.load %arg1[%c1_172] : memref<84xf32, #tpu.memory_space<smem>>
    %302 = vector.broadcast %301 : f32 to vector<16x128xf32>
    %303 = arith.mulf %302, %295 : vector<16x128xf32>
    %304 = arith.addf %300, %303 : vector<16x128xf32>
    %c2_173 = arith.constant 2 : index
    %305 = memref.load %arg1[%c2_173] : memref<84xf32, #tpu.memory_space<smem>>
    %306 = vector.broadcast %305 : f32 to vector<16x128xf32>
    %307 = arith.mulf %306, %297 : vector<16x128xf32>
    %308 = arith.addf %304, %307 : vector<16x128xf32>
    %c3_174 = arith.constant 3 : index
    %309 = memref.load %arg1[%c3_174] : memref<84xf32, #tpu.memory_space<smem>>
    %310 = vector.broadcast %309 : f32 to vector<16x128xf32>
    %311 = arith.addf %308, %310 : vector<16x128xf32>
    %c8 = arith.constant 8 : index
    %312 = memref.load %arg1[%c8] : memref<84xf32, #tpu.memory_space<smem>>
    %313 = vector.broadcast %312 : f32 to vector<16x128xf32>
    %314 = arith.mulf %313, %311 : vector<16x128xf32>
    %c12 = arith.constant 12 : index
    %315 = memref.load %arg1[%c12] : memref<84xf32, #tpu.memory_space<smem>>
    %c15_i32_175 = arith.constant 15 : i32
    %316 = tpu.dynamic_rotate %311 by %c15_i32_175 dim 0 : vector<16x128xf32>, i32 -> vector<16x128xf32>
    %c127_i32_176 = arith.constant 127 : i32
    %317 = tpu.dynamic_rotate %316 by %c127_i32_176 dim 1 : vector<16x128xf32>, i32 -> vector<16x128xf32>
    %c0_177 = arith.constant 0 : index
    %c0_178 = arith.constant 0 : index
    %c0_179 = arith.constant 0 : index
    %318 = vector.load %arg2[%c0_177, %c0_178, %c0_179] : memref<8x16x128xf32, #tpu.memory_space<vmem>>, vector<1x16x128xf32>
    %319 = vector.shape_cast %318 : vector<1x16x128xf32> to vector<16x128xf32>
    %320 = arith.mulf %317, %319 : vector<16x128xf32>
    %321 = vector.broadcast %315 : f32 to vector<16x128xf32>
    %322 = arith.mulf %321, %320 : vector<16x128xf32>
    %323 = arith.addf %314, %322 : vector<16x128xf32>
    %c11 = arith.constant 11 : index
    %324 = memref.load %arg1[%c11] : memref<84xf32, #tpu.memory_space<smem>>
    %c15_i32_180 = arith.constant 15 : i32
    %325 = tpu.dynamic_rotate %311 by %c15_i32_180 dim 0 : vector<16x128xf32>, i32 -> vector<16x128xf32>
    %c1_181 = arith.constant 1 : index
    %c0_182 = arith.constant 0 : index
    %c0_183 = arith.constant 0 : index
    %326 = vector.load %arg2[%c1_181, %c0_182, %c0_183] : memref<8x16x128xf32, #tpu.memory_space<vmem>>, vector<1x16x128xf32>
    %327 = vector.shape_cast %326 : vector<1x16x128xf32> to vector<16x128xf32>
    %328 = arith.mulf %325, %327 : vector<16x128xf32>
    %329 = vector.broadcast %324 : f32 to vector<16x128xf32>
    %330 = arith.mulf %329, %328 : vector<16x128xf32>
    %331 = arith.addf %323, %330 : vector<16x128xf32>
    %c10 = arith.constant 10 : index
    %332 = memref.load %arg1[%c10] : memref<84xf32, #tpu.memory_space<smem>>
    %c15_i32_184 = arith.constant 15 : i32
    %333 = tpu.dynamic_rotate %311 by %c15_i32_184 dim 0 : vector<16x128xf32>, i32 -> vector<16x128xf32>
    %c1_i32_185 = arith.constant 1 : i32
    %334 = tpu.dynamic_rotate %333 by %c1_i32_185 dim 1 : vector<16x128xf32>, i32 -> vector<16x128xf32>
    %c2_186 = arith.constant 2 : index
    %c0_187 = arith.constant 0 : index
    %c0_188 = arith.constant 0 : index
    %335 = vector.load %arg2[%c2_186, %c0_187, %c0_188] : memref<8x16x128xf32, #tpu.memory_space<vmem>>, vector<1x16x128xf32>
    %336 = vector.shape_cast %335 : vector<1x16x128xf32> to vector<16x128xf32>
    %337 = arith.mulf %334, %336 : vector<16x128xf32>
    %338 = vector.broadcast %332 : f32 to vector<16x128xf32>
    %339 = arith.mulf %338, %337 : vector<16x128xf32>
    %340 = arith.addf %331, %339 : vector<16x128xf32>
    %c9 = arith.constant 9 : index
    %341 = memref.load %arg1[%c9] : memref<84xf32, #tpu.memory_space<smem>>
    %c127_i32_189 = arith.constant 127 : i32
    %342 = tpu.dynamic_rotate %311 by %c127_i32_189 dim 1 : vector<16x128xf32>, i32 -> vector<16x128xf32>
    %c3_190 = arith.constant 3 : index
    %c0_191 = arith.constant 0 : index
    %c0_192 = arith.constant 0 : index
    %343 = vector.load %arg2[%c3_190, %c0_191, %c0_192] : memref<8x16x128xf32, #tpu.memory_space<vmem>>, vector<1x16x128xf32>
    %344 = vector.shape_cast %343 : vector<1x16x128xf32> to vector<16x128xf32>
    %345 = arith.mulf %342, %344 : vector<16x128xf32>
    %346 = vector.broadcast %341 : f32 to vector<16x128xf32>
    %347 = arith.mulf %346, %345 : vector<16x128xf32>
    %348 = arith.addf %340, %347 : vector<16x128xf32>
    %c7_193 = arith.constant 7 : index
    %349 = memref.load %arg1[%c7_193] : memref<84xf32, #tpu.memory_space<smem>>
    %c1_i32_194 = arith.constant 1 : i32
    %350 = tpu.dynamic_rotate %311 by %c1_i32_194 dim 1 : vector<16x128xf32>, i32 -> vector<16x128xf32>
    %c4_195 = arith.constant 4 : index
    %c0_196 = arith.constant 0 : index
    %c0_197 = arith.constant 0 : index
    %351 = vector.load %arg2[%c4_195, %c0_196, %c0_197] : memref<8x16x128xf32, #tpu.memory_space<vmem>>, vector<1x16x128xf32>
    %352 = vector.shape_cast %351 : vector<1x16x128xf32> to vector<16x128xf32>
    %353 = arith.mulf %350, %352 : vector<16x128xf32>
    %354 = vector.broadcast %349 : f32 to vector<16x128xf32>
    %355 = arith.mulf %354, %353 : vector<16x128xf32>
    %356 = arith.addf %348, %355 : vector<16x128xf32>
    %c6_198 = arith.constant 6 : index
    %357 = memref.load %arg1[%c6_198] : memref<84xf32, #tpu.memory_space<smem>>
    %c1_i32_199 = arith.constant 1 : i32
    %358 = tpu.dynamic_rotate %311 by %c1_i32_199 dim 0 : vector<16x128xf32>, i32 -> vector<16x128xf32>
    %c127_i32_200 = arith.constant 127 : i32
    %359 = tpu.dynamic_rotate %358 by %c127_i32_200 dim 1 : vector<16x128xf32>, i32 -> vector<16x128xf32>
    %c5_201 = arith.constant 5 : index
    %c0_202 = arith.constant 0 : index
    %c0_203 = arith.constant 0 : index
    %360 = vector.load %arg2[%c5_201, %c0_202, %c0_203] : memref<8x16x128xf32, #tpu.memory_space<vmem>>, vector<1x16x128xf32>
    %361 = vector.shape_cast %360 : vector<1x16x128xf32> to vector<16x128xf32>
    %362 = arith.mulf %359, %361 : vector<16x128xf32>
    %363 = vector.broadcast %357 : f32 to vector<16x128xf32>
    %364 = arith.mulf %363, %362 : vector<16x128xf32>
    %365 = arith.addf %356, %364 : vector<16x128xf32>
    %c5_204 = arith.constant 5 : index
    %366 = memref.load %arg1[%c5_204] : memref<84xf32, #tpu.memory_space<smem>>
    %c1_i32_205 = arith.constant 1 : i32
    %367 = tpu.dynamic_rotate %311 by %c1_i32_205 dim 0 : vector<16x128xf32>, i32 -> vector<16x128xf32>
    %c6_206 = arith.constant 6 : index
    %c0_207 = arith.constant 0 : index
    %c0_208 = arith.constant 0 : index
    %368 = vector.load %arg2[%c6_206, %c0_207, %c0_208] : memref<8x16x128xf32, #tpu.memory_space<vmem>>, vector<1x16x128xf32>
    %369 = vector.shape_cast %368 : vector<1x16x128xf32> to vector<16x128xf32>
    %370 = arith.mulf %367, %369 : vector<16x128xf32>
    %371 = vector.broadcast %366 : f32 to vector<16x128xf32>
    %372 = arith.mulf %371, %370 : vector<16x128xf32>
    %373 = arith.addf %365, %372 : vector<16x128xf32>
    %c4_209 = arith.constant 4 : index
    %374 = memref.load %arg1[%c4_209] : memref<84xf32, #tpu.memory_space<smem>>
    %c1_i32_210 = arith.constant 1 : i32
    %375 = tpu.dynamic_rotate %311 by %c1_i32_210 dim 0 : vector<16x128xf32>, i32 -> vector<16x128xf32>
    %c1_i32_211 = arith.constant 1 : i32
    %376 = tpu.dynamic_rotate %375 by %c1_i32_211 dim 1 : vector<16x128xf32>, i32 -> vector<16x128xf32>
    %c7_212 = arith.constant 7 : index
    %c0_213 = arith.constant 0 : index
    %c0_214 = arith.constant 0 : index
    %377 = vector.load %arg2[%c7_212, %c0_213, %c0_214] : memref<8x16x128xf32, #tpu.memory_space<vmem>>, vector<1x16x128xf32>
    %378 = vector.shape_cast %377 : vector<1x16x128xf32> to vector<16x128xf32>
    %379 = arith.mulf %376, %378 : vector<16x128xf32>
    %380 = vector.broadcast %374 : f32 to vector<16x128xf32>
    %381 = arith.mulf %380, %379 : vector<16x128xf32>
    %382 = arith.addf %373, %381 : vector<16x128xf32>
    %c13 = arith.constant 13 : index
    %383 = memref.load %arg1[%c13] : memref<84xf32, #tpu.memory_space<smem>>
    %384 = vector.broadcast %383 : f32 to vector<16x128xf32>
    %385 = arith.addf %382, %384 : vector<16x128xf32>
    %c18 = arith.constant 18 : index
    %386 = memref.load %arg1[%c18] : memref<84xf32, #tpu.memory_space<smem>>
    %387 = vector.broadcast %386 : f32 to vector<16x128xf32>
    %388 = arith.mulf %387, %385 : vector<16x128xf32>
    %c22 = arith.constant 22 : index
    %389 = memref.load %arg1[%c22] : memref<84xf32, #tpu.memory_space<smem>>
    %c15_i32_215 = arith.constant 15 : i32
    %390 = tpu.dynamic_rotate %385 by %c15_i32_215 dim 0 : vector<16x128xf32>, i32 -> vector<16x128xf32>
    %c127_i32_216 = arith.constant 127 : i32
    %391 = tpu.dynamic_rotate %390 by %c127_i32_216 dim 1 : vector<16x128xf32>, i32 -> vector<16x128xf32>
    %c0_217 = arith.constant 0 : index
    %c0_218 = arith.constant 0 : index
    %c0_219 = arith.constant 0 : index
    %392 = vector.load %arg2[%c0_217, %c0_218, %c0_219] : memref<8x16x128xf32, #tpu.memory_space<vmem>>, vector<1x16x128xf32>
    %393 = vector.shape_cast %392 : vector<1x16x128xf32> to vector<16x128xf32>
    %394 = arith.mulf %391, %393 : vector<16x128xf32>
    %395 = vector.broadcast %389 : f32 to vector<16x128xf32>
    %396 = arith.mulf %395, %394 : vector<16x128xf32>
    %397 = arith.addf %388, %396 : vector<16x128xf32>
    %c21 = arith.constant 21 : index
    %398 = memref.load %arg1[%c21] : memref<84xf32, #tpu.memory_space<smem>>
    %c15_i32_220 = arith.constant 15 : i32
    %399 = tpu.dynamic_rotate %385 by %c15_i32_220 dim 0 : vector<16x128xf32>, i32 -> vector<16x128xf32>
    %c1_221 = arith.constant 1 : index
    %c0_222 = arith.constant 0 : index
    %c0_223 = arith.constant 0 : index
    %400 = vector.load %arg2[%c1_221, %c0_222, %c0_223] : memref<8x16x128xf32, #tpu.memory_space<vmem>>, vector<1x16x128xf32>
    %401 = vector.shape_cast %400 : vector<1x16x128xf32> to vector<16x128xf32>
    %402 = arith.mulf %399, %401 : vector<16x128xf32>
    %403 = vector.broadcast %398 : f32 to vector<16x128xf32>
    %404 = arith.mulf %403, %402 : vector<16x128xf32>
    %405 = arith.addf %397, %404 : vector<16x128xf32>
    %c20 = arith.constant 20 : index
    %406 = memref.load %arg1[%c20] : memref<84xf32, #tpu.memory_space<smem>>
    %c15_i32_224 = arith.constant 15 : i32
    %407 = tpu.dynamic_rotate %385 by %c15_i32_224 dim 0 : vector<16x128xf32>, i32 -> vector<16x128xf32>
    %c1_i32_225 = arith.constant 1 : i32
    %408 = tpu.dynamic_rotate %407 by %c1_i32_225 dim 1 : vector<16x128xf32>, i32 -> vector<16x128xf32>
    %c2_226 = arith.constant 2 : index
    %c0_227 = arith.constant 0 : index
    %c0_228 = arith.constant 0 : index
    %409 = vector.load %arg2[%c2_226, %c0_227, %c0_228] : memref<8x16x128xf32, #tpu.memory_space<vmem>>, vector<1x16x128xf32>
    %410 = vector.shape_cast %409 : vector<1x16x128xf32> to vector<16x128xf32>
    %411 = arith.mulf %408, %410 : vector<16x128xf32>
    %412 = vector.broadcast %406 : f32 to vector<16x128xf32>
    %413 = arith.mulf %412, %411 : vector<16x128xf32>
    %414 = arith.addf %405, %413 : vector<16x128xf32>
    %c19 = arith.constant 19 : index
    %415 = memref.load %arg1[%c19] : memref<84xf32, #tpu.memory_space<smem>>
    %c127_i32_229 = arith.constant 127 : i32
    %416 = tpu.dynamic_rotate %385 by %c127_i32_229 dim 1 : vector<16x128xf32>, i32 -> vector<16x128xf32>
    %c3_230 = arith.constant 3 : index
    %c0_231 = arith.constant 0 : index
    %c0_232 = arith.constant 0 : index
    %417 = vector.load %arg2[%c3_230, %c0_231, %c0_232] : memref<8x16x128xf32, #tpu.memory_space<vmem>>, vector<1x16x128xf32>
    %418 = vector.shape_cast %417 : vector<1x16x128xf32> to vector<16x128xf32>
    %419 = arith.mulf %416, %418 : vector<16x128xf32>
    %420 = vector.broadcast %415 : f32 to vector<16x128xf32>
    %421 = arith.mulf %420, %419 : vector<16x128xf32>
    %422 = arith.addf %414, %421 : vector<16x128xf32>
    %c17 = arith.constant 17 : index
    %423 = memref.load %arg1[%c17] : memref<84xf32, #tpu.memory_space<smem>>
    %c1_i32_233 = arith.constant 1 : i32
    %424 = tpu.dynamic_rotate %385 by %c1_i32_233 dim 1 : vector<16x128xf32>, i32 -> vector<16x128xf32>
    %c4_234 = arith.constant 4 : index
    %c0_235 = arith.constant 0 : index
    %c0_236 = arith.constant 0 : index
    %425 = vector.load %arg2[%c4_234, %c0_235, %c0_236] : memref<8x16x128xf32, #tpu.memory_space<vmem>>, vector<1x16x128xf32>
    %426 = vector.shape_cast %425 : vector<1x16x128xf32> to vector<16x128xf32>
    %427 = arith.mulf %424, %426 : vector<16x128xf32>
    %428 = vector.broadcast %423 : f32 to vector<16x128xf32>
    %429 = arith.mulf %428, %427 : vector<16x128xf32>
    %430 = arith.addf %422, %429 : vector<16x128xf32>
    %c16 = arith.constant 16 : index
    %431 = memref.load %arg1[%c16] : memref<84xf32, #tpu.memory_space<smem>>
    %c1_i32_237 = arith.constant 1 : i32
    %432 = tpu.dynamic_rotate %385 by %c1_i32_237 dim 0 : vector<16x128xf32>, i32 -> vector<16x128xf32>
    %c127_i32_238 = arith.constant 127 : i32
    %433 = tpu.dynamic_rotate %432 by %c127_i32_238 dim 1 : vector<16x128xf32>, i32 -> vector<16x128xf32>
    %c5_239 = arith.constant 5 : index
    %c0_240 = arith.constant 0 : index
    %c0_241 = arith.constant 0 : index
    %434 = vector.load %arg2[%c5_239, %c0_240, %c0_241] : memref<8x16x128xf32, #tpu.memory_space<vmem>>, vector<1x16x128xf32>
    %435 = vector.shape_cast %434 : vector<1x16x128xf32> to vector<16x128xf32>
    %436 = arith.mulf %433, %435 : vector<16x128xf32>
    %437 = vector.broadcast %431 : f32 to vector<16x128xf32>
    %438 = arith.mulf %437, %436 : vector<16x128xf32>
    %439 = arith.addf %430, %438 : vector<16x128xf32>
    %c15 = arith.constant 15 : index
    %440 = memref.load %arg1[%c15] : memref<84xf32, #tpu.memory_space<smem>>
    %c1_i32_242 = arith.constant 1 : i32
    %441 = tpu.dynamic_rotate %385 by %c1_i32_242 dim 0 : vector<16x128xf32>, i32 -> vector<16x128xf32>
    %c6_243 = arith.constant 6 : index
    %c0_244 = arith.constant 0 : index
    %c0_245 = arith.constant 0 : index
    %442 = vector.load %arg2[%c6_243, %c0_244, %c0_245] : memref<8x16x128xf32, #tpu.memory_space<vmem>>, vector<1x16x128xf32>
    %443 = vector.shape_cast %442 : vector<1x16x128xf32> to vector<16x128xf32>
    %444 = arith.mulf %441, %443 : vector<16x128xf32>
    %445 = vector.broadcast %440 : f32 to vector<16x128xf32>
    %446 = arith.mulf %445, %444 : vector<16x128xf32>
    %447 = arith.addf %439, %446 : vector<16x128xf32>
    %c14 = arith.constant 14 : index
    %448 = memref.load %arg1[%c14] : memref<84xf32, #tpu.memory_space<smem>>
    %c1_i32_246 = arith.constant 1 : i32
    %449 = tpu.dynamic_rotate %385 by %c1_i32_246 dim 0 : vector<16x128xf32>, i32 -> vector<16x128xf32>
    %c1_i32_247 = arith.constant 1 : i32
    %450 = tpu.dynamic_rotate %449 by %c1_i32_247 dim 1 : vector<16x128xf32>, i32 -> vector<16x128xf32>
    %c7_248 = arith.constant 7 : index
    %c0_249 = arith.constant 0 : index
    %c0_250 = arith.constant 0 : index
    %451 = vector.load %arg2[%c7_248, %c0_249, %c0_250] : memref<8x16x128xf32, #tpu.memory_space<vmem>>, vector<1x16x128xf32>
    %452 = vector.shape_cast %451 : vector<1x16x128xf32> to vector<16x128xf32>
    %453 = arith.mulf %450, %452 : vector<16x128xf32>
    %454 = vector.broadcast %448 : f32 to vector<16x128xf32>
    %455 = arith.mulf %454, %453 : vector<16x128xf32>
    %456 = arith.addf %447, %455 : vector<16x128xf32>
    %c23 = arith.constant 23 : index
    %457 = memref.load %arg1[%c23] : memref<84xf32, #tpu.memory_space<smem>>
    %458 = vector.broadcast %457 : f32 to vector<16x128xf32>
    %459 = arith.addf %456, %458 : vector<16x128xf32>
    %c24 = arith.constant 24 : index
    %460 = memref.load %arg1[%c24] : memref<84xf32, #tpu.memory_space<smem>>
    %461 = vector.broadcast %460 : f32 to vector<16x128xf32>
    %462 = arith.mulf %461, %293 : vector<16x128xf32>
    %c25 = arith.constant 25 : index
    %463 = memref.load %arg1[%c25] : memref<84xf32, #tpu.memory_space<smem>>
    %464 = vector.broadcast %463 : f32 to vector<16x128xf32>
    %465 = arith.mulf %464, %295 : vector<16x128xf32>
    %466 = arith.addf %462, %465 : vector<16x128xf32>
    %c26 = arith.constant 26 : index
    %467 = memref.load %arg1[%c26] : memref<84xf32, #tpu.memory_space<smem>>
    %468 = vector.broadcast %467 : f32 to vector<16x128xf32>
    %469 = arith.mulf %468, %297 : vector<16x128xf32>
    %470 = arith.addf %466, %469 : vector<16x128xf32>
    %c30 = arith.constant 30 : index
    %471 = memref.load %arg1[%c30] : memref<84xf32, #tpu.memory_space<smem>>
    %472 = vector.broadcast %471 : f32 to vector<16x128xf32>
    %473 = arith.addf %470, %472 : vector<16x128xf32>
    %c27 = arith.constant 27 : index
    %474 = memref.load %arg1[%c27] : memref<84xf32, #tpu.memory_space<smem>>
    %475 = vector.broadcast %474 : f32 to vector<16x128xf32>
    %476 = arith.mulf %475, %293 : vector<16x128xf32>
    %c28 = arith.constant 28 : index
    %477 = memref.load %arg1[%c28] : memref<84xf32, #tpu.memory_space<smem>>
    %478 = vector.broadcast %477 : f32 to vector<16x128xf32>
    %479 = arith.mulf %478, %295 : vector<16x128xf32>
    %480 = arith.addf %476, %479 : vector<16x128xf32>
    %c29 = arith.constant 29 : index
    %481 = memref.load %arg1[%c29] : memref<84xf32, #tpu.memory_space<smem>>
    %482 = vector.broadcast %481 : f32 to vector<16x128xf32>
    %483 = arith.mulf %482, %297 : vector<16x128xf32>
    %484 = arith.addf %480, %483 : vector<16x128xf32>
    %c31 = arith.constant 31 : index
    %485 = memref.load %arg1[%c31] : memref<84xf32, #tpu.memory_space<smem>>
    %486 = vector.broadcast %485 : f32 to vector<16x128xf32>
    %487 = arith.addf %484, %486 : vector<16x128xf32>
    %c36 = arith.constant 36 : index
    %488 = memref.load %arg1[%c36] : memref<84xf32, #tpu.memory_space<smem>>
    %489 = vector.broadcast %488 : f32 to vector<16x128xf32>
    %490 = arith.mulf %489, %473 : vector<16x128xf32>
    %c45 = arith.constant 45 : index
    %491 = memref.load %arg1[%c45] : memref<84xf32, #tpu.memory_space<smem>>
    %492 = vector.broadcast %491 : f32 to vector<16x128xf32>
    %493 = arith.mulf %492, %487 : vector<16x128xf32>
    %494 = arith.addf %490, %493 : vector<16x128xf32>
    %c68 = arith.constant 68 : index
    %495 = memref.load %arg1[%c68] : memref<84xf32, #tpu.memory_space<smem>>
    %496 = vector.broadcast %495 : f32 to vector<16x128xf32>
    %497 = arith.addf %494, %496 : vector<16x128xf32>
    %c54 = arith.constant 54 : index
    %498 = memref.load %arg1[%c54] : memref<84xf32, #tpu.memory_space<smem>>
    %499 = vector.broadcast %498 : f32 to vector<16x128xf32>
    %500 = arith.mulf %499, %473 : vector<16x128xf32>
    %c63 = arith.constant 63 : index
    %501 = memref.load %arg1[%c63] : memref<84xf32, #tpu.memory_space<smem>>
    %502 = vector.broadcast %501 : f32 to vector<16x128xf32>
    %503 = arith.mulf %502, %487 : vector<16x128xf32>
    %504 = arith.addf %500, %503 : vector<16x128xf32>
    %c69 = arith.constant 69 : index
    %505 = memref.load %arg1[%c69] : memref<84xf32, #tpu.memory_space<smem>>
    %506 = vector.broadcast %505 : f32 to vector<16x128xf32>
    %507 = arith.addf %504, %506 : vector<16x128xf32>
    %c0_251 = arith.constant 0 : index
    %c0_252 = arith.constant 0 : index
    %c0_253 = arith.constant 0 : index
    %508 = vector.load %arg2[%c0_251, %c0_252, %c0_253] : memref<8x16x128xf32, #tpu.memory_space<vmem>>, vector<1x16x128xf32>
    %509 = vector.shape_cast %508 : vector<1x16x128xf32> to vector<16x128xf32>
    %c15_i32_254 = arith.constant 15 : i32
    %510 = tpu.dynamic_rotate %473 by %c15_i32_254 dim 0 : vector<16x128xf32>, i32 -> vector<16x128xf32>
    %c127_i32_255 = arith.constant 127 : i32
    %511 = tpu.dynamic_rotate %510 by %c127_i32_255 dim 1 : vector<16x128xf32>, i32 -> vector<16x128xf32>
    %512 = arith.mulf %511, %509 : vector<16x128xf32>
    %c15_i32_256 = arith.constant 15 : i32
    %513 = tpu.dynamic_rotate %487 by %c15_i32_256 dim 0 : vector<16x128xf32>, i32 -> vector<16x128xf32>
    %c127_i32_257 = arith.constant 127 : i32
    %514 = tpu.dynamic_rotate %513 by %c127_i32_257 dim 1 : vector<16x128xf32>, i32 -> vector<16x128xf32>
    %515 = arith.mulf %514, %509 : vector<16x128xf32>
    %c40 = arith.constant 40 : index
    %516 = memref.load %arg1[%c40] : memref<84xf32, #tpu.memory_space<smem>>
    %517 = vector.broadcast %516 : f32 to vector<16x128xf32>
    %518 = arith.mulf %517, %512 : vector<16x128xf32>
    %519 = arith.addf %497, %518 : vector<16x128xf32>
    %c49 = arith.constant 49 : index
    %520 = memref.load %arg1[%c49] : memref<84xf32, #tpu.memory_space<smem>>
    %521 = vector.broadcast %520 : f32 to vector<16x128xf32>
    %522 = arith.mulf %521, %515 : vector<16x128xf32>
    %523 = arith.addf %519, %522 : vector<16x128xf32>
    %c58 = arith.constant 58 : index
    %524 = memref.load %arg1[%c58] : memref<84xf32, #tpu.memory_space<smem>>
    %525 = vector.broadcast %524 : f32 to vector<16x128xf32>
    %526 = arith.mulf %525, %512 : vector<16x128xf32>
    %527 = arith.addf %507, %526 : vector<16x128xf32>
    %c67 = arith.constant 67 : index
    %528 = memref.load %arg1[%c67] : memref<84xf32, #tpu.memory_space<smem>>
    %529 = vector.broadcast %528 : f32 to vector<16x128xf32>
    %530 = arith.mulf %529, %515 : vector<16x128xf32>
    %531 = arith.addf %527, %530 : vector<16x128xf32>
    %c1_258 = arith.constant 1 : index
    %c0_259 = arith.constant 0 : index
    %c0_260 = arith.constant 0 : index
    %532 = vector.load %arg2[%c1_258, %c0_259, %c0_260] : memref<8x16x128xf32, #tpu.memory_space<vmem>>, vector<1x16x128xf32>
    %533 = vector.shape_cast %532 : vector<1x16x128xf32> to vector<16x128xf32>
    %c15_i32_261 = arith.constant 15 : i32
    %534 = tpu.dynamic_rotate %473 by %c15_i32_261 dim 0 : vector<16x128xf32>, i32 -> vector<16x128xf32>
    %535 = arith.mulf %534, %533 : vector<16x128xf32>
    %c15_i32_262 = arith.constant 15 : i32
    %536 = tpu.dynamic_rotate %487 by %c15_i32_262 dim 0 : vector<16x128xf32>, i32 -> vector<16x128xf32>
    %537 = arith.mulf %536, %533 : vector<16x128xf32>
    %c39 = arith.constant 39 : index
    %538 = memref.load %arg1[%c39] : memref<84xf32, #tpu.memory_space<smem>>
    %539 = vector.broadcast %538 : f32 to vector<16x128xf32>
    %540 = arith.mulf %539, %535 : vector<16x128xf32>
    %541 = arith.addf %523, %540 : vector<16x128xf32>
    %c48 = arith.constant 48 : index
    %542 = memref.load %arg1[%c48] : memref<84xf32, #tpu.memory_space<smem>>
    %543 = vector.broadcast %542 : f32 to vector<16x128xf32>
    %544 = arith.mulf %543, %537 : vector<16x128xf32>
    %545 = arith.addf %541, %544 : vector<16x128xf32>
    %c57 = arith.constant 57 : index
    %546 = memref.load %arg1[%c57] : memref<84xf32, #tpu.memory_space<smem>>
    %547 = vector.broadcast %546 : f32 to vector<16x128xf32>
    %548 = arith.mulf %547, %535 : vector<16x128xf32>
    %549 = arith.addf %531, %548 : vector<16x128xf32>
    %c66 = arith.constant 66 : index
    %550 = memref.load %arg1[%c66] : memref<84xf32, #tpu.memory_space<smem>>
    %551 = vector.broadcast %550 : f32 to vector<16x128xf32>
    %552 = arith.mulf %551, %537 : vector<16x128xf32>
    %553 = arith.addf %549, %552 : vector<16x128xf32>
    %c2_263 = arith.constant 2 : index
    %c0_264 = arith.constant 0 : index
    %c0_265 = arith.constant 0 : index
    %554 = vector.load %arg2[%c2_263, %c0_264, %c0_265] : memref<8x16x128xf32, #tpu.memory_space<vmem>>, vector<1x16x128xf32>
    %555 = vector.shape_cast %554 : vector<1x16x128xf32> to vector<16x128xf32>
    %c15_i32_266 = arith.constant 15 : i32
    %556 = tpu.dynamic_rotate %473 by %c15_i32_266 dim 0 : vector<16x128xf32>, i32 -> vector<16x128xf32>
    %c1_i32_267 = arith.constant 1 : i32
    %557 = tpu.dynamic_rotate %556 by %c1_i32_267 dim 1 : vector<16x128xf32>, i32 -> vector<16x128xf32>
    %558 = arith.mulf %557, %555 : vector<16x128xf32>
    %c15_i32_268 = arith.constant 15 : i32
    %559 = tpu.dynamic_rotate %487 by %c15_i32_268 dim 0 : vector<16x128xf32>, i32 -> vector<16x128xf32>
    %c1_i32_269 = arith.constant 1 : i32
    %560 = tpu.dynamic_rotate %559 by %c1_i32_269 dim 1 : vector<16x128xf32>, i32 -> vector<16x128xf32>
    %561 = arith.mulf %560, %555 : vector<16x128xf32>
    %c38 = arith.constant 38 : index
    %562 = memref.load %arg1[%c38] : memref<84xf32, #tpu.memory_space<smem>>
    %563 = vector.broadcast %562 : f32 to vector<16x128xf32>
    %564 = arith.mulf %563, %558 : vector<16x128xf32>
    %565 = arith.addf %545, %564 : vector<16x128xf32>
    %c47 = arith.constant 47 : index
    %566 = memref.load %arg1[%c47] : memref<84xf32, #tpu.memory_space<smem>>
    %567 = vector.broadcast %566 : f32 to vector<16x128xf32>
    %568 = arith.mulf %567, %561 : vector<16x128xf32>
    %569 = arith.addf %565, %568 : vector<16x128xf32>
    %c56 = arith.constant 56 : index
    %570 = memref.load %arg1[%c56] : memref<84xf32, #tpu.memory_space<smem>>
    %571 = vector.broadcast %570 : f32 to vector<16x128xf32>
    %572 = arith.mulf %571, %558 : vector<16x128xf32>
    %573 = arith.addf %553, %572 : vector<16x128xf32>
    %c65 = arith.constant 65 : index
    %574 = memref.load %arg1[%c65] : memref<84xf32, #tpu.memory_space<smem>>
    %575 = vector.broadcast %574 : f32 to vector<16x128xf32>
    %576 = arith.mulf %575, %561 : vector<16x128xf32>
    %577 = arith.addf %573, %576 : vector<16x128xf32>
    %c3_270 = arith.constant 3 : index
    %c0_271 = arith.constant 0 : index
    %c0_272 = arith.constant 0 : index
    %578 = vector.load %arg2[%c3_270, %c0_271, %c0_272] : memref<8x16x128xf32, #tpu.memory_space<vmem>>, vector<1x16x128xf32>
    %579 = vector.shape_cast %578 : vector<1x16x128xf32> to vector<16x128xf32>
    %c127_i32_273 = arith.constant 127 : i32
    %580 = tpu.dynamic_rotate %473 by %c127_i32_273 dim 1 : vector<16x128xf32>, i32 -> vector<16x128xf32>
    %581 = arith.mulf %580, %579 : vector<16x128xf32>
    %c127_i32_274 = arith.constant 127 : i32
    %582 = tpu.dynamic_rotate %487 by %c127_i32_274 dim 1 : vector<16x128xf32>, i32 -> vector<16x128xf32>
    %583 = arith.mulf %582, %579 : vector<16x128xf32>
    %c37 = arith.constant 37 : index
    %584 = memref.load %arg1[%c37] : memref<84xf32, #tpu.memory_space<smem>>
    %585 = vector.broadcast %584 : f32 to vector<16x128xf32>
    %586 = arith.mulf %585, %581 : vector<16x128xf32>
    %587 = arith.addf %569, %586 : vector<16x128xf32>
    %c46 = arith.constant 46 : index
    %588 = memref.load %arg1[%c46] : memref<84xf32, #tpu.memory_space<smem>>
    %589 = vector.broadcast %588 : f32 to vector<16x128xf32>
    %590 = arith.mulf %589, %583 : vector<16x128xf32>
    %591 = arith.addf %587, %590 : vector<16x128xf32>
    %c55 = arith.constant 55 : index
    %592 = memref.load %arg1[%c55] : memref<84xf32, #tpu.memory_space<smem>>
    %593 = vector.broadcast %592 : f32 to vector<16x128xf32>
    %594 = arith.mulf %593, %581 : vector<16x128xf32>
    %595 = arith.addf %577, %594 : vector<16x128xf32>
    %c64 = arith.constant 64 : index
    %596 = memref.load %arg1[%c64] : memref<84xf32, #tpu.memory_space<smem>>
    %597 = vector.broadcast %596 : f32 to vector<16x128xf32>
    %598 = arith.mulf %597, %583 : vector<16x128xf32>
    %599 = arith.addf %595, %598 : vector<16x128xf32>
    %c4_275 = arith.constant 4 : index
    %c0_276 = arith.constant 0 : index
    %c0_277 = arith.constant 0 : index
    %600 = vector.load %arg2[%c4_275, %c0_276, %c0_277] : memref<8x16x128xf32, #tpu.memory_space<vmem>>, vector<1x16x128xf32>
    %601 = vector.shape_cast %600 : vector<1x16x128xf32> to vector<16x128xf32>
    %c1_i32_278 = arith.constant 1 : i32
    %602 = tpu.dynamic_rotate %473 by %c1_i32_278 dim 1 : vector<16x128xf32>, i32 -> vector<16x128xf32>
    %603 = arith.mulf %602, %601 : vector<16x128xf32>
    %c1_i32_279 = arith.constant 1 : i32
    %604 = tpu.dynamic_rotate %487 by %c1_i32_279 dim 1 : vector<16x128xf32>, i32 -> vector<16x128xf32>
    %605 = arith.mulf %604, %601 : vector<16x128xf32>
    %c35 = arith.constant 35 : index
    %606 = memref.load %arg1[%c35] : memref<84xf32, #tpu.memory_space<smem>>
    %607 = vector.broadcast %606 : f32 to vector<16x128xf32>
    %608 = arith.mulf %607, %603 : vector<16x128xf32>
    %609 = arith.addf %591, %608 : vector<16x128xf32>
    %c44 = arith.constant 44 : index
    %610 = memref.load %arg1[%c44] : memref<84xf32, #tpu.memory_space<smem>>
    %611 = vector.broadcast %610 : f32 to vector<16x128xf32>
    %612 = arith.mulf %611, %605 : vector<16x128xf32>
    %613 = arith.addf %609, %612 : vector<16x128xf32>
    %c53 = arith.constant 53 : index
    %614 = memref.load %arg1[%c53] : memref<84xf32, #tpu.memory_space<smem>>
    %615 = vector.broadcast %614 : f32 to vector<16x128xf32>
    %616 = arith.mulf %615, %603 : vector<16x128xf32>
    %617 = arith.addf %599, %616 : vector<16x128xf32>
    %c62 = arith.constant 62 : index
    %618 = memref.load %arg1[%c62] : memref<84xf32, #tpu.memory_space<smem>>
    %619 = vector.broadcast %618 : f32 to vector<16x128xf32>
    %620 = arith.mulf %619, %605 : vector<16x128xf32>
    %621 = arith.addf %617, %620 : vector<16x128xf32>
    %c5_280 = arith.constant 5 : index
    %c0_281 = arith.constant 0 : index
    %c0_282 = arith.constant 0 : index
    %622 = vector.load %arg2[%c5_280, %c0_281, %c0_282] : memref<8x16x128xf32, #tpu.memory_space<vmem>>, vector<1x16x128xf32>
    %623 = vector.shape_cast %622 : vector<1x16x128xf32> to vector<16x128xf32>
    %c1_i32_283 = arith.constant 1 : i32
    %624 = tpu.dynamic_rotate %473 by %c1_i32_283 dim 0 : vector<16x128xf32>, i32 -> vector<16x128xf32>
    %c127_i32_284 = arith.constant 127 : i32
    %625 = tpu.dynamic_rotate %624 by %c127_i32_284 dim 1 : vector<16x128xf32>, i32 -> vector<16x128xf32>
    %626 = arith.mulf %625, %623 : vector<16x128xf32>
    %c1_i32_285 = arith.constant 1 : i32
    %627 = tpu.dynamic_rotate %487 by %c1_i32_285 dim 0 : vector<16x128xf32>, i32 -> vector<16x128xf32>
    %c127_i32_286 = arith.constant 127 : i32
    %628 = tpu.dynamic_rotate %627 by %c127_i32_286 dim 1 : vector<16x128xf32>, i32 -> vector<16x128xf32>
    %629 = arith.mulf %628, %623 : vector<16x128xf32>
    %c34 = arith.constant 34 : index
    %630 = memref.load %arg1[%c34] : memref<84xf32, #tpu.memory_space<smem>>
    %631 = vector.broadcast %630 : f32 to vector<16x128xf32>
    %632 = arith.mulf %631, %626 : vector<16x128xf32>
    %633 = arith.addf %613, %632 : vector<16x128xf32>
    %c43 = arith.constant 43 : index
    %634 = memref.load %arg1[%c43] : memref<84xf32, #tpu.memory_space<smem>>
    %635 = vector.broadcast %634 : f32 to vector<16x128xf32>
    %636 = arith.mulf %635, %629 : vector<16x128xf32>
    %637 = arith.addf %633, %636 : vector<16x128xf32>
    %c52 = arith.constant 52 : index
    %638 = memref.load %arg1[%c52] : memref<84xf32, #tpu.memory_space<smem>>
    %639 = vector.broadcast %638 : f32 to vector<16x128xf32>
    %640 = arith.mulf %639, %626 : vector<16x128xf32>
    %641 = arith.addf %621, %640 : vector<16x128xf32>
    %c61 = arith.constant 61 : index
    %642 = memref.load %arg1[%c61] : memref<84xf32, #tpu.memory_space<smem>>
    %643 = vector.broadcast %642 : f32 to vector<16x128xf32>
    %644 = arith.mulf %643, %629 : vector<16x128xf32>
    %645 = arith.addf %641, %644 : vector<16x128xf32>
    %c6_287 = arith.constant 6 : index
    %c0_288 = arith.constant 0 : index
    %c0_289 = arith.constant 0 : index
    %646 = vector.load %arg2[%c6_287, %c0_288, %c0_289] : memref<8x16x128xf32, #tpu.memory_space<vmem>>, vector<1x16x128xf32>
    %647 = vector.shape_cast %646 : vector<1x16x128xf32> to vector<16x128xf32>
    %c1_i32_290 = arith.constant 1 : i32
    %648 = tpu.dynamic_rotate %473 by %c1_i32_290 dim 0 : vector<16x128xf32>, i32 -> vector<16x128xf32>
    %649 = arith.mulf %648, %647 : vector<16x128xf32>
    %c1_i32_291 = arith.constant 1 : i32
    %650 = tpu.dynamic_rotate %487 by %c1_i32_291 dim 0 : vector<16x128xf32>, i32 -> vector<16x128xf32>
    %651 = arith.mulf %650, %647 : vector<16x128xf32>
    %c33 = arith.constant 33 : index
    %652 = memref.load %arg1[%c33] : memref<84xf32, #tpu.memory_space<smem>>
    %653 = vector.broadcast %652 : f32 to vector<16x128xf32>
    %654 = arith.mulf %653, %649 : vector<16x128xf32>
    %655 = arith.addf %637, %654 : vector<16x128xf32>
    %c42 = arith.constant 42 : index
    %656 = memref.load %arg1[%c42] : memref<84xf32, #tpu.memory_space<smem>>
    %657 = vector.broadcast %656 : f32 to vector<16x128xf32>
    %658 = arith.mulf %657, %651 : vector<16x128xf32>
    %659 = arith.addf %655, %658 : vector<16x128xf32>
    %c51 = arith.constant 51 : index
    %660 = memref.load %arg1[%c51] : memref<84xf32, #tpu.memory_space<smem>>
    %661 = vector.broadcast %660 : f32 to vector<16x128xf32>
    %662 = arith.mulf %661, %649 : vector<16x128xf32>
    %663 = arith.addf %645, %662 : vector<16x128xf32>
    %c60 = arith.constant 60 : index
    %664 = memref.load %arg1[%c60] : memref<84xf32, #tpu.memory_space<smem>>
    %665 = vector.broadcast %664 : f32 to vector<16x128xf32>
    %666 = arith.mulf %665, %651 : vector<16x128xf32>
    %667 = arith.addf %663, %666 : vector<16x128xf32>
    %c7_292 = arith.constant 7 : index
    %c0_293 = arith.constant 0 : index
    %c0_294 = arith.constant 0 : index
    %668 = vector.load %arg2[%c7_292, %c0_293, %c0_294] : memref<8x16x128xf32, #tpu.memory_space<vmem>>, vector<1x16x128xf32>
    %669 = vector.shape_cast %668 : vector<1x16x128xf32> to vector<16x128xf32>
    %c1_i32_295 = arith.constant 1 : i32
    %670 = tpu.dynamic_rotate %473 by %c1_i32_295 dim 0 : vector<16x128xf32>, i32 -> vector<16x128xf32>
    %c1_i32_296 = arith.constant 1 : i32
    %671 = tpu.dynamic_rotate %670 by %c1_i32_296 dim 1 : vector<16x128xf32>, i32 -> vector<16x128xf32>
    %672 = arith.mulf %671, %669 : vector<16x128xf32>
    %c1_i32_297 = arith.constant 1 : i32
    %673 = tpu.dynamic_rotate %487 by %c1_i32_297 dim 0 : vector<16x128xf32>, i32 -> vector<16x128xf32>
    %c1_i32_298 = arith.constant 1 : i32
    %674 = tpu.dynamic_rotate %673 by %c1_i32_298 dim 1 : vector<16x128xf32>, i32 -> vector<16x128xf32>
    %675 = arith.mulf %674, %669 : vector<16x128xf32>
    %c32 = arith.constant 32 : index
    %676 = memref.load %arg1[%c32] : memref<84xf32, #tpu.memory_space<smem>>
    %677 = vector.broadcast %676 : f32 to vector<16x128xf32>
    %678 = arith.mulf %677, %672 : vector<16x128xf32>
    %679 = arith.addf %659, %678 : vector<16x128xf32>
    %c41 = arith.constant 41 : index
    %680 = memref.load %arg1[%c41] : memref<84xf32, #tpu.memory_space<smem>>
    %681 = vector.broadcast %680 : f32 to vector<16x128xf32>
    %682 = arith.mulf %681, %675 : vector<16x128xf32>
    %683 = arith.addf %679, %682 : vector<16x128xf32>
    %c50 = arith.constant 50 : index
    %684 = memref.load %arg1[%c50] : memref<84xf32, #tpu.memory_space<smem>>
    %685 = vector.broadcast %684 : f32 to vector<16x128xf32>
    %686 = arith.mulf %685, %672 : vector<16x128xf32>
    %687 = arith.addf %667, %686 : vector<16x128xf32>
    %c59 = arith.constant 59 : index
    %688 = memref.load %arg1[%c59] : memref<84xf32, #tpu.memory_space<smem>>
    %689 = vector.broadcast %688 : f32 to vector<16x128xf32>
    %690 = arith.mulf %689, %675 : vector<16x128xf32>
    %691 = arith.addf %687, %690 : vector<16x128xf32>
    %cst_299 = arith.constant dense<0.000000e+00> : vector<128xf32>
    %692 = vector.multi_reduction <add>, %459, %cst_299 [0] : vector<16x128xf32> to vector<128xf32>
    %693 = vector.shape_cast %692 : vector<128xf32> to vector<1x128xf32>
    %cst_300 = arith.constant dense<0.000000e+00> : vector<128xf32>
    %694 = vector.multi_reduction <add>, %683, %cst_300 [0] : vector<16x128xf32> to vector<128xf32>
    %695 = vector.shape_cast %694 : vector<128xf32> to vector<1x128xf32>
    %cst_301 = arith.constant dense<0.000000e+00> : vector<128xf32>
    %696 = vector.multi_reduction <add>, %691, %cst_301 [0] : vector<16x128xf32> to vector<128xf32>
    %697 = vector.shape_cast %696 : vector<128xf32> to vector<1x128xf32>
    %698 = tpu.concatenate %693, %695, %697 in 0 : vector<1x128xf32>, vector<1x128xf32>, vector<1x128xf32> -> vector<3x128xf32>
    %c0_302 = arith.constant 0 : index
    %c0_303 = arith.constant 0 : index
    %699 = vector.load %arg3[%c0_302, %c0_303] : memref<128x128xf32, #tpu.memory_space<vmem>>, vector<128x128xf32>
    %cst_304 = arith.constant dense<0.000000e+00> : vector<3x128xf32>
    %700 = tpu.matmul %698, %699, %cst_304 {dimension_numbers = #tpu.dot_dimension_numbers<[1], [0], [0], [1], [0, 0, 1, 1], [], []>} : vector<3x128xf32>, vector<128x128xf32>, vector<3x128xf32> -> vector<3x128xf32>
    %c70 = arith.constant 70 : index
    %701 = memref.load %arg1[%c70] : memref<84xf32, #tpu.memory_space<smem>>
    %702 = vector.extract_strided_slice %700 {offsets = [0, 0], sizes = [1, 128], strides = [1, 1]} : vector<3x128xf32> to vector<1x128xf32>
    %703 = vector.broadcast %701 : f32 to vector<1x128xf32>
    %704 = arith.mulf %703, %702 : vector<1x128xf32>
    %c71 = arith.constant 71 : index
    %705 = memref.load %arg1[%c71] : memref<84xf32, #tpu.memory_space<smem>>
    %706 = vector.extract_strided_slice %700 {offsets = [1, 0], sizes = [1, 128], strides = [1, 1]} : vector<3x128xf32> to vector<1x128xf32>
    %707 = vector.broadcast %705 : f32 to vector<1x128xf32>
    %708 = arith.mulf %707, %706 : vector<1x128xf32>
    %709 = arith.addf %704, %708 : vector<1x128xf32>
    %c72 = arith.constant 72 : index
    %710 = memref.load %arg1[%c72] : memref<84xf32, #tpu.memory_space<smem>>
    %711 = vector.extract_strided_slice %700 {offsets = [2, 0], sizes = [1, 128], strides = [1, 1]} : vector<3x128xf32> to vector<1x128xf32>
    %712 = vector.broadcast %710 : f32 to vector<1x128xf32>
    %713 = arith.mulf %712, %711 : vector<1x128xf32>
    %714 = arith.addf %709, %713 : vector<1x128xf32>
    %c73 = arith.constant 73 : index
    %715 = memref.load %arg1[%c73] : memref<84xf32, #tpu.memory_space<smem>>
    %716 = vector.broadcast %715 : f32 to vector<1x128xf32>
    %717 = arith.addf %714, %716 : vector<1x128xf32>
    %cst_305 = arith.constant 0.000000e+00 : f32
    %718 = vector.broadcast %cst_305 : f32 to vector<1x128xf32>
    %719 = arith.maximumf %717, %718 : vector<1x128xf32>
    %c74 = arith.constant 74 : index
    %720 = memref.load %arg1[%c74] : memref<84xf32, #tpu.memory_space<smem>>
    %721 = vector.broadcast %720 : f32 to vector<1x128xf32>
    %722 = arith.mulf %721, %719 : vector<1x128xf32>
    %c77 = arith.constant 77 : index
    %723 = memref.load %arg1[%c77] : memref<84xf32, #tpu.memory_space<smem>>
    %724 = vector.broadcast %723 : f32 to vector<1x128xf32>
    %725 = arith.addf %722, %724 : vector<1x128xf32>
    %cst_306 = arith.constant 0.000000e+00 : f32
    %726 = vector.broadcast %cst_306 : f32 to vector<1x128xf32>
    %727 = arith.subf %726, %725 : vector<1x128xf32>
    %728 = math.exp %727 : vector<1x128xf32>
    %cst_307 = arith.constant 1.000000e+00 : f32
    %729 = vector.broadcast %cst_307 : f32 to vector<1x128xf32>
    %730 = arith.addf %729, %728 : vector<1x128xf32>
    %cst_308 = arith.constant 1.000000e+00 : f32
    %731 = vector.broadcast %cst_308 : f32 to vector<1x128xf32>
    %732 = arith.divf %731, %730 : vector<1x128xf32>
    %c75 = arith.constant 75 : index
    %733 = memref.load %arg1[%c75] : memref<84xf32, #tpu.memory_space<smem>>
    %734 = vector.broadcast %733 : f32 to vector<1x128xf32>
    %735 = arith.mulf %734, %719 : vector<1x128xf32>
    %c78 = arith.constant 78 : index
    %736 = memref.load %arg1[%c78] : memref<84xf32, #tpu.memory_space<smem>>
    %737 = vector.broadcast %736 : f32 to vector<1x128xf32>
    %738 = arith.addf %735, %737 : vector<1x128xf32>
    %cst_309 = arith.constant 0.000000e+00 : f32
    %739 = vector.broadcast %cst_309 : f32 to vector<1x128xf32>
    %740 = arith.subf %739, %738 : vector<1x128xf32>
    %741 = math.exp %740 : vector<1x128xf32>
    %cst_310 = arith.constant 1.000000e+00 : f32
    %742 = vector.broadcast %cst_310 : f32 to vector<1x128xf32>
    %743 = arith.addf %742, %741 : vector<1x128xf32>
    %cst_311 = arith.constant 1.000000e+00 : f32
    %744 = vector.broadcast %cst_311 : f32 to vector<1x128xf32>
    %745 = arith.divf %744, %743 : vector<1x128xf32>
    %c76 = arith.constant 76 : index
    %746 = memref.load %arg1[%c76] : memref<84xf32, #tpu.memory_space<smem>>
    %747 = vector.broadcast %746 : f32 to vector<1x128xf32>
    %748 = arith.mulf %747, %719 : vector<1x128xf32>
    %c79 = arith.constant 79 : index
    %749 = memref.load %arg1[%c79] : memref<84xf32, #tpu.memory_space<smem>>
    %750 = vector.broadcast %749 : f32 to vector<1x128xf32>
    %751 = arith.addf %748, %750 : vector<1x128xf32>
    %cst_312 = arith.constant 0.000000e+00 : f32
    %752 = vector.broadcast %cst_312 : f32 to vector<1x128xf32>
    %753 = arith.subf %752, %751 : vector<1x128xf32>
    %754 = math.exp %753 : vector<1x128xf32>
    %cst_313 = arith.constant 1.000000e+00 : f32
    %755 = vector.broadcast %cst_313 : f32 to vector<1x128xf32>
    %756 = arith.addf %755, %754 : vector<1x128xf32>
    %cst_314 = arith.constant 1.000000e+00 : f32
    %757 = vector.broadcast %cst_314 : f32 to vector<1x128xf32>
    %758 = arith.divf %757, %756 : vector<1x128xf32>
    %759 = tpu.concatenate %732, %745, %758 in 0 : vector<1x128xf32>, vector<1x128xf32>, vector<1x128xf32> -> vector<3x128xf32>
    %c0_315 = arith.constant 0 : index
    %c0_316 = arith.constant 0 : index
    %760 = vector.load %arg4[%c0_315, %c0_316] : memref<128x128xf32, #tpu.memory_space<vmem>>, vector<128x128xf32>
    %cst_317 = arith.constant dense<0.000000e+00> : vector<3x128xf32>
    %761 = tpu.matmul %759, %760, %cst_317 {dimension_numbers = #tpu.dot_dimension_numbers<[1], [0], [0], [1], [0, 0, 1, 1], [], []>} : vector<3x128xf32>, vector<128x128xf32>, vector<3x128xf32> -> vector<3x128xf32>
    %762 = vector.extract_strided_slice %761 {offsets = [0, 0], sizes = [1, 128], strides = [1, 1]} : vector<3x128xf32> to vector<1x128xf32>
    %763 = vector.broadcast %762 : vector<1x128xf32> to vector<16x128xf32>
    %764 = arith.mulf %763, %459 : vector<16x128xf32>
    %765 = vector.broadcast %2 : f32 to vector<16x128xf32>
    %766 = arith.mulf %765, %764 : vector<16x128xf32>
    %767 = arith.addf %99, %766 : vector<16x128xf32>
    %c0_318 = arith.constant 0 : index
    %c0_319 = arith.constant 0 : index
    %c0_320 = arith.constant 0 : index
    %c0_321 = arith.constant 0 : index
    %768 = vector.load %arg6[%c0_318, %c0_319, %c0_320, %c0_321] : memref<1x3x16x128xf32, #tpu.memory_space<vmem>>, vector<1x1x16x128xf32>
    %769 = vector.shape_cast %768 : vector<1x1x16x128xf32> to vector<16x128xf32>
    %770 = vector.shape_cast %767 : vector<16x128xf32> to vector<1x1x16x128xf32>
    tpu.vector_store %arg6[%c0_318, %c0_319, %c0_320, %c0_321], %770 {strides = array<i32>} : memref<1x3x16x128xf32, #tpu.memory_space<vmem>>, vector<1x1x16x128xf32>,
    %771 = vector.extract_strided_slice %761 {offsets = [1, 0], sizes = [1, 128], strides = [1, 1]} : vector<3x128xf32> to vector<1x128xf32>
    %772 = vector.broadcast %771 : vector<1x128xf32> to vector<16x128xf32>
    %773 = arith.mulf %772, %683 : vector<16x128xf32>
    %774 = vector.broadcast %2 : f32 to vector<16x128xf32>
    %775 = arith.mulf %774, %773 : vector<16x128xf32>
    %776 = arith.addf %195, %775 : vector<16x128xf32>
    %c0_322 = arith.constant 0 : index
    %c1_323 = arith.constant 1 : index
    %c0_324 = arith.constant 0 : index
    %c0_325 = arith.constant 0 : index
    %777 = vector.load %arg6[%c0_322, %c1_323, %c0_324, %c0_325] : memref<1x3x16x128xf32, #tpu.memory_space<vmem>>, vector<1x1x16x128xf32>
    %778 = vector.shape_cast %777 : vector<1x1x16x128xf32> to vector<16x128xf32>
    %779 = vector.shape_cast %776 : vector<16x128xf32> to vector<1x1x16x128xf32>
    tpu.vector_store %arg6[%c0_322, %c1_323, %c0_324, %c0_325], %779 {strides = array<i32>} : memref<1x3x16x128xf32, #tpu.memory_space<vmem>>, vector<1x1x16x128xf32>,
    %780 = vector.extract_strided_slice %761 {offsets = [2, 0], sizes = [1, 128], strides = [1, 1]} : vector<3x128xf32> to vector<1x128xf32>
    %781 = vector.broadcast %780 : vector<1x128xf32> to vector<16x128xf32>
    %782 = arith.mulf %781, %691 : vector<16x128xf32>
    %783 = vector.broadcast %2 : f32 to vector<16x128xf32>
    %784 = arith.mulf %783, %782 : vector<16x128xf32>
    %785 = arith.addf %291, %784 : vector<16x128xf32>
    %c0_326 = arith.constant 0 : index
    %c2_327 = arith.constant 2 : index
    %c0_328 = arith.constant 0 : index
    %c0_329 = arith.constant 0 : index
    %786 = vector.load %arg6[%c0_326, %c2_327, %c0_328, %c0_329] : memref<1x3x16x128xf32, #tpu.memory_space<vmem>>, vector<1x1x16x128xf32>
    %787 = vector.shape_cast %786 : vector<1x1x16x128xf32> to vector<16x128xf32>
    %788 = vector.shape_cast %785 : vector<16x128xf32> to vector<1x1x16x128xf32>
    tpu.vector_store %arg6[%c0_326, %c2_327, %c0_328, %c0_329], %788 {strides = array<i32>} : memref<1x3x16x128xf32, #tpu.memory_space<vmem>>, vector<1x1x16x128xf32>,
    return
  }
  func.func @transform_0(%arg0: i32) -> i32 {
    %c0_i32 = arith.constant 0 : i32
    %c0_i32_0 = arith.constant 0 : i32
    return %c0_i32 : i32
  }
  func.func @transform_1(%arg0: i32) -> (i32, i32, i32) {
    %c0_i32 = arith.constant 0 : i32
    %c0_i32_0 = arith.constant 0 : i32
    %c0_i32_1 = arith.constant 0 : i32
    %c0_i32_2 = arith.constant 0 : i32
    return %c0_i32, %c0_i32_0, %c0_i32_1 : i32, i32, i32
  }
  func.func @transform_2(%arg0: i32) -> (i32, i32) {
    %c0_i32 = arith.constant 0 : i32
    %c0_i32_0 = arith.constant 0 : i32
    %c0_i32_1 = arith.constant 0 : i32
    return %c0_i32, %c0_i32_0 : i32, i32
  }
  func.func @transform_3(%arg0: i32) -> (i32, i32) {
    %c0_i32 = arith.constant 0 : i32
    %c0_i32_0 = arith.constant 0 : i32
    %c0_i32_1 = arith.constant 0 : i32
    return %c0_i32, %c0_i32_0 : i32, i32
  }
  func.func @transform_4(%arg0: i32) -> (i32, i32, i32, i32) {
    %c0_i32 = arith.constant 0 : i32
    %c0_i32_0 = arith.constant 0 : i32
    %c0_i32_1 = arith.constant 0 : i32
    %c0_i32_2 = arith.constant 0 : i32
    return %arg0, %c0_i32, %c0_i32_0, %c0_i32_1 : i32, i32, i32, i32
  }
  func.func @transform_5(%arg0: i32) -> (i32, i32, i32, i32) {
    %c0_i32 = arith.constant 0 : i32
    %c0_i32_0 = arith.constant 0 : i32
    %c0_i32_1 = arith.constant 0 : i32
    %c0_i32_2 = arith.constant 0 : i32
    return %arg0, %c0_i32, %c0_i32_0, %c0_i32_1 : i32, i32, i32, i32
  }
}

</mosaic_0001>

<bundles_post_ra>
// kernel: tpu_custom_call.1
= control target key start
LH: loop header
LB: loop body
LE: loop exit
PB: predicated region body
PF: predicated region fallthrough
CT: control target
= control target key end

     0   :  { %10 = vsyncpa [#allocation5], 0  ;;  %s3718_s0 = inlined_call_operand.hbm [shape: f32[84], index: 0, kind: input, shape index: {}]   ;;  %s3719_s1 = inlined_call_operand.hbm [shape: f32[8,16,128], index: 1, kind: input, shape index: {}]   ;;  %s3720_s2 = inlined_call_operand.hbm [shape: f32[128,128], index: 2, kind: input, shape index: {}]   ;;  %s3721_s3 = inlined_call_operand.hbm [shape: f32[128,128], index: 3, kind: input, shape index: {}]   ;;  %s3722_s4 = inlined_call_operand.hbm [shape: f32[2,3,16,128], index: 4, kind: input, shape index: {}]   ;;  %s3723_s5 = inlined_call_operand.hbm [shape: f32[2,3,16,128], index: 5, kind: output, shape index: {}]  }
   0x1   :  { %11 = vsyncpa [#allocation3], 0 }
   0x2   :  { %12 = vsyncpa [#allocation8], 0 }
   0x3   :  { %13 = vsyncpa [#allocation11], 0 }
   0x4   :  { %15 = vsyncpa [#allocation11 + $0x1], 0 }
   0x5   :  { %16 = vsyncpa [#allocation4], 0 }
   0x6   :  { %18 = vsyncpa [#allocation4 + $0x1], 0  ;;  %s2341_s18 = smov 0   ;;  %s2343_s19 = smov 0  }
   0x7   :  { %s2345_s20 = smov 0   ;;  %s2347_s21 = smov 0  }
   0x8 LB: > { %s2362_s22 = sadd.s32 4294967295, %s2294_s21   ;;  %s1696_s23 = sadd.s32 4294967294, %s2294_s21   ;;  %s2294_s21 = sphi %s2347_s21, %s3777_s21   ;;  %s2290_s20 = sphi %s2345_s20, %s3776_s20   ;;  %s2286_s19 = sphi %s2343_s19, %s3775_s19   ;;  %s2282_s18 = sphi %s2341_s18, %s3774_s18  }
   0x9   : > { %p128_p0 = scmp.ne.s32.totalorder %s2286_s19, %s2282_s18  ;;  %p3724_p1 = scmp.eq.s32.totalorder %s2362_s22, 0 }
   0xa   : > { %p158_p3 = scmp.eq.s32.totalorder %s1696_s23, 1  ;;  %p1697_p5 = scmp.ge.s32.totalorder %s2294_s21, 1 }
   0xb   : > { %p2371_p4 = por %p3724_p1, %p128_p0  ;;  %p165_p7 = scmp.lt.s32.totalorder %s2294_s21, 3 }
   0xc   : > { %p2376_p6 = por %p158_p3, %p128_p0  ;;  %s2296_s27 = smov [#allocation7]  }
   0xd   : > { %s3737_s24 = scalar_select %p2371_p4, 1, 0 }
   0xe   : > { %s3738_s25 = scalar_select %p2376_p6, 1, 0 }
   0xf   : > { %p2381_p8 = pnand %p1697_p5, %p165_p7  ;;  %s199_s28 = sshll.u32 %s2296_s27, 4  ;;  %s200_s28 = int_to_ptr.vmem [resolvable:$true] %s199_s28 }
  0x10   : > { %s2297_s30 = smov [#allocation6]   ;;  %s2089_s9 = scalar_lea.hbm %s3720_s2, 2048 }
  0x11   : > { %s3739_s26 = scalar_select %p2381_p8, 1, 0 }
  0x12   : > { %p1979_p10 = pneg %p2381_p8  ;;  %s186_s6 = sshll.u32 %s2297_s30, 4  ;;  %s2394_s6 = int_to_ptr.vmem [resolvable:$true] %s186_s6 }
  0x13   : > { %p2090_p12 = scmp.ne.s32.totalorder %s3720_s2, %s2089_s9  ;;  %p2096_p5 = scmp.lt.u32.totalorder %s2089_s9, %s3720_s2 }
  0x14   : > { %p2390_p11 = pnand %p1979_p10, %p3724_p1 }
  0x16   : > { %p2404_p13 = pneg %p2390_p11 }
  0x18   : > { %p2092_p0 = pnand %p2404_p13, %p2090_p12 }
  0x1a   : > { %p2093_p3 = pneg %p2092_p0 }
  0x1c   : > { %p2098_p7 = pnand %p2096_p5, %p2093_p3 }
  0x1e   : > { %2101 = shalt.err (!%p2098_p7)
}
  0x1f   : > { %s2102_s15 = scalar_lea.vmem %s200_s28, 2048  ;;  %p2110_p2 = scmp.lt.s32.totalorder %s200_s28, %s200_s28 }
  0x20   : > { %p2103_p10 = scmp.ne.s32.totalorder %s200_s28, %s2102_s15  ;;  %p2111_p6 = scmp.lt.s32.totalorder %s2102_s15, %s2102_s15 }
  0x22   : > { %p2105_p9 = pnand %p2103_p10, %p2404_p13  ;;  %p2112_p4 = por %p2111_p6, %p2110_p2 }
  0x24   : > { %p2106_p1 = pneg %p2105_p9 }
  0x26   : > { %p2113_p8 = pnand %p2112_p4, %p2106_p1 }
  0x28   : > { %2116 = shalt.err (!%p2113_p8)
}
  0x29   : > { %s3727_s16 = smov 128   ;;  %s2299_s17 = smov 8  }
  0x2a   : > { %1988 = dma.hbm_to_vmem [thread:$0]  (!%p2390_p11), %s3720_s2, 2048, %s200_s28, [#allocation8], %s3727_s16, %s3727_s16, %s2299_s17  }
  0x2b   : > { %s2117_s8 = scalar_lea.hbm %s3718_s0, 16 }
  0x2c   : > { %p2118_p1 = scmp.ne.s32.totalorder %s3718_s0, %s2117_s8  ;;  %p2124_p6 = scmp.lt.u32.totalorder %s2117_s8, %s3718_s0 }
  0x2e   : > { %p2120_p2 = pnand %p2118_p1, %p2404_p13 }
  0x30   : > { %p2121_p4 = pneg %p2120_p2 }
  0x32   : > { %p2126_p8 = pnand %p2124_p6, %p2121_p4 }
  0x34   : > { %2129 = shalt.err (!%p2126_p8)
}
  0x35   : > { %s2300_s14 = smov [#allocation2]   ;;  %s2130_s30 = scalar_lea.hbm %s3719_s1, 2048 }
  0x36   : > { %1982 = dma.hbm_to_smem (!%p2390_p11), %s3718_s0, 16, %s2300_s14, [#allocation5]  }
  0x37   : > { %p2131_p9 = scmp.ne.s32.totalorder %s3719_s1, %s2130_s30  ;;  %p2137_p3 = scmp.lt.u32.totalorder %s2130_s30, %s3719_s1 }
  0x39   : > { %p2133_p12 = pnand %p2131_p9, %p2404_p13 }
  0x3b   : > { %p2134_p0 = pneg %p2133_p12 }
  0x3d   : > { %p2139_p5 = pnand %p2137_p3, %p2134_p0 }
  0x3f   : > { %2142 = shalt.err (!%p2139_p5)
}
  0x40   : > { %s2143_s11 = scalar_lea.vmem %s2394_s6, 2048  ;;  %p2151_p2 = scmp.lt.s32.totalorder %s2394_s6, %s2394_s6 }
  0x41   : > { %p2144_p7 = scmp.ne.s32.totalorder %s2394_s6, %s2143_s11  ;;  %p2152_p4 = scmp.lt.s32.totalorder %s2143_s11, %s2143_s11 }
  0x43   : > { %p2146_p10 = pnand %p2144_p7, %p2404_p13  ;;  %p2153_p6 = por %p2152_p4, %p2151_p2 }
  0x45   : > { %p2147_p1 = pneg %p2146_p10 }
  0x47   : > { %p2154_p8 = pnand %p2153_p6, %p2147_p1 }
  0x49   : > { %2157 = shalt.err (!%p2154_p8)
}
  0x4a   : > { %1985 = dma.hbm_to_vmem [thread:$0]  (!%p2390_p11), %s3719_s1, 2048, %s2394_s6, [#allocation3], %s3727_s16, %s3727_s16, %s2299_s17  }
  0x4b   : > { %s2301_s28 = smov [#allocation9]   ;;  %s2158_s30 = scalar_lea.hbm %s3721_s3, 2048 }
  0x4c   : > { %s212_s15 = sshll.u32 %s2301_s28, 4  ;;  %p2159_p9 = scmp.ne.s32.totalorder %s3721_s3, %s2158_s30  ;;  %s213_s15 = int_to_ptr.vmem [resolvable:$true] %s212_s15 }
  0x4d   : > { %p2165_p3 = scmp.lt.u32.totalorder %s2158_s30, %s3721_s3 }
  0x4e   : > { %p2161_p12 = pnand %p2159_p9, %p2404_p13 }
  0x50   : > { %p2162_p0 = pneg %p2161_p12 }
  0x52   : > { %p2167_p5 = pnand %p2165_p3, %p2162_p0 }
  0x54   : > { %2170 = shalt.err (!%p2167_p5)
}
  0x55   : > { %s2171_s6 = scalar_lea.vmem %s213_s15, 2048  ;;  %p2179_p2 = scmp.lt.s32.totalorder %s213_s15, %s213_s15 }
  0x56   : > { %p2172_p7 = scmp.ne.s32.totalorder %s213_s15, %s2171_s6  ;;  %p2180_p4 = scmp.lt.s32.totalorder %s2171_s6, %s2171_s6 }
  0x58   : > { %p2174_p10 = pnand %p2172_p7, %p2404_p13  ;;  %p2181_p6 = por %p2180_p4, %p2179_p2 }
  0x5a   : > { %p2175_p1 = pneg %p2174_p10 }
  0x5c   : > { %p2182_p8 = pnand %p2181_p6, %p2175_p1 }
  0x5e   : > { %2185 = shalt.err (!%p2182_p8)
}
  0x5f   : > { %1991 = dma.hbm_to_vmem [thread:$0]  (!%p2390_p11), %s3721_s3, 2048, %s213_s15, [#allocation8], %s3727_s16, %s3727_s16, %s2299_s17  }
  0x60   : > { %s2487_s12 = sadd.s32 1, %s2294_s21   ;;  %s115_s29 = sadd.s32 1, %s2290_s20 }
  0x61   : > { %s112_s14 = ssub.s32 %s2294_s21, %s2487_s12  ;;  %p122_p13 = scmp.ne.s32.totalorder %s2290_s20, %s2286_s19 }
  0x62   : > { %p113_p9 = scmp.eq.s32.totalorder %s112_s14, 0  ;;  %p123_p12 = scmp.eq.s32.totalorder %s2294_s21, 0 }
  0x63   : > { %p3742_p0 = scmp.eq.s32.totalorder %s2362_s22, 1  ;;  %p2004_p5 = scmp.lt.s32.totalorder %s2294_s21, 2 }
  0x64   : > { %s2503_s23 = scalar_select %p113_p9, %s2290_s20, %s115_s29  }
  0x65   : > { %p2497_p3 = por %p3742_p0, %p122_p13  ;;  %p124_p7 = por %p123_p12, %p122_p13 }
  0x66   : > { %s226_s27 = sand.u32 1, %s2290_s20   ;;  %s1956_s15 = smul.u32 768, %s2294_s21 }
  0x67   : > { %s1955_s30 = smul.u32 48, %s226_s27  ;;  %p2507_p11 = pnand %p2004_p5, %p124_p7 }
  0x68   : > { %s2514_s10 = scalar_lea.hbm %s3722_s4, %s1956_s15  ;;  %s2518_s13 = scalar_lea.sflag [#allocation11], %s226_s27 }
  0x69   : > { %s230_s6 = scalar_lea.vmem [#allocation10], %s1955_s30  ;;  %s2186_s29 = scalar_lea.hbm %s2514_s10, 768 }
  0x6a   : > { %s237_s11 = sshll.u32 %s230_s6, 4  ;;  %p2187_p10 = scmp.ne.s32.totalorder %s2514_s10, %s2186_s29  ;;  %s2516_s11 = int_to_ptr.vmem [resolvable:$true] %s237_s11 }
  0x6b   : > { %p2188_p1 = pneg %p2507_p11  ;;  %s2191_s9 = scalar_lea.hbm %s3722_s4, 1536 }
  0x6c   : > { %p2192_p6 = scmp.lt.u32.totalorder %s2514_s10, %s3722_s4  ;;  %p2193_p8 = scmp.lt.u32.totalorder %s2191_s9, %s2186_s29 }
  0x6d   : > { %p2189_p2 = pnand %p2188_p1, %p2187_p10  ;;  %p2195_p9 = scmp.lt.u32.totalorder %s2186_s29, %s2514_s10 }
  0x6e   : > { %p2194_p13 = por %p2193_p8, %p2192_p6 }
  0x6f   : > { %p2190_p4 = pneg %p2189_p2 }
  0x70   : > { %p2196_p12 = por %p2195_p9, %p2194_p13 }
  0x72   : > { %p2197_p0 = pnand %p2196_p12, %p2190_p4 }
  0x74   : > { %2200 = shalt.err (!%p2197_p0)
}
  0x75   : > { %s2201_s27 = scalar_lea.vmem %s2516_s11, 768  ;;  %s2302_s30 = smov [#allocation10]  }
  0x76   : > { %p2202_p5 = scmp.ne.s32.totalorder %s2516_s11, %s2201_s27  ;;  %s2206_s6 = sshll.u32 %s2302_s30, 4  ;;  %s2207_s6 = int_to_ptr.vmem [resolvable:$false] %s2206_s6 }
  0x77   : > { %s2208_s16 = scalar_lea.vmem %s2207_s6, 1536  ;;  %p2209_p2 = scmp.lt.s32.totalorder %s2516_s11, %s2207_s6 }
  0x78   : > { %p2204_p7 = pnand %p2202_p5, %p2188_p1  ;;  %p2210_p6 = scmp.lt.s32.totalorder %s2208_s16, %s2201_s27 }
  0x7a   : > { %p2205_p10 = pneg %p2204_p7  ;;  %p2211_p8 = por %p2210_p6, %p2209_p2 }
  0x7c   : > { %p2212_p13 = pnand %p2211_p8, %p2205_p10 }
  0x7e   : > { %2215 = shalt.err (!%p2212_p13)
}
  0x7f   : > { %s3745_s29 = smov 128   ;;  %p3746_p1 = scmp.ne.s32.totalorder %s3739_s26, 0 }
  0x80   : > { %1995 = dma.hbm_to_vmem [thread:$0]  (!%p2507_p11), %s2514_s10, 768, %s2516_s11, %s2518_s13, %s3745_s29, %s3745_s29, %s2299_s17  }
  0x81   : > { %249 = sbr.rel (%p3746_p1) target bundleno = 975 (0x3cf), region = 40 }
  0x88   : > { %p3747_p4 = scmp.eq.s32.totalorder %s2362_s22, 0 }
  0x8a   : > { %2261 = dma.done.wait (%p3747_p4), [#allocation5], 16   ;;  %p3748_p9 = pmov %p3747_p4 }
  0x8b   : > { %p3749_p12 = pmov %p3747_p4 }
  0x8c   : > { %2263 = vsyncadd (%p3748_p9), [#allocation5], 4294967280 }
  0x8d   : > { %2265 = dma.done.wait (%p3749_p12), [#allocation3], 2048   ;;  %p3750_p0 = pmov %p3747_p4 }
  0x8f   : > { %2267 = vsyncadd (%p3750_p0), [#allocation3], 4294965248  ;;  %p3751_p5 = pmov %p3750_p0 }
  0x90   : > { %p3752_p11 = pmov %p3750_p0 }
  0x91   : > { %2269 = dma.done.wait (%p3751_p5), [#allocation8], 4096  }
  0x92   : > { %2271 = vsyncadd (%p3752_p11), [#allocation8], 4294963200  ;;  %s2564_s26 = sand.u32 1, %s2286_s19   ;;  %p3753_p7 = scmp.ne.s32.totalorder %s3737_s24, 0 }
  0x93   : > { %s1957_s17 = smul.u32 48, %s2564_s26  ;;  %s268_s7 = scalar_lea.sflag [#allocation11], %s2564_s26 }
  0x95   : > { %s2570_s10 = scalar_lea.vmem [#allocation10], %s1957_s17 }
  0x96   : > { %2273 = dma.done.wait (%p3753_p7), %s268_s7, 768  }
  0x97   : > { %2275 = vsyncadd (%p3753_p7), %s268_s7, 4294966528 }
  0x98   : > { %276 = sfence }
  0x99   : > { %s681_s11 = sld [smem:[#allocation2]]  ;;  %s1717_s13 = sld [smem:[#allocation2 + $0x1]]  ;;  %v304_v0 = vld [vmem:[%s2570_s10 + $0x8] sm:$0xff]  ;;  %v1713_v1 = vld [vmem:[%s2570_s10 + $0x10] sm:$0xff]  ;;  %v303_v2 = vld [vmem:[%s2570_s10] sm:$0xff]  ;;  %v309_v7 = vlaneseq  ;;  %vm2306_vm2 = vmmov 0  }
  0x9a   : > { %s1718_s14 = sld [smem:[#allocation2 + $0x2]]  ;;  %s2576_s15 = sld [smem:[#allocation2 + $0x3]]  ;;  %v1714_v3 = vld [vmem:[%s2570_s10 + $0x18] sm:$0xff]  ;;  %v2585_v4 = vld [vmem:[%s2570_s10 + $0x20] sm:$0xff]  ;;  %v2588_v5 = vld [vmem:[%s2570_s10 + $0x28] sm:$0xff]  ;;  %vm1286_vm3 = vcmask 1040384  }
  0x9b   : > { %s2581_s9 = sld [smem:[#allocation2 + $0x18]]  ;;  %s2590_s24 = sld [smem:[#allocation2 + $0x19]]  ;;  %v2601_v19 = vshrl.u32 %v309_v7, 7  ;;  %vm1288_vm4 = vcmask 1041408  }
  0x9c   : > { %s2592_s8 = sld [smem:[#allocation2 + $0x1a]]  ;;  %s2596_s27 = sld [smem:[#allocation2 + $0x1b]] }
  0x9d   : > { %s2598_s30 = sld [smem:[#allocation2 + $0x1c]]  ;;  %s2609_s6 = sld [smem:[#allocation2 + $0x1d]]  ;;  %vm311_vm0 = vcmp.lt.s32.totalorder %v2601_v19, 7  ;;  %vm397_vm1 = vcmp.lt.s32.totalorder %v2601_v19, 1 }
  0x9e   : > { %s2303_s16 = smov 127   ;;  %s2621_s29 = sld [smem:[#allocation2 + $0x1e]] }
  0x9f   : > { %v682_v6 = vstv %s681_s11  ;;  %v686_v9 = vstv %s1717_s13  ;;  %s2304_s7 = smov 1   ;;  %s1747_s11 = sld [smem:[#allocation2 + $0x1f]] }
  0xa0   : > { %v684_v8 = vmul.f32 %v682_v6, %v304_v0  ;;  %v692_v10 = vstv %s1718_s14  ;;  %v683_v11 = vmul.f32 %v682_v6, %v303_v2  ;;  %v687_v12 = vmul.f32 %v1713_v1, %v686_v9  ;;  %s1748_s13 = sld [smem:[#allocation2 + $0x24]]  ;;  %s1749_s14 = sld [smem:[#allocation2 + $0x2d]] }
  0xa1   : > { %v688_v13 = vmul.f32 %v1714_v3, %v686_v9  ;;  %v693_v14 = vmul.f32 %v2585_v4, %v692_v10  ;;  %v694_v15 = vmul.f32 %v2588_v5, %v692_v10  ;;  %v698_v18 = vstv %s2576_s15  ;;  %s1751_s15 = sld [smem:[#allocation2 + $0x36]] }
  0xa2   : > { %v689_v17 = vadd.f32 %v687_v12, %v683_v11  ;;  %v910_v22 = vstv %s2581_s9  ;;  %v914_v23 = vstv %s2590_s24  ;;  %v920_v28 = vstv %s2592_s8  ;;  %s1752_s9 = sld [smem:[#allocation2 + $0x3f]]  ;;  %s2760_s24 = sld [smem:[#allocation2 + $0x8]] }
  0xa3   : > { %v690_v16 = vadd.f32 %v688_v13, %v684_v8  ;;  %v911_v26 = vmul.f32 %v910_v22, %v303_v2  ;;  %v912_v27 = vmul.f32 %v910_v22, %v304_v0  ;;  %v915_v31 = vmul.f32 %v1713_v1, %v914_v23  ;;  %s2762_s8 = sld [smem:[#allocation2 + $0xb]] }
  0xa4   : > { %v695_v21 = vadd.f32 %v693_v14, %v689_v17  ;;  %v916_v32 = vmul.f32 %v1714_v3, %v914_v23  ;;  %v930_v34 = vstv %s2596_s27  ;;  %v934_v35 = vstv %s2598_s30  ;;  %s2764_s27 = sld [smem:[#allocation2 + $0xc]]  ;;  %s2776_s30 = sld [smem:[#allocation2 + $0x5]] }
  0xa5   : > { %v696_v20 = vadd.f32 %v694_v15, %v690_v16  ;;  %v921_v36 = vmul.f32 %v2585_v4, %v920_v28  ;;  %v917_v38 = vadd.f32 %v915_v31, %v911_v26  ;;  %v922_v40 = vmul.f32 %v2588_v5, %v920_v28 }
  0xa6   : > { %v2607_v25 = vadd.f32 %v698_v18, %v695_v21  ;;  %v918_v39 = vadd.f32 %v916_v32, %v912_v27  ;;  %v931_v41 = vmul.f32 %v930_v34, %v303_v2  ;;  %v932_v42 = vmul.f32 %v930_v34, %v304_v0 }
  0xa7   : > { %v2605_v24 = vadd.f32 %v698_v18, %v696_v20  ;;  %v935_v43 = vmul.f32 %v1713_v1, %v934_v35  ;;  %v936_v44 = vmul.f32 %v1714_v3, %v934_v35  ;;  %v940_v45 = vstv %s2609_s6  ;;  %s2779_s6 = sld [smem:[#allocation2 + $0xa]] }
  0xa8   : > { %v706_v29 = vrot.slane %v2607_v25, 1  ;;  %v766_v46 = vrot.slane %v2607_v25, 7  ;;  %v923_v48 = vadd.f32 %v921_v36, %v917_v38  ;;  %v924_v49 = vadd.f32 %v922_v40, %v918_v39  ;;  %v2766_v36 = vld [vmem:[#allocation6 + $0x10] sm:$0xff]  ;;  %v2768_v39 = vld [vmem:[#allocation6] sm:$0xff] }
  0xa9   : > { %744 = vrot.lane.b32.xlu1 %v2605_v24, %s2303_s16  ;;  %v707_v30 = vrot.slane %v2605_v24, 1  ;;  %v767_v47 = vrot.slane %v2605_v24, 7  ;;  %v937_v50 = vadd.f32 %v935_v43, %v931_v41  ;;  %v938_v51 = vadd.f32 %v936_v44, %v932_v42  ;;  %v2774_v43 = vld [vmem:[#allocation6 + $0x18] sm:$0xff] }
  0xaa   : > { %v941_v52 = vmul.f32 %v2585_v4, %v940_v45  ;;  %v942_v53 = vmul.f32 %v2588_v5, %v940_v45  ;;  %v926_v54 = vstv %s2621_s29  ;;  %v946_v60 = vstv %s1747_s11  ;;  %s2781_s29 = sld [smem:[#allocation2 + $0x9]]  ;;  %s2787_s11 = sld [smem:[#allocation2 + $0x7]] }
  0xab   : > { %v2619_v33 = vsel %vm311_vm0, %v706_v29, %v707_v30  ;;  %v2632_v37 = vsel %vm311_vm0, %v707_v30, %v706_v29  ;;  %v2652_v55 = vsel %vm397_vm1, %v766_v46, %v767_v47  ;;  %v2654_v56 = vadd.f32 %v926_v54, %v923_v48 }
  0xac   : > { %710 = vrot.lane.b32.xlu0 %v2619_v33, %s2303_s16  ;;  %v2656_v57 = vadd.f32 %v926_v54, %v924_v49  ;;  %v943_v58 = vadd.f32 %v941_v52, %v937_v50  ;;  %v944_v59 = vadd.f32 %v942_v53, %v938_v51  ;;  %v2664_v61 = vsel %vm397_vm1, %v767_v47, %v766_v46  ;;  %v2785_v49 = vld [vmem:[#allocation6 + $0x8] sm:$0xff]  ;;  %v2797_v53 = vld [vmem:[#allocation6 + $0x20] sm:$0xff] }
  0xad   : > { %730 = vrot.lane.b32.xlu1 %v2619_v33, %s2304_s7  ;;  %v977_v62 = vrot.slane %v2654_v56, 1  ;;  %v1157_v8 = vrot.slane %v2654_v56, 7  ;;  %v950_v9 = vstv %s1748_s13  ;;  %v954_v10 = vstv %s1749_s14  ;;  %s2791_s13 = sld [smem:[#allocation2 + $0x27]]  ;;  %s2793_s14 = sld [smem:[#allocation2 + $0x39]]  ;;  %v2795_v52 = vld [vmem:[#allocation6 + $0x28] sm:$0xff] }
  0xae   : > { %v978_v63 = vrot.slane %v2656_v57, 1  ;;  %v947_v0 = vadd.f32 %v946_v60, %v943_v58  ;;  %v948_v1 = vadd.f32 %v946_v60, %v944_v59  ;;  %v1158_v11 = vrot.slane %v2656_v57, 7  ;;  %v2801_v54 = vld [vmem:[#allocation6 + $0x68] sm:$0xff] }
  0xaf   : > { %v952_v12 = vmul.f32 %v950_v9, %v2656_v57  ;;  %v964_v14 = vstv %s1751_s15  ;;  %v968_v16 = vstv %s1752_s9  ;;  %v951_v17 = vmul.f32 %v950_v9, %v2654_v56  ;;  %s2799_s15 = sld [smem:[#allocation2 + $0x6]]  ;;  %s2807_s9 = sld [smem:[#allocation2 + $0x30]] }
  0xb0   : > { %712 = vrot.lane.b32.xlu0 %v2632_v37, %s2303_s16  ;;  %v2674_v2 = vsel %vm311_vm0, %v978_v63, %v977_v62  ;;  %v987_v3 = vrot.slane %v947_v0, 1  ;;  %v988_v4 = vrot.slane %v948_v1, 1  ;;  %v2682_v5 = vsel %vm311_vm0, %v977_v62, %v978_v63  ;;  %v2810_v62 = vld [vmem:[#allocation6 + $0x30] sm:$0xff] }
  0xb1   : > { %732 = vrot.lane.b32.xlu1 %v2632_v37, %s2304_s7  ;;  %v956_v13 = vmul.f32 %v954_v10, %v948_v1  ;;  %v966_v15 = vmul.f32 %v964_v14, %v2656_v57  ;;  %v970_v20 = vmul.f32 %v968_v16, %v948_v1  ;;  %v955_v21 = vmul.f32 %v954_v10, %v947_v0 }
  0xb2   : > { %v2686_v6 = vsel %vm311_vm0, %v988_v4, %v987_v3  ;;  %v2694_v7 = vsel %vm311_vm0, %v987_v3, %v988_v4  ;;  %v965_v22 = vmul.f32 %v964_v14, %v2654_v56  ;;  %v969_v23 = vmul.f32 %v968_v16, %v947_v0  ;;  %v2817_v4 = vld [vmem:[#allocation6 + $0x48] sm:$0xff] }
  0xb3   : > { %v2721_v18 = vadd.f32 %v956_v13, %v952_v12  ;;  %v2727_v26 = vsel %vm397_vm1, %v1157_v8, %v1158_v11  ;;  %v1167_v27 = vrot.slane %v947_v0, 7  ;;  %v1168_v28 = vrot.slane %v948_v1, 7 }
  0xb4   : > { %742 = vrot.lane.b32.xlu0 %v2607_v25, %s2303_s16  ;;  %v2729_v29 = vadd.f32 %v970_v20, %v966_v15  ;;  %v2731_v30 = vadd.f32 %v955_v21, %v951_v17  ;;  %v2733_v31 = vadd.f32 %v969_v23, %v965_v22  ;;  %v2740_v32 = vsel %vm397_vm1, %v1158_v11, %v1157_v8  ;;  %v2832_v22 = vld [vmem:[#allocation6 + $0x40] sm:$0xff] }
  0xb5   : > { %756 = vrot.lane.b32.xlu1 %v2605_v24, %s2304_s7  ;;  %v2744_v34 = vsel %vm397_vm1, %v1167_v27, %v1168_v28  ;;  %v2752_v35 = vsel %vm397_vm1, %v1168_v28, %v1167_v27  ;;  %v702_v40 = vstv %s2760_s24  ;;  %v722_v41 = vmul.f32 %v2619_v33, %v2766_v36  ;;  %s2814_s24 = sld [smem:[#allocation2 + $0x42]] }
  0xb6   : > { %v724_v42 = vstv %s2762_s8  ;;  %v716_v44 = vstv %s2764_s27  ;;  %v703_v46 = vmul.f32 %v702_v40, %v2607_v25  ;;  %v723_v50 = vmul.f32 %v2632_v37, %v2774_v43  ;;  %s2826_s8 = sld [smem:[#allocation2 + $0x4]] }
  0xb7   : > { %v725_v33 = vmul.f32 %v724_v42, %v722_v41  ;;  %v704_v37 = vmul.f32 %v702_v40, %v2605_v24  ;;  %v783_v8 = vmul.f32 %v2652_v55, %v2801_v54  ;;  %v784_v9 = vstv %s2776_s30  ;;  %s2834_s27 = sld [smem:[#allocation2 + $0x44]]  ;;  %v2838_v40 = vld [vmem:[#allocation6 + $0x58] sm:$0xff]  ;;  %s2840_s30 = sld [smem:[#allocation2 + $0x45]] }
  0xb8   : > { %754 = vrot.lane.b32.xlu0 %v2607_v25, %s2304_s7  ;;  %v726_v63 = vmul.f32 %v724_v42, %v723_v50  ;;  %v736_v11 = vstv %s2779_s6  ;;  %v748_v13 = vstv %s2781_s29  ;;  %v1026_v23 = vstv %s2791_s13  ;;  %s2845_s6 = sld [smem:[#allocation2 + $0x28]]  ;;  %s2848_s29 = sld [smem:[#allocation2 + $0x3a]] }
  0xb9   : > { %772 = vrot.lane.b32.xlu1 %v2652_v55, %s2303_s16  ;;  %v1038_v27 = vstv %s2793_s14  ;;  %v786_v41 = vmul.f32 %v784_v9, %v783_v8  ;;  %s2867_s13 = sld [smem:[#allocation2 + $0x31]]  ;;  %s2869_s14 = sld [smem:[#allocation2 + $0x43]] }
  0xbc   : > { %770 = vrot.lane.b32.xlu0 %v2664_v61, %s2303_s16 }
  0xbd   : > { %792 = vrot.lane.b32.xlu1 %v2652_v55, %s2304_s7  ;;  %v760_v55 = vstv %s2787_s11  ;;  %s2856_s11 = sld [smem:[#allocation2 + $0xd]] }
  0xc0   : > { %790 = vrot.lane.b32.xlu0 %v2664_v61, %s2304_s7 }
  0xc1   : > { %983 = vrot.lane.b32.xlu1 %v2674_v2, %s2303_s16 }
  0xc4   : > { %981 = vrot.lane.b32.xlu0 %v2682_v5, %s2303_s16 }
  0xc5   : > { %993 = vrot.lane.b32.xlu1 %v2686_v6, %s2303_s16 }
  0xc8   : > { %991 = vrot.lane.b32.xlu0 %v2694_v7, %s2303_s16 }
  0xc9   : > { %1051 = vrot.lane.b32.xlu1 %v2674_v2, %s2304_s7 }
  0xcc   : > { %1049 = vrot.lane.b32.xlu0 %v2682_v5, %s2304_s7 }
  0xcd   : > { %1057 = vrot.lane.b32.xlu1 %v2686_v6, %s2304_s7 }
  0xd0   : > { %1055 = vrot.lane.b32.xlu0 %v2694_v7, %s2304_s7 }
  0xd1   : > { %1087 = vrot.lane.b32.xlu1 %v2656_v57, %s2303_s16 }
  0xd4   : > { %1085 = vrot.lane.b32.xlu0 %v2654_v56, %s2303_s16 }
  0xd5   : > { %1093 = vrot.lane.b32.xlu1 %v948_v1, %s2303_s16 }
  0xd8   : > { %1091 = vrot.lane.b32.xlu0 %v947_v0, %s2303_s16 }
  0xd9   : > { %1123 = vrot.lane.b32.xlu1 %v2656_v57, %s2304_s7 }
  0xdc   : > { %1121 = vrot.lane.b32.xlu0 %v2654_v56, %s2304_s7  ;;  %v2803_v56 = vld [vmem:[#allocation6 + $0x38] sm:$0xff] }
  0xdd   : > { %1129 = vrot.lane.b32.xlu1 %v948_v1, %s2304_s7 }
  0xe0   : > { %1127 = vrot.lane.b32.xlu0 %v947_v0, %s2304_s7  ;;  %v2812_v0 = vld [vmem:[#allocation6 + $0x60] sm:$0xff] }
  0xe1   : > { %1163 = vrot.lane.b32.xlu1 %v2727_v26, %s2303_s16  ;;  %v782_v20 = vmul.f32 %v2664_v61, %v2812_v0  ;;  %v1022_v61 = vmul.f32 %v2674_v2, %v2774_v43 }
  0xe3   : > { %v2863_v8 = vmul.f32 %v1038_v27, %v1022_v61 }
  0xe4   : > { %1161 = vrot.lane.b32.xlu0 %v2740_v32, %s2303_s16 }
  0xe5   : > { %1173 = vrot.lane.b32.xlu1 %v2744_v34, %s2303_s16 }
  0xe8   : > { %1171 = vrot.lane.b32.xlu0 %v2752_v35, %s2303_s16 }
  0xe9   : > { %1231 = vrot.lane.b32.xlu1 %v2727_v26, %s2304_s7 }
  0xec   : > { %1229 = vrot.lane.b32.xlu0 %v2740_v32, %s2304_s7 }
 0x11b   : > { %v745_v38 = vpop.permute.xlu1 %744 }
 0x11c   : > { %v747_v10 = vmul.f32 %v745_v38, %v2803_v56 }
 0x11e   : > { %v711_v45 = vpop.permute.xlu0 %710  ;;  %v750_v42 = vmul.f32 %v748_v13, %v747_v10 }
 0x11f   : > { %v714_v47 = vmul.f32 %v711_v45, %v2768_v39  ;;  %v731_v48 = vpop.permute.xlu1 %730  ;;  %v776_v45 = vstv %s2799_s15  ;;  %s2899_s15 = sld [smem:[#allocation2 + $0x26]] }
 0x120   : > { %v734_v24 = vmul.f32 %v731_v48, %v2797_v53 }
 0x121   : > { %v717_v51 = vmul.f32 %v716_v44, %v714_v47 }
 0x122   : > { %v713_v25 = vpop.permute.xlu0 %712  ;;  %v737_v28 = vmul.f32 %v736_v11, %v734_v24  ;;  %v2859_v24 = vld [vmem:[#allocation6 + $0x78] sm:$0xff] }
 0x123   : > { %v719_v57 = vadd.f32 %v717_v51, %v703_v46  ;;  %v715_v58 = vmul.f32 %v713_v25, %v2785_v49  ;;  %v733_v59 = vpop.permute.xlu1 %732  ;;  %v785_v51 = vmul.f32 %v784_v9, %v782_v20  ;;  %v1021_v25 = vmul.f32 %v2682_v5, %v2766_v36 }
 0x124   : > { %v735_v60 = vmul.f32 %v733_v59, %v2795_v52  ;;  %v1024_v5 = vmul.f32 %v2686_v6, %v2774_v43  ;;  %v960_v20 = vstv %s2834_s27  ;;  %s2905_s27 = sld [smem:[#allocation2 + $0x2f]] }
 0x125   : > { %v727_v1 = vadd.f32 %v725_v33, %v719_v57  ;;  %v718_v3 = vmul.f32 %v716_v44, %v715_v58  ;;  %v1032_v57 = vstv %s2807_s9  ;;  %v1044_v58 = vstv %s2814_s24  ;;  %s2940_s9 = sld [smem:[#allocation2 + $0x40]]  ;;  %s2964_s24 = sld [smem:[#allocation2 + $0x23]] }
 0x126   : > { %v743_v12 = vpop.permute.xlu0 %742  ;;  %v738_v15 = vmul.f32 %v736_v11, %v735_v60 }
 0x127   : > { %v720_v14 = vadd.f32 %v718_v3, %v704_v37  ;;  %v746_v16 = vmul.f32 %v743_v12, %v2810_v62  ;;  %v757_v17 = vpop.permute.xlu1 %756  ;;  %v2854_v37 = vld [vmem:[#allocation6 + $0x50] sm:$0xff]  ;;  %v739_v59 = vadd.f32 %v737_v28, %v727_v1  ;;  %v2861_v3 = vmul.f32 %v1026_v23, %v1022_v61 }
 0x128   : > { %v759_v21 = vmul.f32 %v757_v17, %v2817_v4  ;;  %v2878_v17 = vld [vmem:[#allocation6 + $0x70] sm:$0xff]  ;;  %v2884_v61 = vmul.f32 %v1032_v57, %v1024_v5 }
 0x129   : > { %v728_v38 = vadd.f32 %v726_v63, %v720_v14  ;;  %v749_v47 = vmul.f32 %v748_v13, %v746_v16  ;;  %v796_v13 = vstv %s2826_s8  ;;  %v2875_v16 = vmul.f32 %v1038_v27, %v1021_v25  ;;  %s2903_s8 = sld [smem:[#allocation2 + $0x38]] }
 0x12a   : > { %v755_v44 = vpop.permute.xlu0 %754  ;;  %v762_v48 = vmul.f32 %v760_v55, %v759_v21 }
 0x12b   : > { %v740_v46 = vadd.f32 %v738_v15, %v728_v38  ;;  %v758_v33 = vmul.f32 %v755_v44, %v2832_v22  ;;  %v773_v50 = vpop.permute.xlu1 %772  ;;  %v751_v1 = vadd.f32 %v749_v47, %v739_v59  ;;  %v2873_v15 = vmul.f32 %v1026_v23, %v1021_v25 }
 0x12c   : > { %v775_v2 = vmul.f32 %v773_v50, %v2838_v40  ;;  %v974_v38 = vstv %s2840_s30  ;;  %v1023_v23 = vmul.f32 %v2694_v7, %v2766_v36  ;;  %v998_v44 = vstv %s2845_s6  ;;  %s2911_s30 = sld [smem:[#allocation2 + $0x41]]  ;;  %s2913_s6 = sld [smem:[#allocation2 + $0x25]] }
 0x12d   : > { %v752_v60 = vadd.f32 %v750_v42, %v740_v46  ;;  %v761_v63 = vmul.f32 %v760_v55, %v758_v33  ;;  %v1010_v33 = vstv %s2848_s29  ;;  %v962_v25 = vadd.f32 %v960_v20, %v2721_v18  ;;  %s2917_s29 = sld [smem:[#allocation2 + $0x37]] }
 0x12e   : > { %v778_v9 = vmul.f32 %v776_v45, %v775_v2  ;;  %v771_v10 = vpop.permute.xlu0 %770  ;;  %v976_v2 = vadd.f32 %v974_v38, %v2729_v29  ;;  %v2897_v7 = vmul.f32 %v1044_v58, %v1024_v5  ;;  %v961_v5 = vadd.f32 %v960_v20, %v2731_v30 }
 0x12f   : > { %v764_v11 = vadd.f32 %v762_v48, %v752_v60  ;;  %v774_v12 = vmul.f32 %v771_v10, %v2854_v37  ;;  %v793_v14 = vpop.permute.xlu1 %792  ;;  %v763_v55 = vadd.f32 %v761_v63, %v751_v1  ;;  %v2927_v30 = vmul.f32 %v1044_v58, %v1023_v23 }
 0x130   : > { %v795_v6 = vmul.f32 %v793_v14, %v2859_v24 }
 0x131   : > { %v780_v21 = vadd.f32 %v778_v9, %v764_v11  ;;  %v777_v28 = vmul.f32 %v776_v45, %v774_v12  ;;  %v802_v45 = vstv %s2856_s11  ;;  %v1004_v11 = vstv %s2867_s13  ;;  %s2919_s11 = sld [smem:[#allocation2 + $0x2e]]  ;;  %s2978_s13 = sld [smem:[#allocation2 + $0x35]] }
 0x132   : > { %v798_v27 = vmul.f32 %v796_v13, %v795_v6  ;;  %v791_v42 = vpop.permute.xlu0 %790  ;;  %v1016_v12 = vstv %s2869_s14  ;;  %s2994_s14 = sld [smem:[#allocation2 + $0x2c]] }
 0x133   : > { %v779_v46 = vadd.f32 %v777_v28, %v763_v55  ;;  %v788_v47 = vadd.f32 %v786_v41, %v780_v21  ;;  %v794_v48 = vmul.f32 %v791_v42, %v2878_v17  ;;  %v984_v50 = vpop.permute.xlu1 %983  ;;  %v975_v55 = vadd.f32 %v974_v38, %v2733_v31 }
 0x134   : > { %v986_v59 = vmul.f32 %v984_v50, %v2785_v49  ;;  %v2923_v28 = vmul.f32 %v1032_v57, %v1023_v23 }
 0x135   : > { %v800_v60 = vadd.f32 %v798_v27, %v788_v47  ;;  %v787_v63 = vadd.f32 %v785_v51, %v779_v46  ;;  %v797_v9 = vmul.f32 %v796_v13, %v794_v48 }
 0x136   : > { %v1000_v41 = vmul.f32 %v998_v44, %v986_v59  ;;  %v1012_v10 = vmul.f32 %v1010_v33, %v986_v59  ;;  %v982_v1 = vpop.permute.xlu0 %981 }
 0x137   : > { %v2907_v18 = vadd.f32 %v802_v45, %v800_v60  ;;  %v799_v29 = vadd.f32 %v797_v9, %v787_v63  ;;  %v985_v51 = vmul.f32 %v982_v1, %v2768_v39  ;;  %v994_v13 = vpop.permute.xlu1 %993  ;;  %v1062_v9 = vstv %s2899_s15  ;;  %s2998_s15 = sld [smem:[#allocation2 + $0x3e]] }
 0x138   : > { %v1002_v14 = vadd.f32 %v1000_v41, %v962_v25  ;;  %v1014_v6 = vadd.f32 %v1012_v10, %v976_v2  ;;  %v996_v21 = vmul.f32 %v994_v13, %v2785_v49  ;;  %v1074_v41 = vstv %s2903_s8  ;;  %s3002_s8 = sld [smem:[#allocation2 + $0x21]] }
 0x139   : > { %v2929_v20 = vadd.f32 %v802_v45, %v799_v29  ;;  %848 = vrot.lane.b32.xlu1 %v2907_v18, %s2303_s16  ;;  %v999_v27 = vmul.f32 %v998_v44, %v985_v51  ;;  %v811_v31 = vrot.slane %v2907_v18, 1  ;;  %v1011_v38 = vmul.f32 %v1010_v33, %v985_v51 }
 0x13a   : > { %v1006_v42 = vmul.f32 %v1004_v11, %v996_v21  ;;  %v1018_v46 = vmul.f32 %v1016_v12, %v996_v21  ;;  %v992_v47 = vpop.permute.xlu0 %991  ;;  %v871_v23 = vrot.slane %v2907_v18, 7  ;;  %v1068_v29 = vstv %s2905_s27  ;;  %s3004_s27 = sld [smem:[#allocation2 + $0x33]] }
 0x13b   : > { %846 = vrot.lane.b32.xlu0 %v2929_v20, %s2303_s16  ;;  %v810_v57 = vrot.slane %v2929_v20, 1  ;;  %v870_v58 = vrot.slane %v2929_v20, 7  ;;  %v995_v48 = vmul.f32 %v992_v47, %v2768_v39  ;;  %v1052_v44 = vpop.permute.xlu1 %1051  ;;  %v1001_v33 = vadd.f32 %v999_v27, %v961_v5 }
 0x13c   : > { %v1013_v50 = vadd.f32 %v1011_v38, %v975_v55  ;;  %v1008_v45 = vadd.f32 %v1006_v42, %v1002_v14  ;;  %v1020_v25 = vadd.f32 %v1018_v46, %v1014_v6  ;;  %v1054_v10 = vmul.f32 %v1052_v44, %v2795_v52 }
 0x13d   : > { %860 = vrot.lane.b32.xlu1 %v2907_v18, %s2304_s7  ;;  %v2946_v2 = vsel %vm311_vm0, %v811_v31, %v810_v57  ;;  %v2950_v59 = vsel %vm311_vm0, %v810_v57, %v811_v31  ;;  %v2954_v60 = vsel %vm397_vm1, %v870_v58, %v871_v23  ;;  %v2958_v63 = vsel %vm397_vm1, %v871_v23, %v870_v58 }
 0x13e   : > { %v1050_v1 = vpop.permute.xlu0 %1049  ;;  %v1030_v5 = vadd.f32 %v2861_v3, %v1008_v45  ;;  %v1042_v51 = vadd.f32 %v2863_v8, %v1020_v25  ;;  %v1005_v13 = vmul.f32 %v1004_v11, %v995_v48  ;;  %v1017_v14 = vmul.f32 %v1016_v12, %v995_v48 }
 0x13f   : > { %858 = vrot.lane.b32.xlu0 %v2929_v20, %s2304_s7  ;;  %v1058_v6 = vpop.permute.xlu1 %1057  ;;  %v1080_v55 = vstv %s2911_s30  ;;  %v1098_v21 = vstv %s2913_s6  ;;  %v1110_v27 = vstv %s2917_s29  ;;  %v1064_v3 = vmul.f32 %v1062_v9, %v1054_v10  ;;  %s3009_s30 = sld [smem:[#allocation2 + $0x22]]  ;;  %s3017_s6 = sld [smem:[#allocation2 + $0x34]] }
 0x140   : > { %v1104_v31 = vstv %s2919_s11  ;;  %v1007_v38 = vadd.f32 %v1005_v13, %v1001_v33  ;;  %v1019_v42 = vadd.f32 %v1017_v14, %v1013_v50  ;;  %v1036_v46 = vadd.f32 %v2884_v61, %v1030_v5  ;;  %s3025_s29 = sld [smem:[#allocation2 + $0x2b]]  ;;  %s3034_s11 = sld [smem:[#allocation2 + $0x3d]] }
 0x141   : > { %816 = vrot.lane.b32.xlu1 %v2946_v2, %s2303_s16  ;;  %v1048_v47 = vadd.f32 %v2897_v7, %v1042_v51  ;;  %v1076_v8 = vmul.f32 %v1074_v41, %v1054_v10  ;;  %v1053_v11 = vmul.f32 %v1050_v1, %v2797_v53  ;;  %v1060_v12 = vmul.f32 %v1058_v6, %v2795_v52 }
 0x142   : > { %v1056_v57 = vpop.permute.xlu0 %1055  ;;  %v1029_v58 = vadd.f32 %v2873_v15, %v1007_v38  ;;  %v1041_v23 = vadd.f32 %v2875_v16, %v1019_v42  ;;  %v1116_v48 = vstv %s2940_s9  ;;  %v1066_v44 = vadd.f32 %v1064_v3, %v1036_v46  ;;  %v1290_v46 = vld [vmem:[#allocation7] sm:$0xff]  ;;  %s1779_s9 = sld [smem:[#allocation2 + $0x2a]] }
 0x143   : > { %814 = vrot.lane.b32.xlu0 %v2950_v59, %s2303_s16  ;;  %v1059_v61 = vmul.f32 %v1056_v57, %v2797_v53  ;;  %v1088_v7 = vpop.permute.xlu1 %1087  ;;  %v1078_v33 = vadd.f32 %v1076_v8, %v1048_v47  ;;  %v1063_v50 = vmul.f32 %v1062_v9, %v1053_v11  ;;  %v1075_v45 = vmul.f32 %v1074_v41, %v1053_v11  ;;  %v1291_v47 = vld [vmem:[#allocation7 + $0x8] sm:$0xff] }
 0x144   : > { %v1035_v25 = vadd.f32 %v2923_v28, %v1029_v58  ;;  %v1047_v10 = vadd.f32 %v2927_v30, %v1041_v23  ;;  %v1070_v1 = vmul.f32 %v1068_v29, %v1060_v12  ;;  %v1082_v15 = vmul.f32 %v1080_v55, %v1060_v12 }
 0x145   : > { %836 = vrot.lane.b32.xlu1 %v2946_v2, %s2304_s7  ;;  %v1069_v5 = vmul.f32 %v1068_v29, %v1059_v61  ;;  %v1081_v16 = vmul.f32 %v1080_v55, %v1059_v61  ;;  %v1090_v51 = vmul.f32 %v1088_v7, %v2803_v56  ;;  %v1134_v14 = vstv %s2964_s24  ;;  %s1781_s24 = sld [smem:[#allocation2 + $0x3c]] }
 0x146   : > { %v1086_v13 = vpop.permute.xlu0 %1085  ;;  %v1065_v9 = vadd.f32 %v1063_v50, %v1035_v25  ;;  %v1077_v41 = vadd.f32 %v1075_v45, %v1047_v10  ;;  %v1072_v6 = vadd.f32 %v1070_v1, %v1066_v44  ;;  %v1084_v28 = vadd.f32 %v1082_v15, %v1078_v33  ;;  %v1293_v25 = vld [vmem:[#allocation7 + $0x18] sm:$0xff] }
 0x147   : > { %834 = vrot.lane.b32.xlu0 %v2950_v59, %s2304_s7  ;;  %v1094_v38 = vpop.permute.xlu1 %1093  ;;  %v1100_v30 = vmul.f32 %v1098_v21, %v1090_v51  ;;  %v1112_v29 = vmul.f32 %v1110_v27, %v1090_v51  ;;  %v1089_v55 = vmul.f32 %v1086_v13, %v2810_v62  ;;  %v1146_v11 = vstv %s2978_s13  ;;  %s3085_s13 = sld [smem:[#allocation2 + $0x12]] }
 0x148   : > { %v1096_v42 = vmul.f32 %v1094_v38, %v2803_v56  ;;  %v1071_v3 = vadd.f32 %v1069_v5, %v1065_v9  ;;  %v1083_v8 = vadd.f32 %v1081_v16, %v1077_v41  ;;  %v2305_v7 = vmov 0.0|0.0  }
 0x149   : > { %876 = vrot.lane.b32.xlu1 %v2954_v60, %s2303_s16  ;;  %v1102_v12 = vadd.f32 %v1100_v30, %v1072_v6  ;;  %v1114_v57 = vadd.f32 %v1112_v29, %v1084_v28  ;;  %v1099_v58 = vmul.f32 %v1098_v21, %v1089_v55  ;;  %v1111_v23 = vmul.f32 %v1110_v27, %v1089_v55  ;;  %v1292_v27 = vld [vmem:[#allocation7 + $0x10] sm:$0xff] }
 0x14a   : > { %v1092_v61 = vpop.permute.xlu0 %1091  ;;  %1907 = vmatprep.subr.bf16.mxu0 %v2305_v7  ;;  %v1106_v44 = vmul.f32 %v1104_v31, %v1096_v42  ;;  %v1118_v33 = vmul.f32 %v1116_v48, %v1096_v42  ;;  %v1908_v21 = vpack.c.bf16 %v1291_v47, %v1290_v46  ;;  %1931 = vmatprep.subr.bf16.mxu1 %v2305_v7  ;;  %v1140_v28 = vstv %s2994_s14  ;;  %v1294_v42 = vld [vmem:[#allocation7 + $0x20] sm:$0xff]  ;;  %v1295_v46 = vld [vmem:[#allocation7 + $0x28] sm:$0xff]  ;;  %s3087_s14 = sld [smem:[#allocation2 + $0x16]] }
 0x14b   : > { %874 = vrot.lane.b32.xlu0 %v2958_v63, %s2303_s16  ;;  %v1095_v50 = vmul.f32 %v1092_v61, %v2810_v62  ;;  %v1124_v45 = vpop.permute.xlu1 %1123  ;;  %v1101_v10 = vadd.f32 %v1099_v58, %v1071_v3  ;;  %v1113_v1 = vadd.f32 %v1111_v23, %v1083_v8  ;;  %v1911_v38 = vpack.c.bf16 %v1293_v25, %v1292_v27 }
 0x14c   : > { %v1126_v15 = vmul.f32 %v1124_v45, %v2817_v4  ;;  %v1108_v5 = vadd.f32 %v1106_v44, %v1102_v12  ;;  %v1120_v16 = vadd.f32 %v1118_v33, %v1114_v57  ;;  %1909 = vmatpush3.bf16.msra.mxu0 %v1908_v21  ;;  %v1206_v12 = vstv %s3002_s8  ;;  %s3091_s8 = sld [smem:[#allocation2 + $0xf]] }
 0x14d   : > { %896 = vrot.lane.b32.xlu1 %v2954_v60, %s2304_s7  ;;  %v1105_v51 = vmul.f32 %v1104_v31, %v1095_v50  ;;  %v1117_v13 = vmul.f32 %v1116_v48, %v1095_v50  ;;  %v1152_v48 = vstv %s2998_s15  ;;  %1910 = vmatprep.subr.bf16.mxu0 %v2305_v7  ;;  %v1218_v57 = vstv %s3004_s27  ;;  %s3089_s15 = sld [smem:[#allocation2 + $0x15]]  ;;  %s3093_s27 = sld [smem:[#allocation2 + $0x13]] }
 0x14e   : > { %v1136_v9 = vmul.f32 %v1134_v14, %v1126_v15  ;;  %v1148_v41 = vmul.f32 %v1146_v11, %v1126_v15  ;;  %v1122_v6 = vpop.permute.xlu0 %1121  ;;  %v1178_v50 = vstv %s3009_s30  ;;  %v1914_v45 = vpack.c.bf16 %v1295_v46, %v1294_v42  ;;  %s3095_s30 = sld [smem:[#allocation2 + $0x14]] }
 0x14f   : > { %894 = vrot.lane.b32.xlu0 %v2958_v63, %s2304_s7  ;;  %v1107_v30 = vadd.f32 %v1105_v51, %v1101_v10  ;;  %v1119_v29 = vadd.f32 %v1117_v13, %v1113_v1  ;;  %v1125_v31 = vmul.f32 %v1122_v6, %v2832_v22  ;;  %v1130_v55 = vpop.permute.xlu1 %1129  ;;  %v1190_v10 = vstv %s3017_s6  ;;  %s3101_s6 = sld [smem:[#allocation2 + $0x11]] }
 0x150   : > { %v1138_v47 = vadd.f32 %v1136_v9, %v1108_v5  ;;  %v1150_v3 = vadd.f32 %v1148_v41, %v1120_v16  ;;  %v1132_v8 = vmul.f32 %v1130_v55, %v2817_v4  ;;  %1912 = vmatpush3.bf16.msra.mxu0 %v1911_v38  ;;  %v1202_v51 = vmul.f32 %v2727_v26, %v2801_v54  ;;  %v1299_v26 = vld [vmem:[#allocation7 + $0x48] sm:$0xff] }
 0x151   : > { %1237 = vrot.lane.b32.xlu1 %v2744_v34, %s2304_s7  ;;  %v1135_v58 = vmul.f32 %v1134_v14, %v1125_v31  ;;  %v1147_v23 = vmul.f32 %v1146_v11, %v1125_v31  ;;  %1913 = vmatprep.subr.bf16.mxu0 %v2305_v7  ;;  %v1296_v14 = vld [vmem:[#allocation7 + $0x30] sm:$0xff]  ;;  %v1297_v11 = vld [vmem:[#allocation7 + $0x38] sm:$0xff]  ;;  %v1184_v41 = vstv %s3025_s29  ;;  %v1196_v46 = vstv %s3034_s11  ;;  %s3110_s29 = sld [smem:[#allocation2 + $0x20]]  ;;  %s3121_s11 = sld [smem:[#allocation2 + $0x32]] }
 0x152   : > { %v1142_v61 = vmul.f32 %v1140_v28, %v1132_v8  ;;  %v1154_v44 = vmul.f32 %v1152_v48, %v1132_v8  ;;  %v1128_v33 = vpop.permute.xlu0 %1127 }
 0x153   : > { %1235 = vrot.lane.b32.xlu0 %v2752_v35, %s2304_s7  ;;  %v1137_v21 = vadd.f32 %v1135_v58, %v1107_v30  ;;  %v1149_v27 = vadd.f32 %v1147_v23, %v1119_v29  ;;  %v1131_v25 = vmul.f32 %v1128_v33, %v2832_v22  ;;  %v1164_v1 = vpop.permute.xlu1 %1163  ;;  %v1917_v29 = vpack.c.bf16 %v1297_v11, %v1296_v14 }
 0x154   : > { %v1144_v15 = vadd.f32 %v1142_v61, %v1138_v47  ;;  %v1156_v5 = vadd.f32 %v1154_v44, %v1150_v3  ;;  %v1166_v16 = vmul.f32 %v1164_v1, %v2838_v40  ;;  %1915 = vmatpush3.bf16.msra.mxu0 %v1914_v45  ;;  %v1298_v3 = vld [vmem:[#allocation7 + $0x40] sm:$0xff]  ;;  %v1208_v23 = vmul.f32 %v1206_v12, %v1202_v51 }
 0x155   : > { %v1141_v13 = vmul.f32 %v1140_v28, %v1131_v25  ;;  %v1153_v9 = vmul.f32 %v1152_v48, %v1131_v25  ;;  %1916 = vmatprep.subr.bf16.mxu0 %v2305_v7  ;;  %v2307_v28 = vmov 0.0   ;;  %v1201_v61 = vmul.f32 %v2740_v32, %v2812_v0 }
 0x156   : > { %v1180_v6 = vmul.f32 %v1178_v50, %v1166_v16  ;;  %v1192_v38 = vmul.f32 %v1190_v10, %v1166_v16  ;;  %v1162_v30 = vpop.permute.xlu0 %1161  ;;  %1869 = vmatprep.mubr.msk.f32.mxu0 %vm2306_vm2, %v2307_v28  ;;  %1904 = vmatprep.mubr.msk.f32.mxu1 %vm2306_vm2, %v2307_v28  ;;  %v1220_v45 = vmul.f32 %v1218_v57, %v1202_v51  ;;  %v1301_v16 = vld [vmem:[#allocation7 + $0x58] sm:$0xff] }
 0x157   : > { %v1143_v31 = vadd.f32 %v1141_v13, %v1137_v21  ;;  %v1155_v55 = vadd.f32 %v1153_v9, %v1149_v27  ;;  %v1165_v42 = vmul.f32 %v1162_v30, %v2854_v37  ;;  %v1174_v47 = vpop.permute.xlu1 %1173  ;;  %v1920_v1 = vpack.c.bf16 %v1299_v26, %v1298_v3 }
 0x158   : > { %v1182_v48 = vadd.f32 %v1180_v6, %v1144_v15  ;;  %v1194_v8 = vadd.f32 %v1192_v38, %v1156_v5  ;;  %v1176_v58 = vmul.f32 %v1174_v47, %v2838_v40  ;;  %1918 = vmatpush3.bf16.msra.mxu0 %v1917_v29  ;;  %v1300_v5 = vld [vmem:[#allocation7 + $0x50] sm:$0xff]  ;;  %v1219_v13 = vmul.f32 %v1218_v57, %v1201_v61 }
 0x159   : > { %v1179_v44 = vmul.f32 %v1178_v50, %v1165_v42  ;;  %v1191_v33 = vmul.f32 %v1190_v10, %v1165_v42  ;;  %1919 = vmatprep.subr.bf16.mxu0 %v2305_v7  ;;  %v1207_v10 = vmul.f32 %v1206_v12, %v1201_v61  ;;  %v1923_v30 = vpack.c.bf16 %v1301_v16, %v1300_v5  ;;  %v1303_v42 = vld [vmem:[#allocation7 + $0x68] sm:$0xff]  ;;  %v1304_v57 = vld [vmem:[#allocation7 + $0x70] sm:$0xff] }
 0x15a   : > { %v1186_v21 = vmul.f32 %v1184_v41, %v1176_v58  ;;  %v1198_v27 = vmul.f32 %v1196_v46, %v1176_v58  ;;  %v1172_v25 = vpop.permute.xlu0 %1171  ;;  %v1212_v61 = vstv %s1779_s9  ;;  %s3123_s9 = sld [smem:[#allocation2 + $0x10]]  ;;  %v888_v16 = vstv %s3091_s8  ;;  %s1786_s8 = sld [smem:[#allocation2 + $0x46]] }
 0x15b   : > { %v1181_v14 = vadd.f32 %v1179_v44, %v1143_v31  ;;  %v1193_v11 = vadd.f32 %v1191_v33, %v1155_v55  ;;  %v1175_v15 = vmul.f32 %v1172_v25, %v2854_v37  ;;  %v1302_v55 = vld [vmem:[#allocation7 + $0x60] sm:$0xff]  ;;  %v3081_v26 = vpop.permute.xlu1 %1231  ;;  %v1203_v44 = vmul.f32 %v2752_v35, %v2812_v0 }
 0x15c   : > { %v1188_v32 = vadd.f32 %v1186_v21, %v1182_v48  ;;  %v1200_v50 = vadd.f32 %v1198_v27, %v1194_v8  ;;  %1921 = vmatpush3.bf16.msra.mxu0 %v1920_v1  ;;  %v1926_v12 = vpack.c.bf16 %v1303_v42, %v1302_v55  ;;  %v827_v21 = vmul.f32 %v2946_v2, %v2774_v43 }
 0x15d   : > { %v1185_v51 = vmul.f32 %v1184_v41, %v1175_v15  ;;  %v1197_v9 = vmul.f32 %v1196_v46, %v1175_v15  ;;  %1922 = vmatprep.subr.bf16.mxu0 %v2305_v7  ;;  %v1305_v41 = vld [vmem:[#allocation7 + $0x78] sm:$0xff]  ;;  %v806_v27 = vstv %s3085_s13  ;;  %v820_v25 = vstv %s3087_s14  ;;  %s3138_s13 = sld [smem:[#allocation2 + $0x29]]  ;;  %s3140_s14 = sld [smem:[#allocation2 + $0x3b]] }
 0x15e   : > { %v3070_v6 = vadd.f32 %v1208_v23, %v1188_v32  ;;  %v3072_v38 = vadd.f32 %v1220_v45, %v1200_v50  ;;  %v1929_v46 = vpack.c.bf16 %v1305_v41, %v1304_v57  ;;  %v3083_v28 = vpop.permute.xlu0 %1229  ;;  %v1204_v23 = vmul.f32 %v2744_v34, %v2801_v54 }
 0x15f   : > { %v1187_v29 = vadd.f32 %v1185_v51, %v1181_v14  ;;  %v1199_v31 = vadd.f32 %v1197_v9, %v1193_v11  ;;  %v1224_v45 = vstv %s1781_s24  ;;  %v828_v11 = vstv %s3089_s15  ;;  %s3133_s24 = sld [smem:[#allocation2 + $0xe]]  ;;  %s3155_s15 = sld [smem:[#allocation2 + $0x17]] }
 0x160   : > { %1924 = vmatpush3.bf16.msra.mxu0 %v1923_v30  ;;  %v3107_v14 = vmul.f32 %v1212_v61, %v1204_v23  ;;  %v3113_v35 = vmul.f32 %v1224_v45, %v1204_v23  ;;  %v3115_v15 = vmul.f32 %v1212_v61, %v1203_v44  ;;  %v3117_v5 = vmul.f32 %v1224_v45, %v1203_v44 }
 0x161   : > { %v3075_v47 = vadd.f32 %v1207_v10, %v1187_v29  ;;  %v3077_v3 = vadd.f32 %v1219_v13, %v1199_v31  ;;  %1925 = vmatprep.subr.bf16.mxu0 %v2305_v7  ;;  %v826_v43 = vmul.f32 %v2950_v59, %v2766_v36  ;;  %v808_v32 = vmul.f32 %v806_v27, %v2907_v18 }
 0x162   : > { %v830_v10 = vmul.f32 %v828_v11, %v827_v21  ;;  %v852_v13 = vstv %s3093_s27  ;;  %v840_v9 = vstv %s3095_s30  ;;  %v807_v36 = vmul.f32 %v806_v27, %v2929_v20  ;;  %s1789_s27 = sld [smem:[#allocation2 + $0x49]]  ;;  %s1790_s30 = sld [smem:[#allocation2 + $0x4a]] }
 0x163   : > { %v829_v55 = vmul.f32 %v828_v11, %v826_v43  ;;  %v864_v42 = vstv %s3101_s6  ;;  %v887_v41 = vmul.f32 %v2954_v60, %v2801_v54  ;;  %v1242_v44 = vstv %s3110_s29  ;;  %s1792_s6 = sld [smem:[#allocation2 + $0x4b]]  ;;  %s1794_s29 = sld [smem:[#allocation2 + $0x4c]] }
 0x164   : > { %1927 = vmatpush3.bf16.msra.mxu0 %v1926_v12  ;;  %v1254_v45 = vstv %s3121_s11  ;;  %v880_v27 = vstv %s3123_s9  ;;  %s1791_s11 = sld [smem:[#allocation2 + $0x4d]]  ;;  %s1793_s9 = sld [smem:[#allocation2 + $0x4e]] }
 0x165   : > { %1928 = vmatprep.subr.bf16.mxu0 %v2305_v7 }
 0x168   : > { %1930 = vmatpush3.bf16.msra.mxu0 %v1929_v46 }
 0x1ab   : > { %v849_v48 = vpop.permute.xlu1 %848 }
 0x1ac   : > { %v851_v51 = vmul.f32 %v849_v48, %v2803_v56 }
 0x1ad   : > { %v847_v8 = vpop.permute.xlu0 %846 }
 0x1ae   : > { %v850_v18 = vmul.f32 %v847_v8, %v2810_v62  ;;  %v886_v62 = vmul.f32 %v2958_v63, %v2812_v0 }
 0x1af   : > { %v861_v58 = vpop.permute.xlu1 %860 }
 0x1b0   : > { %v853_v21 = vmul.f32 %v852_v13, %v850_v18  ;;  %v889_v63 = vmul.f32 %v888_v16, %v886_v62 }
 0x1b1   : > { %v859_v33 = vpop.permute.xlu0 %858 }
 0x1b2   : > { %v862_v46 = vmul.f32 %v859_v33, %v2832_v22  ;;  %v890_v22 = vmul.f32 %v888_v16, %v887_v41  ;;  %v1234_v33 = vmul.f32 %v3081_v26, %v2859_v24 }
 0x1b3   : > { %v817_v1 = vpop.permute.xlu1 %816 }
 0x1b4   : > { %v819_v34 = vmul.f32 %v817_v1, %v2785_v49  ;;  %v865_v1 = vmul.f32 %v864_v42, %v862_v46 }
 0x1b5   : > { %v815_v2 = vpop.permute.xlu0 %814 }
 0x1b6   : > { %v822_v50 = vmul.f32 %v820_v25, %v819_v34  ;;  %v818_v49 = vmul.f32 %v815_v2, %v2768_v39  ;;  %v863_v39 = vmul.f32 %v861_v58, %v2817_v4  ;;  %v854_v4 = vmul.f32 %v852_v13, %v851_v51 }
 0x1b7   : > { %v837_v30 = vpop.permute.xlu1 %836 }
 0x1b8   : > { %v824_v29 = vadd.f32 %v822_v50, %v808_v32  ;;  %v821_v59 = vmul.f32 %v820_v25, %v818_v49  ;;  %v839_v31 = vmul.f32 %v837_v30, %v2795_v52  ;;  %v866_v25 = vmul.f32 %v864_v42, %v863_v39 }
 0x1b9   : > { %v835_v12 = vpop.permute.xlu0 %834  ;;  %v1233_v32 = vmul.f32 %v3083_v28, %v2878_v17  ;;  %v900_v50 = vstv %s3133_s24  ;;  %v1228_v30 = vadd.f32 %v3113_v35, %v3072_v38  ;;  %v1215_v42 = vadd.f32 %v3115_v15, %v3075_v47  ;;  %s1795_s24 = sld [smem:[#allocation2 + $0x4f]] }
 0x1ba   : > { %v823_v56 = vadd.f32 %v821_v59, %v807_v36  ;;  %v832_v20 = vadd.f32 %v830_v10, %v824_v29  ;;  %v842_v57 = vmul.f32 %v840_v9, %v839_v31  ;;  %v838_v52 = vmul.f32 %v835_v12, %v2797_v53 }
 0x1bb   : > { %v877_v48 = vpop.permute.xlu1 %876  ;;  %v1260_v10 = vstv %s3140_s14  ;;  %v1244_v29 = vmul.f32 %v1242_v44, %v1234_v33  ;;  %v1256_v36 = vmul.f32 %v1254_v45, %v1234_v33  ;;  %v1227_v39 = vadd.f32 %v3117_v5, %v3077_v3  ;;  %s1712_s14 = sld [smem:[#allocation2 + $0x53]] }
 0x1bc   : > { %v844_v8 = vadd.f32 %v842_v57, %v832_v20  ;;  %v831_v58 = vadd.f32 %v829_v55, %v823_v56  ;;  %v841_v23 = vmul.f32 %v840_v9, %v838_v52  ;;  %v879_v61 = vmul.f32 %v877_v48, %v2838_v40 }
 0x1bd   : > { %v875_v53 = vpop.permute.xlu0 %874  ;;  %v1216_v9 = vadd.f32 %v3107_v14, %v3070_v6  ;;  %v1243_v12 = vmul.f32 %v1242_v44, %v1233_v32  ;;  %v1255_v6 = vmul.f32 %v1254_v45, %v1233_v32  ;;  %v906_v20 = vstv %s3155_s15  ;;  %s1711_s15 = sld [smem:[#allocation2 + $0x52]] }
 0x1be   : > { %v856_v54 = vadd.f32 %v854_v4, %v844_v8  ;;  %v843_v60 = vadd.f32 %v841_v23, %v831_v58  ;;  %v878_v0 = vmul.f32 %v875_v53, %v2854_v37  ;;  %v882_v43 = vmul.f32 %v880_v27, %v879_v61 }
 0x1bf   : > { %v897_v40 = vpop.permute.xlu1 %896  ;;  %v1248_v37 = vstv %s3138_s13  ;;  %v1246_v62 = vadd.f32 %v1244_v29, %v1216_v9  ;;  %v1258_v4 = vadd.f32 %v1256_v36, %v1228_v30  ;;  %v1245_v46 = vadd.f32 %v1243_v12, %v1215_v42  ;;  %v3197_v30 = vld [vmem:[%s2570_s10] sm:$0xff]  ;;  %v3201_v36 = vld [vmem:[%s2570_s10 + $0x8] sm:$0xff]  ;;  %s3620_s13 = sld [smem:[#allocation2 + $0x51]] }
 0x1c0   : > { %v855_v11 = vadd.f32 %v853_v21, %v843_v60  ;;  %v868_v34 = vadd.f32 %v866_v25, %v856_v54  ;;  %v899_v2 = vmul.f32 %v897_v40, %v2859_v24  ;;  %v881_v51 = vmul.f32 %v880_v27, %v878_v0  ;;  %3760 = vst [vmem:[#allocation24_spill] sm:$0xff] %v3197_v30 }
 0x1c1   : > { %v895_v49 = vpop.permute.xlu0 %894  ;;  %v1257_v48 = vadd.f32 %v1255_v6, %v1227_v39  ;;  %v307_v29 = vrot.slane %v3197_v30, 1  ;;  %v3218_v39 = vld [vmem:[%s2570_s10 + $0x10] sm:$0xff]  ;;  %v3222_v6 = vld [vmem:[%s2570_s10 + $0x18] sm:$0xff] }
 0x1c2   : > { %v884_v16 = vadd.f32 %v882_v43, %v868_v34  ;;  %v867_v13 = vadd.f32 %v865_v1, %v855_v11  ;;  %v898_v26 = vmul.f32 %v895_v49, %v2878_v17  ;;  %v902_v55 = vmul.f32 %v900_v50, %v899_v2  ;;  %3761 = vst [vmem:[#allocation25_spill] sm:$0xff] %v3222_v6 }
 0x1c3   : > { %v1238_v59 = vpop.permute.xlu1 %1237  ;;  %v462_v12 = vrot.slane %v3218_v39, 1 }
 0x1c4   : > { %v883_v28 = vadd.f32 %v881_v51, %v867_v13  ;;  %v892_v31 = vadd.f32 %v890_v22, %v884_v16  ;;  %v1240_v18 = vmul.f32 %v1238_v59, %v2859_v24  ;;  %v901_v35 = vmul.f32 %v900_v50, %v898_v26  ;;  %v1442_v16 = vld [vmem:[#allocation9 + $0x8] sm:$0xff]  ;;  %v1443_v51 = vld [vmem:[#allocation9 + $0x10] sm:$0xff]  ;;  %v1444_v26 = vld [vmem:[#allocation9 + $0x18] sm:$0xff] }
 0x1c5   : > { %v1236_v14 = vpop.permute.xlu0 %1235  ;;  %v1935_v9 = vpack.c.bf16 %v1444_v26, %v1443_v51  ;;  %v308_v59 = vrot.slane %v3201_v36, 1 }
 0x1c6   : > { %v904_v56 = vadd.f32 %v902_v55, %v892_v31  ;;  %v891_v38 = vadd.f32 %v889_v63, %v883_v28  ;;  %v1250_v57 = vmul.f32 %v1248_v37, %v1240_v18  ;;  %v1262_v52 = vmul.f32 %v1260_v10, %v1240_v18  ;;  %v1445_v55 = vld [vmem:[#allocation9 + $0x20] sm:$0xff]  ;;  %v1446_v18 = vld [vmem:[#allocation9 + $0x28] sm:$0xff] }
 0x1c7   : > { %v1239_v41 = vmul.f32 %v1236_v14, %v2878_v17  ;;  %v3206_v28 = vsel %vm311_vm0, %v308_v59, %v307_v29  ;;  %v3210_v31 = vsel %vm311_vm0, %v307_v29, %v308_v59  ;;  %v1938_v42 = vpack.c.bf16 %v1446_v18, %v1445_v55 }
 0x1c8   : > { %v903_v24 = vadd.f32 %v901_v35, %v891_v38  ;;  %v3175_v8 = vadd.f32 %v906_v20, %v904_v56  ;;  %v3179_v5 = vadd.f32 %v1250_v57, %v1246_v62  ;;  %v3181_v58 = vadd.f32 %v1262_v52, %v1258_v4  ;;  %316 = vrot.lane.b32.xlu1 %v3206_v28, %s2303_s16  ;;  %v1447_v35 = vld [vmem:[#allocation9 + $0x30] sm:$0xff]  ;;  %v1449_v57 = vld [vmem:[#allocation9 + $0x40] sm:$0xff]  ;;  %v3243_v4 = vld [vmem:[%s2570_s10 + $0x28] sm:$0xff] }
 0x1c9   : > { %v1249_v47 = vmul.f32 %v1248_v37, %v1239_v41  ;;  %v1261_v15 = vmul.f32 %v1260_v10, %v1239_v41  ;;  %v1441_v10 = vld [vmem:[#allocation9] sm:$0xff]  ;;  %314 = vrot.lane.b32.xlu0 %v3210_v31, %s2303_s16  ;;  %v463_v14 = vrot.slane %v3222_v6, 1  ;;  %v1394_v55 = vstv %s1789_s27 }
 0x1ca   : > { %3754 = vst [vmem:[#allocation18_spill] sm:$0xff] %v3175_v8  ;;  %v3177_v3 = vadd.f32 %v906_v20, %v903_v24  ;;  %3756 = vst [vmem:[#allocation20_spill] sm:$0xff] %v3179_v5  ;;  %v1932_v13 = vpack.c.bf16 %v1442_v16, %v1441_v10  ;;  %v1448_v20 = vld [vmem:[#allocation9 + $0x38] sm:$0xff]  ;;  %v3239_v41 = vld [vmem:[%s2570_s10 + $0x20] sm:$0xff]  ;;  %v574_v24 = vrot.slane %v3243_v4, 1  ;;  %s1787_s10 = sld [smem:[#allocation2 + $0x47]]  ;;  %v1377_v10 = vstv %s1786_s8 }
 0x1cb   : > { %3757 = vst [vmem:[#allocation21_spill] sm:$0xff] %v3181_v58  ;;  %v3183_v23 = vadd.f32 %v1249_v47, %v1245_v46  ;;  %v3185_v61 = vadd.f32 %v1261_v15, %v1257_v48  ;;  %v3227_v56 = vsel %vm311_vm0, %v463_v14, %v462_v12  ;;  %v3231_v38 = vsel %vm311_vm0, %v462_v12, %v463_v14  ;;  %v1450_v46 = vld [vmem:[#allocation9 + $0x48] sm:$0xff] }
 0x1cc   : > { %3755 = vst [vmem:[#allocation19_spill] sm:$0xff] %v3177_v3  ;;  %v1265_v17 = vadd.f32 %v3175_v8, %v3177_v3  ;;  %1933 = vmatpush3.bf16.msra.mxu1 %v1932_v13  ;;  %468 = vrot.lane.b32.xlu1 %v3227_v56, %s2303_s16  ;;  %v1941_v52 = vpack.c.bf16 %v1448_v20, %v1447_v35  ;;  %3762 = vst [vmem:[#allocation26_spill] sm:$0xff] %v3239_v41  ;;  %v573_v62 = vrot.slane %v3239_v41, 1 }
 0x1cd   : > { %3758 = vst [vmem:[#allocation22_spill] sm:$0xff] %v3183_v23  ;;  %3759 = vst [vmem:[#allocation23_spill] sm:$0xff] %v3185_v61  ;;  %v1272_v44 = vadd.f32 %v3179_v5, %v3183_v23  ;;  %v1279_v45 = vadd.f32 %v3181_v58, %v3185_v61  ;;  %1934 = vmatprep.subr.bf16.mxu1 %v2305_v7  ;;  %466 = vrot.lane.b32.xlu0 %v3231_v38, %s2303_s16  ;;  %v1398_v12 = vstv %s1790_s30 }
 0x1ce   : > { %v1266_v21 = vrot.slane %v1265_v17, 4  ;;  %v3248_v48 = vsel %vm311_vm0, %v574_v24, %v573_v62  ;;  %v3252_v47 = vsel %vm311_vm0, %v573_v62, %v574_v24  ;;  %v1944_v15 = vpack.c.bf16 %v1450_v46, %v1449_v57 }
 0x1cf   : > { %v1273_v27 = vrot.slane %v1272_v44, 4  ;;  %v1280_v53 = vrot.slane %v1279_v45, 4  ;;  %v1410_v14 = vstv %s1792_s6  ;;  %v1422_v35 = vstv %s1794_s29  ;;  %s2308_s29 = smov [#allocation12]  }
 0x1d0   : > { %v1267_v25 = vadd.f32 %v1266_v21, %v1265_v17  ;;  %1936 = vmatpush3.bf16.msra.mxu1 %v1935_v9  ;;  %579 = vrot.lane.b32.xlu1 %v3248_v48, %s2303_s16  ;;  %v1451_v17 = vld [vmem:[#allocation9 + $0x50] sm:$0xff]  ;;  %v1453_v21 = vld [vmem:[#allocation9 + $0x60] sm:$0xff]  ;;  %v1401_v57 = vstv %s1791_s11  ;;  %v1425_v62 = vstv %s1795_s24  ;;  %s2220_s11 = sshll.u32 %s2308_s29, 4  ;;  %s2221_s11 = int_to_ptr.vmem [resolvable:$false] %s2220_s11 }
 0x1d1   : > { %v1274_v54 = vadd.f32 %v1273_v27, %v1272_v44  ;;  %v1281_v60 = vadd.f32 %v1280_v53, %v1279_v45  ;;  %1937 = vmatprep.subr.bf16.mxu1 %v2305_v7  ;;  %v1452_v44 = vld [vmem:[#allocation9 + $0x58] sm:$0xff]  ;;  %577 = vrot.lane.b32.xlu0 %v3252_v47, %s2303_s16  ;;  %v1454_v27 = vld [vmem:[#allocation9 + $0x68] sm:$0xff] }
 0x1d2   : > { %v1268_v0 = vrot.slane %v1267_v25, 2  ;;  %v1947_v45 = vpack.c.bf16 %v1452_v44, %v1451_v17  ;;  %v1950_v53 = vpack.c.bf16 %v1454_v27, %v1453_v21 }
 0x1d3   : > { %v1275_v22 = vrot.slane %v1274_v54, 2  ;;  %v1282_v63 = vrot.slane %v1281_v60, 2 }
 0x1d4   : > { %v1269_v33 = vadd.f32 %v1268_v0, %v1267_v25  ;;  %1939 = vmatpush3.bf16.msra.mxu1 %v1938_v42  ;;  %346 = vrot.lane.b32.xlu1 %v3206_v28, %s2304_s7  ;;  %v1455_v25 = vld [vmem:[#allocation9 + $0x70] sm:$0xff]  ;;  %v396_v0 = vrot.slane %v3201_v36, 7 }
 0x1d5   : > { %v1276_v1 = vadd.f32 %v1275_v22, %v1274_v54  ;;  %v1283_v40 = vadd.f32 %v1282_v63, %v1281_v60  ;;  %1940 = vmatprep.subr.bf16.mxu1 %v2305_v7  ;;  %344 = vrot.lane.b32.xlu0 %v3210_v31, %s2304_s7  ;;  %v1456_v54 = vld [vmem:[#allocation9 + $0x78] sm:$0xff]  ;;  %v522_v63 = vrot.slane %v3218_v39, 7 }
 0x1d6   : > { %v1270_v11 = vrot.slane %v1269_v33, 1  ;;  %v1953_v60 = vpack.c.bf16 %v1456_v54, %v1455_v25 }
 0x1d7   : > { %v1277_v34 = vrot.slane %v1276_v1, 1  ;;  %v1284_v43 = vrot.slane %v1283_v40, 1 }
 0x1d8   : > { %v1271_v2 = vadd.f32 %v1270_v11, %v1269_v33  ;;  %1942 = vmatpush3.bf16.msra.mxu1 %v1941_v52  ;;  %488 = vrot.lane.b32.xlu1 %v3227_v56, %s2304_s7  ;;  %v523_v33 = vrot.slane %v3222_v6, 7  ;;  %v633_v11 = vrot.slane %v3239_v41, 7  ;;  %v1413_v52 = vstv %s1793_s9  ;;  %s2222_s9 = scalar_lea.vmem %s2221_s11, 1536 }
 0x1d9   : > { %v1278_v32 = vadd.f32 %v1277_v34, %v1276_v1  ;;  %v1285_v50 = vadd.f32 %v1284_v43, %v1283_v40  ;;  %1943 = vmatprep.subr.bf16.mxu1 %v2305_v7  ;;  %486 = vrot.lane.b32.xlu0 %v3231_v38, %s2304_s7  ;;  %v634_v34 = vrot.slane %v3243_v4, 7 }
 0x1da   : > { %v3316_v40 = vsel %vm397_vm1, %v522_v63, %v523_v33  ;;  %v3322_v43 = vsel %vm397_vm1, %v523_v33, %v522_v63 }
 0x1db   : > { %v1287_v49 = vsel %vm1286_vm3, %v1271_v2, %v1278_v32  ;;  %v3330_v2 = vsel %vm397_vm1, %v633_v11, %v634_v34  ;;  %v3334_v32 = vsel %vm397_vm1, %v634_v34, %v633_v11 }
 0x1dc   : > { %v1289_v37 = vsel %vm1288_vm4, %v1287_v49, %v1285_v50  ;;  %1945 = vmatpush3.bf16.msra.mxu1 %v1944_v15  ;;  %599 = vrot.lane.b32.xlu1 %v3248_v48, %s2304_s7  ;;  %v1380_v50 = vstv %s1787_s10  ;;  %s1958_s10 = smul.u32 768, %s2362_s22 }
 0x1dd   : > { %1870 = vmatmul.mubr.f32.vlgmr.msra.gmra.mrb[0].mxu0 %v1289_v37  ;;  %1946 = vmatprep.subr.bf16.mxu1 %v2305_v7 }
 0x1de   : > { %597 = vrot.lane.b32.xlu0 %v3252_v47, %s2304_s7  ;;  %s3672_s30 = scalar_lea.hbm %s3723_s5, %s1958_s10 }
 0x1e0   : > { %1948 = vmatpush3.bf16.msra.mxu1 %v1947_v45  ;;  %363 = vrot.lane.b32.xlu1 %v3201_v36, %s2303_s16 }
 0x1e1   : > { %1949 = vmatprep.subr.bf16.mxu1 %v2305_v7 }
 0x1e2   : > { %361 = vrot.lane.b32.xlu0 %v3197_v30, %s2303_s16 }
 0x1e4   : > { %1951 = vmatpush3.bf16.msra.mxu1 %v1950_v53  ;;  %500 = vrot.lane.b32.xlu1 %v3222_v6, %s2303_s16 }
 0x1e5   : > { %1952 = vmatprep.subr.bf16.mxu1 %v2305_v7  ;;  %v395_v7 = vrot.slane %v3197_v30, 7 }
 0x1e6   : > { %498 = vrot.lane.b32.xlu0 %v3218_v39, %s2303_s16 }
 0x1e7   : > { %v3302_v22 = vsel %vm397_vm1, %v395_v7, %v396_v0  ;;  %v3308_v1 = vsel %vm397_vm1, %v396_v0, %v395_v7 }
 0x1e8   : > { %1954 = vmatpush3.bf16.msra.mxu1 %v1953_v60  ;;  %611 = vrot.lane.b32.xlu1 %v3243_v4, %s2303_s16 }
 0x1ea   : > { %609 = vrot.lane.b32.xlu0 %v3239_v41, %s2303_s16 }
 0x1ec   : > { %380 = vrot.lane.b32.xlu1 %v3201_v36, %s2304_s7 }
 0x1ee   : > { %378 = vrot.lane.b32.xlu0 %v3197_v30, %s2304_s7 }
 0x1f0   : > { %512 = vrot.lane.b32.xlu1 %v3222_v6, %s2304_s7 }
 0x1f2   : > { %510 = vrot.lane.b32.xlu0 %v3218_v39, %s2304_s7 }
 0x1f4   : > { %623 = vrot.lane.b32.xlu1 %v3243_v4, %s2304_s7 }
 0x1f6   : > { %621 = vrot.lane.b32.xlu0 %v3239_v41, %s2304_s7 }
 0x1f8   : > { %402 = vrot.lane.b32.xlu1 %v3302_v22, %s2303_s16 }
 0x1fa   : > { %400 = vrot.lane.b32.xlu0 %v3308_v1, %s2303_s16 }
 0x1fc   : > { %528 = vrot.lane.b32.xlu1 %v3316_v40, %s2303_s16 }
 0x1fe   : > { %526 = vrot.lane.b32.xlu0 %v3322_v43, %s2303_s16 }
 0x200   : > { %639 = vrot.lane.b32.xlu1 %v3330_v2, %s2303_s16 }
 0x202   : > { %637 = vrot.lane.b32.xlu0 %v3334_v32, %s2303_s16  ;;  %s1788_s16 = sld [smem:[#allocation2 + $0x48]] }
 0x204   : > { %432 = vrot.lane.b32.xlu1 %v3302_v22, %s2304_s7 }
 0x206   : > { %430 = vrot.lane.b32.xlu0 %v3308_v1, %s2304_s7 }
 0x208   : > { %548 = vrot.lane.b32.xlu1 %v3316_v40, %s2304_s7  ;;  %v1387_v49 = vstv %s1788_s16  ;;  %s298_s16 = scalar_lea.vmem [#allocation12], %s1957_s17  ;;  %s1567_s17 = scalar_lea.sflag [#allocation4], %s2564_s26 }
 0x209   : > { %s1580_s8 = sshll.u32 %s298_s16, 4  ;;  %s3674_s8 = int_to_ptr.vmem [resolvable:$true] %s1580_s8 }
 0x20a   : > { %546 = vrot.lane.b32.xlu0 %v3322_v43, %s2304_s7  ;;  %s2216_s6 = scalar_lea.vmem %s3674_s8, 768  ;;  %p2223_p8 = scmp.lt.s32.totalorder %s3674_s8, %s2221_s11 }
 0x20b   : > { %p2217_p10 = scmp.ne.s32.totalorder %s3674_s8, %s2216_s6  ;;  %p2224_p13 = scmp.lt.s32.totalorder %s2222_s9, %s2216_s6 }
 0x20c   : > { %659 = vrot.lane.b32.xlu1 %v3330_v2, %s2304_s7 }
 0x20d   : > { %p2218_p2 = pnand %p2217_p10, %p2497_p3  ;;  %p2225_p1 = por %p2224_p13, %p2223_p8 }
 0x20e   : > { %657 = vrot.lane.b32.xlu0 %v3334_v32, %s2304_s7  ;;  %s3608_s7 = sld [smem:[#allocation2 + $0x50]] }
 0x20f   : > { %p2219_p6 = pneg %p2218_p2 }
 0x211   : > { %p2226_p4 = pnand %p2225_p1, %p2219_p6 }
 0x23a   : > { %v317_v21 = vpop.permute.xlu1 %316 }
 0x23b   : > { %v315_v27 = vpop.permute.xlu0 %314 }
 0x23e   : > { %v469_v63 = vpop.permute.xlu1 %468 }
 0x23f   : > { %v3352_v33 = vpop.permute.xlu0 %466 }
 0x242   : > { %v3354_v11 = vpop.permute.xlu1 %579 }
 0x243   : > { %v3356_v34 = vpop.permute.xlu0 %577 }
 0x2b0   : > { %v1372_v37 = vpop.f32.mrb[0].mxu0 }
 0x2b1   : > { %v1381_v16 = vmul.f32 %v1380_v50, %v1372_v37  ;;  %v1388_v13 = vmul.f32 %v1387_v49, %v1372_v37  ;;  %v1871_v51 = vpop.f32.mrb[1].mxu0  ;;  %v1378_v26 = vmul.f32 %v1377_v10, %v1372_v37  ;;  %v3358_v50 = vpop.permute.xlu1 %346  ;;  %v2073_v37 = vld [vmem:[#allocation6 + $0x18] sm:$0xff] }
 0x2b2   : > { %v3360_v49 = vpop.permute.xlu0 %344  ;;  %v3363_v10 = vmul.f32 %v2073_v37, %v3206_v28  ;;  %vm332_vm5 = vcmp.gt.f32.partialorder %v2073_v37, 0.0 }
 0x2b3   : > { %v1383_v9 = vrot.slane %v1381_v16, 1  ;;  %v1390_v59 = vrot.slane %v1388_v13, 2  ;;  %v2074_v13 = vld [vmem:[#allocation6 + $0x10] sm:$0xff] }
 0x2b4   : > { %v3366_v51 = vmul.f32 %v2074_v13, %v3210_v31  ;;  %vm331_vm8 = vcmp.gt.f32.partialorder %v2074_v13, 0.0 }
 0x2b5   : > { %v1385_v29 = vadd.f32 %v1383_v9, %v1378_v26  ;;  %v3369_v26 = vmul.f32 %v2073_v37, %v3227_v56  ;;  %v3372_v9 = vmul.f32 %v2074_v13, %v3231_v38 }
 0x2b7   : > { %v1392_v18 = vadd.f32 %v1390_v59, %v1385_v29  ;;  %v3375_v59 = vmul.f32 %v2073_v37, %v3248_v48 }
 0x2b9   : > { %v1395_v42 = vadd.f32 %v1394_v55, %v1392_v18  ;;  %v3378_v55 = vmul.f32 %v2074_v13, %v3252_v47  ;;  %v2075_v18 = vld [vmem:[#allocation6 + $0x8] sm:$0xff] }
 0x2ba   : > { %vm319_vm6 = vcmp.gt.f32.partialorder %v2075_v18, 0.0  ;;  %v586_v61 = vmul.f32 %v2075_v18, %v3354_v11 }
 0x2bb   : > { %v1396_v20 = vmax.f32 %v1395_v42, 0.0  ;;  %v2076_v42 = vld [vmem:[#allocation6] sm:$0xff] }
 0x2bc   : > { %vm318_vm7 = vcmp.gt.f32.partialorder %v2076_v42, 0.0  ;;  %v585_v5 = vmul.f32 %v2076_v42, %v3356_v34 }
 0x2bd   : > { %v1399_v24 = vmul.f32 %v1398_v12, %v1396_v20  ;;  %v1411_v46 = vmul.f32 %v1410_v14, %v1396_v20  ;;  %v1423_v15 = vmul.f32 %v1422_v35, %v1396_v20  ;;  %v3380_v12 = vpop.permute.xlu1 %488 }
 0x2bf   : > { %v1402_v17 = vadd.f32 %v1401_v57, %v1399_v24  ;;  %v1414_v44 = vadd.f32 %v1413_v52, %v1411_v46  ;;  %v1426_v45 = vadd.f32 %v1425_v62, %v1423_v15  ;;  %v2077_v57 = vld [vmem:[#allocation6 + $0x68] sm:$0xff]  ;;  %v3385_v62 = vld [vmem:[#allocation6 + $0x60] sm:$0xff]  ;;  %v3391_v46 = vpop.permute.xlu0 %486 }
 0x2c0   : > { %v3383_v52 = vmul.f32 %v2077_v57, %v3302_v22  ;;  %v3389_v24 = vmul.f32 %v3385_v62, %v3308_v1  ;;  %vm418_vm9 = vcmp.gt.f32.partialorder %v2077_v57, 0.0  ;;  %vm417_vm11 = vcmp.gt.f32.partialorder %v3385_v62, 0.0 }
 0x2c1   : > { %v1403_v53 = vsub.f32 0.0, %v1402_v17  ;;  %v1415_v25 = vsub.f32 0.0, %v1414_v44  ;;  %v1427_v54 = vsub.f32 0.0, %v1426_v45  ;;  %v3394_v17 = vmul.f32 %v2077_v57, %v3316_v40 }
 0x2c2   : > { %v3398_v44 = vmul.f32 %v3385_v62, %v3322_v43  ;;  %v334_v45 = vsel %vm332_vm5, %v3206_v28, -inf  ;;  %v320_v28 = vsel %vm318_vm7, %v315_v27, -inf  ;;  %v3431_v58 = vsel %vm418_vm9, %v3302_v22, -inf }
 0x2c3   : > { %v1404_v60 = vmul.f32 1.442695, %v1403_v53  ;;  %v1416_v7 = vmul.f32 1.442695, %v1415_v25  ;;  %v1428_v0 = vmul.f32 1.442695, %v1427_v54  ;;  %v325_v54 = vmul.f32 %v2075_v18, %v317_v21 }
 0x2c4   : > { %v479_v53 = vsel %vm332_vm5, %v3227_v56, -inf  ;;  %v321_v25 = vsel %vm319_vm6, %v317_v21, -inf  ;;  %v3415_v56 = vpop.permute.xlu0 %597  ;;  %v471_v21 = vsel %vm319_vm6, %v469_v63, -inf }
 0x2c5   : > { %2055 = vpow2.f32 %v1404_v60  ;;  %v3405_v60 = vld [vmem:[#allocation6 + $0x28] sm:$0xff]  ;;  %v473_v13 = vmax.f32 %v3222_v6, %v471_v21  ;;  %v3470_v21 = vld [vmem:[#allocation6 + $0x30] sm:$0xff] }
 0x2c6   : > { %2057 = vpow2.f32 %v1416_v7  ;;  %vm349_vm10 = vcmp.gt.f32.partialorder %v3405_v60, 0.0  ;;  %v3408_v7 = vpop.permute.xlu1 %599  ;;  %vm365_vm14 = vcmp.gt.f32.partialorder %v3470_v21, 0.0 }
 0x2c7   : > { %2059 = vpow2.f32 %v1428_v0  ;;  %v324_v0 = vmul.f32 %v2076_v42, %v315_v27  ;;  %v323_v27 = vmax.f32 %v3201_v36, %v321_v25 }
 0x2c9   : > { %v326_v22 = vadd.f32 %v3197_v30, %v324_v0  ;;  %v581_v0 = vsel %vm318_vm7, %v3356_v34, -inf }
 0x2ca   : > { %v3441_v37 = vpop.permute.xlu1 %363 }
 0x2cb   : > { %v339_v3 = vadd.f32 %v3366_v51, %v326_v22  ;;  %v351_v51 = vsel %vm349_vm10, %v3358_v50, -inf }
 0x2cf   : > { %v2056_v16 = vpop.eup %2055 }
 0x2d0   : > { %v2058_v29 = vpop.eup %2057  ;;  %v1406_v35 = vadd.f32 1.0, %v2056_v16  ;;  %v475_v16 = vmul.f32 %v2075_v18, %v469_v63  ;;  %v322_v63 = vmax.f32 %v3197_v30, %v320_v28  ;;  %v582_v28 = vsel %vm319_vm6, %v3354_v11, -inf }
 0x2d1   : > { %v2060_v14 = vpop.eup %2059  ;;  %v1418_v20 = vadd.f32 1.0, %v2058_v29  ;;  %v3412_v29 = vld [vmem:[#allocation6 + $0x20] sm:$0xff]  ;;  %v3475_v11 = vsel %vm418_vm9, %v3330_v2, -inf  ;;  %v584_v8 = vmax.f32 %v3243_v4, %v582_v28  ;;  %v491_v28 = vsel %vm349_vm10, %v3380_v12, -inf }
 0x2d2   : > { %v1430_v15 = vadd.f32 1.0, %v2060_v14  ;;  %vm348_vm12 = vcmp.gt.f32.partialorder %v3412_v29, 0.0  ;;  %v333_v14 = vsel %vm331_vm8, %v3210_v31, -inf  ;;  %v3436_v31 = vsel %vm417_vm11, %v3308_v1, -inf }
 0x2d3   : > { %2061 = vrcp.f32 %v1418_v20  ;;  %v478_v20 = vsel %vm331_vm8, %v3231_v38, -inf  ;;  %v327_v38 = vadd.f32 %v3201_v36, %v325_v54  ;;  %v477_v25 = vadd.f32 %v3222_v6, %v475_v16  ;;  %v3452_v54 = vpop.permute.xlu0 %361 }
 0x2d4   : > { %2063 = vrcp.f32 %v1430_v15  ;;  %v3427_v15 = vsel %vm331_vm8, %v3252_v47, -inf  ;;  %v3445_v47 = vsel %vm418_vm9, %v3316_v40, -inf  ;;  %v470_v1 = vsel %vm318_vm7, %v3352_v33, -inf }
 0x2d5   : > { %2065 = vrcp.f32 %v1406_v35  ;;  %v590_v35 = vsel %vm332_vm5, %v3248_v48, -inf  ;;  %v474_v48 = vmul.f32 %v2076_v42, %v3352_v33  ;;  %v3461_v40 = vsel %vm417_vm11, %v3322_v43, -inf  ;;  %v3467_v33 = vld [vmem:[#allocation6 + $0x38] sm:$0xff] }
 0x2d6   : > { %v3465_v16 = vmax.f32 %v323_v27, %v334_v45  ;;  %vm366_vm13 = vcmp.gt.f32.partialorder %v3467_v33, 0.0  ;;  %v3478_v43 = vmul.f32 %v2077_v57, %v3330_v2  ;;  %v472_v18 = vmax.f32 %v3218_v39, %v470_v1  ;;  %v501_v27 = vpop.permute.xlu1 %500 }
 0x2d7   : > { %v476_v34 = vadd.f32 %v3218_v39, %v474_v48  ;;  %v340_v42 = vadd.f32 %v3363_v10, %v327_v38  ;;  %v3483_v45 = vmax.f32 %v322_v63, %v333_v14  ;;  %v3487_v6 = vmax.f32 %v473_v13, %v479_v53  ;;  %v3490_v2 = vpop.permute.xlu0 %498 }
 0x2d8   : > { %v485_v30 = vadd.f32 %v3369_v26, %v477_v25  ;;  %v588_v48 = vadd.f32 %v3243_v4, %v586_v61  ;;  %v583_v10 = vmax.f32 %v3239_v41, %v581_v0  ;;  %v587_v14 = vadd.f32 %v3239_v41, %v585_v5  ;;  %v3509_v25 = vld [vmem:[#allocation6 + $0x48] sm:$0xff] }
 0x2d9   : > { %v355_v53 = vmul.f32 %v3405_v60, %v3358_v50  ;;  %v354_v26 = vmul.f32 %v3412_v29, %v3360_v49  ;;  %v350_v61 = vsel %vm348_vm12, %v3360_v49, -inf  ;;  %v3506_v22 = vmax.f32 %v472_v18, %v478_v20  ;;  %v3520_v20 = vld [vmem:[#allocation6 + $0x40] sm:$0xff] }
 0x2da   : > { %v484_v5 = vadd.f32 %v3372_v9, %v476_v34  ;;  %v612_v13 = vpop.permute.xlu1 %611  ;;  %vm383_vm15 = vcmp.gt.f32.partialorder %v3509_v25, 0.0  ;;  %v495_v0 = vmul.f32 %v3405_v60, %v3380_v12  ;;  %vm382_vm0 = vcmp.gt.f32.partialorder %v3520_v20, 0.0 }
 0x2db   : > { %v610_v49 = vpop.permute.xlu0 %609  ;;  %v353_v9 = vmax.f32 %v3465_v16, %v351_v51  ;;  %v596_v18 = vadd.f32 %v3375_v59, %v588_v48  ;;  %v591_v34 = vmax.f32 %v583_v10, %v3427_v15  ;;  %v356_v12 = vadd.f32 %v354_v26, %v339_v3  ;;  %v3555_v48 = vld [vmem:[#allocation6 + $0x58] sm:$0xff] }
 0x2dc   : > { %v606_v59 = vmul.f32 %v3405_v60, %v3408_v7  ;;  %v605_v15 = vmul.f32 %v3412_v29, %v3415_v56  ;;  %v497_v16 = vadd.f32 %v495_v0, %v485_v30  ;;  %v602_v3 = vsel %vm349_vm10, %v3408_v7, -inf }
 0x2dd   : > { %v2062_v23 = vpop.eup %2061  ;;  %v367_v30 = vsel %vm365_vm14, %v3452_v54, -inf  ;;  %v371_v60 = vmul.f32 %v3470_v21, %v3452_v54  ;;  %v507_v7 = vmul.f32 %v3467_v33, %v501_v27  ;;  %vm405_vm1 = vcmp.gt.f32.partialorder %v3555_v48, 0.0 }
 0x2de   : > { %v2064_v57 = vpop.eup %2063  ;;  %v1434_v1 = vrot.slane %v2062_v23, 7  ;;  %v503_v10 = vsel %vm366_vm13, %v501_v27, -inf  ;;  %v3567_v54 = vsel %vm417_vm11, %v3334_v32, -inf  ;;  %v608_v51 = vadd.f32 %v606_v59, %v596_v18 }
 0x2df   : > { %v2066_v38 = vpop.eup %2065  ;;  %v1437_v63 = vrot.slane %v2064_v57, 6  ;;  %v3518_v57 = vmax.f32 %v584_v8, %v590_v35  ;;  %v494_v8 = vmul.f32 %v3412_v29, %v3391_v46  ;;  %v493_v35 = vmax.f32 %v3487_v6, %v491_v28 }
 0x2e0   : > { %v1439_v23 = vsel %vm1286_vm3, %v2066_v38, %v1434_v1  ;;  %v595_v1 = vadd.f32 %v3378_v55, %v587_v14  ;;  %v357_v38 = vadd.f32 %v355_v53, %v340_v42  ;;  %v381_v55 = vpop.permute.xlu1 %380  ;;  %v601_v6 = vsel %vm348_vm12, %v3415_v56, -inf }
 0x2e1   : > { %v1440_v50 = vsel %vm1288_vm4, %v1439_v23, %v1437_v63  ;;  %v352_v63 = vmax.f32 %v3483_v45, %v350_v61  ;;  %v490_v23 = vsel %vm348_vm12, %v3391_v46, -inf  ;;  %v372_v42 = vmul.f32 %v3467_v33, %v3441_v37  ;;  %v379_v46 = vpop.permute.xlu0 %378 }
 0x2e2   : > { %1905 = vmatmul.mubr.f32.vlgmr.msra.gmra.mrb[0].mxu1 %v1440_v50  ;;  %v368_v45 = vsel %vm366_vm13, %v3441_v37, -inf  ;;  %v492_v29 = vmax.f32 %v3506_v22, %v490_v23  ;;  %v496_v56 = vadd.f32 %v494_v8, %v484_v5  ;;  %v3561_v37 = vld [vmem:[#allocation6 + $0x50] sm:$0xff]  ;;  %v604_v14 = vmax.f32 %v3518_v57, %v602_v3 }
 0x2e3   : > { %vm404_vm2 = vcmp.gt.f32.partialorder %v3561_v37, 0.0  ;;  %v603_v53 = vmax.f32 %v591_v34, %v601_v6  ;;  %v607_v26 = vadd.f32 %v605_v15, %v595_v1  ;;  %v370_v22 = vmax.f32 %v353_v9, %v368_v45 }
 0x2e4   : > { %v513_v61 = vpop.permute.xlu1 %512  ;;  %v374_v5 = vadd.f32 %v372_v42, %v357_v38  ;;  %v369_v50 = vmax.f32 %v352_v63, %v367_v30  ;;  %v506_v27 = vmul.f32 %v3470_v21, %v3490_v2  ;;  %v373_v0 = vadd.f32 %v371_v60, %v356_v12 }
 0x2e5   : > { %v511_v28 = vpop.permute.xlu0 %510  ;;  %v505_v8 = vmax.f32 %v493_v35, %v503_v10  ;;  %v509_v23 = vadd.f32 %v507_v7, %v497_v16  ;;  %v502_v41 = vsel %vm365_vm14, %v3490_v2, -inf  ;;  %v614_v57 = vsel %vm366_vm13, %v612_v13, -inf }
 0x2e6   : > { %v618_v18 = vmul.f32 %v3467_v33, %v612_v13  ;;  %v385_v9 = vsel %vm383_vm15, %v381_v55, -inf  ;;  %v389_v34 = vmul.f32 %v3509_v25, %v381_v55  ;;  %v613_v1 = vsel %vm365_vm14, %v610_v49, -inf }
 0x2e7   : > { %v617_v38 = vmul.f32 %v3470_v21, %v610_v49  ;;  %v384_v63 = vsel %vm382_vm0, %v379_v46, -inf  ;;  %v388_v2 = vmul.f32 %v3520_v20, %v379_v46  ;;  %v504_v35 = vmax.f32 %v492_v29, %v502_v41 }
 0x2e8   : > { %v624_v12 = vpop.permute.xlu1 %623  ;;  %v508_v59 = vadd.f32 %v506_v27, %v496_v56  ;;  %v515_v33 = vsel %vm383_vm15, %v513_v61, -inf  ;;  %v519_v13 = vmul.f32 %v3509_v25, %v513_v61  ;;  %v616_v55 = vmax.f32 %v604_v14, %v614_v57 }
 0x2e9   : > { %v622_v15 = vpop.permute.xlu0 %621  ;;  %v387_v16 = vmax.f32 %v370_v22, %v385_v9  ;;  %v514_v3 = vsel %vm382_vm0, %v511_v28, -inf  ;;  %v518_v21 = vmul.f32 %v3520_v20, %v511_v28  ;;  %v620_v49 = vadd.f32 %v618_v18, %v608_v51 }
 0x2ea   : > { %v615_v6 = vmax.f32 %v603_v53, %v613_v1  ;;  %v391_v42 = vadd.f32 %v389_v34, %v374_v5  ;;  %v386_v46 = vmax.f32 %v369_v50, %v384_v63  ;;  %v619_v45 = vadd.f32 %v617_v38, %v607_v26  ;;  %v3601_v5 = vld [vmem:[#allocation6 + $0x78] sm:$0xff] }
 0x2eb   : > { %v390_v41 = vadd.f32 %v388_v2, %v373_v0  ;;  %v517_v30 = vmax.f32 %v505_v8, %v515_v33  ;;  %v626_v60 = vsel %vm383_vm15, %v624_v12, -inf  ;;  %v521_v29 = vadd.f32 %v519_v13, %v509_v23 }
 0x2ec   : > { %v403_v7 = vpop.permute.xlu1 %402  ;;  %v516_v56 = vmax.f32 %v504_v35, %v514_v3  ;;  %v520_v22 = vadd.f32 %v518_v21, %v508_v59  ;;  %vm435_vm3 = vcmp.gt.f32.partialorder %v3601_v5, 0.0  ;;  %v628_v50 = vmax.f32 %v616_v55, %v626_v60 }
 0x2ed   : > { %v407_v10 = vsel %vm405_vm1, %v403_v7, -inf  ;;  %v411_v14 = vmul.f32 %v3555_v48, %v403_v7  ;;  %v401_v61 = vpop.permute.xlu0 %400  ;;  %v630_v27 = vmul.f32 %v3509_v25, %v624_v12  ;;  %v625_v8 = vsel %vm382_vm0, %v622_v15, -inf }
 0x2ee   : > { %v409_v51 = vmax.f32 %v387_v16, %v407_v10  ;;  %v406_v53 = vsel %vm404_vm2, %v401_v61, -inf  ;;  %v410_v26 = vmul.f32 %v3561_v37, %v401_v61  ;;  %v629_v23 = vmul.f32 %v3520_v20, %v622_v15 }
 0x2ef   : > { %v413_v28 = vadd.f32 %v411_v14, %v391_v42  ;;  %v408_v0 = vmax.f32 %v386_v46, %v406_v53  ;;  %v632_v59 = vadd.f32 %v630_v27, %v620_v49  ;;  %v444_v60 = vstv %s3608_s7 }
 0x2f0   : > { %v412_v57 = vadd.f32 %v410_v26, %v390_v41  ;;  %v529_v18 = vpop.permute.xlu1 %528  ;;  %v422_v9 = vmax.f32 %v409_v51, %v3431_v58  ;;  %v627_v58 = vmax.f32 %v615_v6, %v625_v8  ;;  %v631_v15 = vadd.f32 %v629_v23, %v619_v45  ;;  %v2088_v41 = vld [vmem:[#allocation6 + $0x70] sm:$0xff] }
 0x2f1   : > { %v531_v34 = vsel %vm405_vm1, %v529_v18, -inf  ;;  %v535_v1 = vmul.f32 %v3555_v48, %v529_v18  ;;  %v527_v38 = vpop.permute.xlu0 %526  ;;  %v426_v25 = vadd.f32 %v3383_v52, %v413_v28  ;;  %v421_v63 = vmax.f32 %v408_v0, %v3436_v31 }
 0x2f2   : > { %v533_v2 = vmax.f32 %v517_v30, %v531_v34  ;;  %v530_v20 = vsel %vm404_vm2, %v527_v38, -inf  ;;  %v534_v12 = vmul.f32 %v3561_v37, %v527_v38  ;;  %v425_v35 = vadd.f32 %v3389_v24, %v412_v57 }
 0x2f3   : > { %v537_v33 = vadd.f32 %v535_v1, %v521_v29  ;;  %v532_v13 = vmax.f32 %v516_v56, %v530_v20  ;;  %v653_v31 = vmul.f32 %v3385_v62, %v3334_v32  ;;  %vm434_vm4 = vcmp.gt.f32.partialorder %v2088_v41, 0.0 }
 0x2f4   : > { %v536_v55 = vadd.f32 %v534_v12, %v520_v22  ;;  %v640_v16 = vpop.permute.xlu1 %639  ;;  %v541_v52 = vmax.f32 %v533_v2, %v3445_v47  ;;  %v449_v26 = vstv %s3620_s13 }
 0x2f5   : > { %v642_v3 = vsel %vm405_vm1, %v640_v16, -inf  ;;  %v646_v24 = vmul.f32 %v3555_v48, %v640_v16  ;;  %v638_v21 = vpop.permute.xlu0 %637  ;;  %v545_v49 = vadd.f32 %v3394_v17, %v537_v33  ;;  %v540_v6 = vmax.f32 %v532_v13, %v3461_v40 }
 0x2f6   : > { %v644_v42 = vmax.f32 %v628_v50, %v642_v3  ;;  %v641_v46 = vsel %vm404_vm2, %v638_v21, -inf  ;;  %v645_v47 = vmul.f32 %v3561_v37, %v638_v21  ;;  %v544_v45 = vadd.f32 %v3398_v44, %v536_v55 }
 0x2f7   : > { %v648_v32 = vadd.f32 %v646_v24, %v632_v59  ;;  %v643_v62 = vmax.f32 %v627_v58, %v641_v46 }
 0x2f8   : > { %v647_v30 = vadd.f32 %v645_v47, %v631_v15  ;;  %v433_v48 = vpop.permute.xlu1 %432  ;;  %v652_v17 = vmax.f32 %v644_v42, %v3475_v11 }
 0x2f9   : > { %v437_v40 = vsel %vm435_vm3, %v433_v48, -inf  ;;  %v441_v7 = vmul.f32 %v3601_v5, %v433_v48  ;;  %v431_v29 = vpop.permute.xlu0 %430  ;;  %v656_v37 = vadd.f32 %v3478_v43, %v648_v32  ;;  %v651_v44 = vmax.f32 %v643_v62, %v3567_v54 }
 0x2fa   : > { %v439_v56 = vmax.f32 %v422_v9, %v437_v40  ;;  %v436_v10 = vsel %vm434_vm4, %v431_v29, -inf  ;;  %v440_v14 = vmul.f32 %v2088_v41, %v431_v29  ;;  %v655_v61 = vadd.f32 %v653_v31, %v647_v30 }
 0x2fb   : > { %v443_v22 = vadd.f32 %v441_v7, %v426_v25  ;;  %v438_v51 = vmax.f32 %v421_v63, %v436_v10  ;;  %v1529_v40 = vsub.s32 0, %v2601_v19  ;;  %v1555_v7 = vsub.s32 2, %v2601_v19 }
 0x2fc   : > { %v446_v53 = vmul.f32 %v444_v60, %v439_v56  ;;  %v442_v11 = vadd.f32 %v440_v14, %v425_v35  ;;  %v549_v50 = vpop.permute.xlu1 %548  ;;  %v3764_v56 = vld [vmem:[#allocation25_spill] sm:$0xff] }
 0x2fd   : > { %v448_v27 = vmul.f32 0.11111111, %v443_v22  ;;  %v445_v28 = vmul.f32 %v444_v60, %v438_v51  ;;  %v551_v0 = vsel %vm435_vm3, %v549_v50, -inf  ;;  %v555_v43 = vmul.f32 %v3601_v5, %v549_v50  ;;  %v547_v8 = vpop.permute.xlu0 %546 }
 0x2fe   : > { %v447_v54 = vmul.f32 0.11111111, %v442_v11  ;;  %v553_v23 = vmax.f32 %v541_v52, %v551_v0  ;;  %v550_v57 = vsel %vm434_vm4, %v547_v8, -inf  ;;  %v554_v18 = vmul.f32 %v2088_v41, %v547_v8 }
 0x2ff   : > { %v451_v9 = vmul.f32 %v449_v26, %v448_v27  ;;  %v557_v34 = vadd.f32 %v555_v43, %v545_v49  ;;  %v552_v1 = vmax.f32 %v540_v6, %v550_v57  ;;  %v3765_v27 = vld [vmem:[#allocation26_spill] sm:$0xff] }
 0x300   : > { %v450_v38 = vmul.f32 %v449_v26, %v447_v54  ;;  %v559_v25 = vmul.f32 %v553_v23, %v444_v60  ;;  %v556_v63 = vadd.f32 %v554_v18, %v544_v45  ;;  %v660_v2 = vpop.permute.xlu1 %659  ;;  %v3767_v43 = vld [vmem:[#allocation18_spill] sm:$0xff] }
 0x301   : > { %v453_v20 = vadd.f32 %v451_v9, %v446_v53  ;;  %v561_v12 = vmul.f32 0.11111111, %v557_v34  ;;  %v558_v35 = vmul.f32 %v552_v1, %v444_v60  ;;  %v662_v59 = vsel %vm435_vm3, %v660_v2, -inf  ;;  %v658_v58 = vpop.permute.xlu0 %657  ;;  %v3768_v54 = vld [vmem:[#allocation22_spill] sm:$0xff]  ;;  %v3770_v9 = vld [vmem:[#allocation23_spill] sm:$0xff]  ;;  %v3771_v1 = vld [vmem:[#allocation21_spill] sm:$0xff] }
 0x302   : > { %v452_v33 = vadd.f32 %v450_v38, %v445_v28  ;;  %v560_v13 = vmul.f32 0.11111111, %v556_v63  ;;  %v664_v15 = vmax.f32 %v652_v17, %v662_v59  ;;  %v666_v55 = vmul.f32 %v3601_v5, %v660_v2  ;;  %v3766_v28 = vld [vmem:[#allocation19_spill] sm:$0xff] }
 0x303   : > { %v563_v16 = vmul.f32 %v561_v12, %v449_v26  ;;  %v661_v52 = vsel %vm434_vm4, %v658_v58, -inf  ;;  %v665_v31 = vmul.f32 %v2088_v41, %v658_v58  ;;  %v454_v5 = vstv %s1712_s14 }
 0x304   : > { %v562_v3 = vmul.f32 %v560_v13, %v449_v26  ;;  %v668_v24 = vadd.f32 %v666_v55, %v656_v37  ;;  %v663_v49 = vmax.f32 %v651_v44, %v661_v52  ;;  %v670_v46 = vmul.f32 %v664_v15, %v444_v60  ;;  %v3763_v37 = vld [vmem:[#allocation24_spill] sm:$0xff] }
 0x305   : > { %v565_v21 = vadd.f32 %v563_v16, %v559_v25  ;;  %v667_v6 = vadd.f32 %v665_v31, %v655_v61  ;;  %v1542_v41 = vsub.s32 1, %v2601_v19  ;;  %v456_v29 = vmul.f32 %v3201_v36, %v454_v5 }
 0x306   : > { %v564_v42 = vadd.f32 %v562_v3, %v558_v35  ;;  %v672_v47 = vmul.f32 0.11111111, %v668_v24  ;;  %v669_v45 = vmul.f32 %v663_v49, %v444_v60  ;;  %v455_v44 = vmul.f32 %v3763_v37, %v454_v5 }
 0x307   : > { %v671_v32 = vmul.f32 0.11111111, %v667_v6  ;;  %v567_v60 = vmul.f32 %v3764_v56, %v454_v5  ;;  %v566_v10 = vmul.f32 %v3218_v39, %v454_v5  ;;  %v678_v61 = vmul.f32 %v3243_v4, %v454_v5  ;;  %v3769_v39 = vld [vmem:[#allocation20_spill] sm:$0xff] }
 0x308   : > { %v674_v62 = vmul.f32 %v672_v47, %v449_v26  ;;  %v458_v11 = vadd.f32 %v456_v29, %v453_v20  ;;  %v457_v50 = vadd.f32 %v455_v44, %v452_v33  ;;  %v677_v19 = vmul.f32 %v3765_v27, %v454_v5 }
 0x309   : > { %v673_v30 = vmul.f32 %v671_v32, %v449_v26  ;;  %v1533_v36 = vstv %s1711_s15  ;;  %v569_v4 = vadd.f32 %v567_v60, %v565_v21  ;;  %v568_v18 = vadd.f32 %v566_v10, %v564_v42 }
 0x30a   : > { %v676_v48 = vadd.f32 %v674_v62, %v670_v46 }
 0x30b   : > { %v675_v17 = vadd.f32 %v673_v30, %v669_v45 }
 0x30c   : > { %v680_v12 = vadd.f32 %v678_v61, %v676_v48 }
 0x30d   : > { %v679_v35 = vadd.f32 %v677_v19, %v675_v17 }
 0x3b5   : > { %v1523_v14 = vpop.f32.mrb[0].mxu1 }
 0x3b6   : > { %v1530_v22 = vrot.slane %v1523_v14, %v1529_v40  ;;  %v1543_v51 = vrot.slane %v1523_v14, %v1542_v41  ;;  %v1556_v53 = vrot.slane %v1523_v14, %v1555_v7  ;;  %v1906_v26 = vpop.f32.mrb[1].mxu1 }
 0x3b8   : > { %v1531_v0 = vmul.f32 %v1530_v22, %v3766_v28  ;;  %v1532_v8 = vmul.f32 %v1530_v22, %v3767_v43  ;;  %v1544_v23 = vmul.f32 %v1543_v51, %v3768_v54  ;;  %v1545_v57 = vmul.f32 %v1543_v51, %v3769_v39 }
 0x3b9   : > { %v1557_v34 = vmul.f32 %v1556_v53, %v3770_v9  ;;  %v1558_v38 = vmul.f32 %v1556_v53, %v3771_v1 }
 0x3ba   : > { %v1534_v25 = vmul.f32 %v1533_v36, %v1531_v0  ;;  %v1535_v63 = vmul.f32 %v1533_v36, %v1532_v8  ;;  %v1546_v2 = vmul.f32 %v1544_v23, %v1533_v36  ;;  %v1547_v20 = vmul.f32 %v1545_v57, %v1533_v36 }
 0x3bb   : > { %v1559_v59 = vmul.f32 %v1557_v34, %v1533_v36  ;;  %v1560_v58 = vmul.f32 %v1558_v38, %v1533_v36 }
 0x3bc   : > { %v1536_v33 = vadd.f32 %v1534_v25, %v457_v50  ;;  %v1537_v13 = vadd.f32 %v1535_v63, %v458_v11  ;;  %v1548_v15 = vadd.f32 %v1546_v2, %v568_v18  ;;  %v1549_v55 = vadd.f32 %v1547_v20, %v569_v4 }
 0x3bd   : > { %v1561_v16 = vadd.f32 %v1559_v59, %v679_v35  ;;  %v1562_v52 = vadd.f32 %v1560_v58, %v680_v12 }
 0x3be   : > { %1538 = vst [vmem:[%s298_s16] sm:$0xff] %v1536_v33  ;;  %1539 = vst [vmem:[%s298_s16 + $0x8] sm:$0xff] %v1537_v13 }
 0x3bf   : > { %1796 = vst [vmem:[%s298_s16 + $0x10] sm:$0xff] %v1548_v15  ;;  %1797 = vst [vmem:[%s298_s16 + $0x18] sm:$0xff] %v1549_v55 }
 0x3c0   : > { %1798 = vst [vmem:[%s298_s16 + $0x20] sm:$0xff] %v1561_v16  ;;  %1799 = vst [vmem:[%s298_s16 + $0x28] sm:$0xff] %v1562_v52 }
 0x3c1   : > { %2229 = shalt.err (!%p2226_p4)
}
 0x3c2   : > { %s2230_s24 = scalar_lea.hbm %s3672_s30, 768  ;;  %s2234_s14 = scalar_lea.hbm %s3723_s5, 1536 }
 0x3c3   : > { %p2231_p9 = scmp.ne.s32.totalorder %s3672_s30, %s2230_s24  ;;  %p2235_p5 = scmp.lt.u32.totalorder %s3672_s30, %s3723_s5 }
 0x3c4   : > { %p2236_p11 = scmp.lt.u32.totalorder %s2234_s14, %s2230_s24  ;;  %p2238_p10 = scmp.lt.u32.totalorder %s2230_s24, %s3672_s30 }
 0x3c5   : > { %p2232_p12 = pnand %p2231_p9, %p2497_p3 }
 0x3c6   : > { %p2237_p7 = por %p2236_p11, %p2235_p5 }
 0x3c7   : > { %p2233_p0 = pneg %p2232_p12 }
 0x3c8   : > { %p2239_p2 = por %p2238_p10, %p2237_p7 }
 0x3ca   : > { %p2240_p6 = pnand %p2239_p2, %p2233_p0 }
 0x3cc   : > { %2243 = shalt.err (!%p2240_p6)
}
 0x3cd   : > { %s2309_s16 = smov 128   ;;  %s2310_s22 = smov 8  }
 0x3ce   : > { %1977 = dma.vmem_to_hbm [thread:$0]  (%p2497_p3), %s3674_s8, 768, %s3672_s30, %s1567_s17, %s2309_s16, %s2309_s16, %s2310_s22  }
 0x3cf PF: > { %s1595_s27 = sand.u32 1, %s2282_s18   ;;  %p3772_p8 = scmp.ne.s32.totalorder %s3738_s25, 0 }
 0x3d0   : > { %p3773_p13 = scmp.ge.s32.totalorder %s2294_s21, 2  ;;  %s1596_s6 = scalar_lea.sflag [#allocation4], %s1595_s27 }
 0x3d2   : > { %p1997_p1 = pnand %p3773_p13, %p3772_p8 }
 0x3d4   : > { %2277 = dma.done.wait (!%p1997_p1), %s1596_s6, 768  }
 0x3d5   : > { %2279 = vsyncadd (!%p1997_p1), %s1596_s6, 4294966528  ;;  %p21_p4 = scmp.ge.s32.totalorder %s2487_s12, 4   ;;  %s3774_s18 = smov %s2286_s19 }
 0x3d6   : > { %s3775_s19 = smov %s2290_s20  ;;  %s3776_s20 = smov %s2503_s23 }
 0x3d7   : > { %s3777_s21 = smov %s2487_s12  ;;  %23 = sbr.rel (!%p21_p4) target bundleno = 8 (0x8), region = 114 }
 0x3de   :  { %1601 = vsyncpa [#allocation3], 1 }
 0x3df   :  { %1603 = vsyncpa [#allocation3 + $0x1], 1 }
 0x3e0   :  { %1604 = vsyncpa [#allocation8], 1 }
 0x3e1   :  { %1605 = vsyncpa [#allocation11], 1 }
 0x3e2   :  { %1607 = vsyncpa [#allocation11 + $0x1], 1 }
 0x3e3   :  { %1608 = vsyncpa [#allocation4], 1 }
 0x3e4   :  { %1610 = vsyncpa [#allocation4 + $0x1], 1 }
 0x3e5   :  { %1611 = vsyncpa [#allocation5], 1 }
 0x3e6   :  { %1613 = vsyncpa [#allocation5 + $0x1], 1 }

</bundles_post_ra>
